<compile_context>
chip_gen: v5e
topology: v5e:2x2
jax: 0.10.0
libtpu: 0.0.40
codegen_flags: <defaults>
</compile_context>

<pallas_src>
import functools

import jax
import jax.numpy as jnp
from jax import lax
from jax.experimental import pallas as pl
from jax.experimental.pallas import tpu as pltpu


def _round_up(n, m):
    return ((n + m - 1) // m) * m


def _scatter_gates(w, H, Hp):
    """(.., 4H) -> (.., 4Hp): PyTorch i,f,g,o gate blocks placed at k*Hp, zero fill."""
    if Hp == H:
        return w
    pad = [(0, 0)] * (w.ndim - 1) + [(0, Hp - H)]
    return jnp.concatenate(
        [jnp.pad(w[..., k * H:(k + 1) * H], pad) for k in range(4)], axis=-1)


def _chip_knobs():
    """Per-generation VMEM limit and TensorCore count (best effort, safe defaults)."""
    vmem_limit = 48 * 1024 * 1024          # safe everywhere (< v7x's 64 MiB physical)
    n_tc = 1
    try:
        cap = int(getattr(pltpu.get_tpu_info(), "vmem_capacity_bytes", 0))
        if cap >= 100 * 1024 * 1024:       # 128 MiB parts: v5e / v6e
            vmem_limit = 96 * 1024 * 1024
        elif cap > 0:                      # 64 MiB parts: v7x (2 TCs/chip)
            n_tc = 2
    except Exception:
        pass
    try:
        if "v7" in jax.devices()[0].device_kind.lower():
            n_tc = 2
    except Exception:
        pass
    return vmem_limit, n_tc


def _bilstm_kernel(x_ref, wif_ref, whf_ref, bf_ref,
                   wib_ref, bb_ref,
                   wfcf_ref, wfcb_ref, bfc_ref,
                   o_ref, xg_ref, *, num_chains):
    T, Bt, I = x_ref.shape
    Hp = whf_ref.shape[0]
    cdt = x_ref.dtype                     # MXU operand dtype (bf16 or f32)
    bh = Bt // num_chains

    # Input projection for ALL time steps in one MXU pass, (b_ih + b_hh) folded
    # in (f32 accumulate), parked in VMEM scratch in the compute dtype and read
    # back per step.  (Lane-sparse K=I block is negligible at small I.)
    xg = jnp.dot(x_ref[...].reshape(T * Bt, I), wif_ref[...],
                 preferred_element_type=jnp.float32) + bf_ref[...]
    xg_ref[...] = xg.reshape(T, Bt, 4 * Hp).astype(xg_ref.dtype)

    def activate(g):
        # Hp is a multiple of 128, so every gate slice is full lane width.
        i_g = jax.nn.sigmoid(g[:, 0 * Hp:1 * Hp])
        f_g = jax.nn.sigmoid(g[:, 1 * Hp:2 * Hp])
        g_g = jnp.tanh(g[:, 2 * Hp:3 * Hp])
        o_g = jax.nn.sigmoid(g[:, 3 * Hp:4 * Hp])
        return i_g, f_g, g_g, o_g

    def cell(pre, h, c):
        # whf streamed from VMEM inside the loop (do NOT hoist: vreg pressure).
        g = pre + jnp.dot(h.astype(cdt), whf_ref[...],
                          preferred_element_type=jnp.float32)
        i_g, f_g, g_g, o_g = activate(g)
        c_new = f_g * c + i_g * g_g
        return o_g * jnp.tanh(c_new), c_new

    def step(t, carry):
        xg_t = xg_ref[t]                  # (Bt, 4Hp): one load shared by all chains
        new = []
        for n in range(num_chains):       # independent chains interleave MXU/EUP/VPU
            h, c = cell(xg_t[n * bh:(n + 1) * bh, :],
                        carry[2 * n], carry[2 * n + 1])
            new += [h, c]
        return tuple(new)

    z = jnp.zeros((bh, Hp), jnp.float32)
    carry = lax.fori_loop(0, T, step, (z, z) * num_chains,
                          unroll=True if T <= 16 else 8)
    h_fwd = (carry[0] if num_chains == 1 else
             jnp.concatenate([carry[2 * n] for n in range(num_chains)], axis=0))

    # Reverse direction: only out[:, -1, H:] is consumed downstream, i.e. the
    # reverse LSTM's first processed step with zero initial state -> no h@w_hh
    # matmul and no f_g * c term (both are provably zero).
    g_b = jnp.dot(x_ref[T - 1], wib_ref[...],
                  preferred_element_type=jnp.float32) + bb_ref[...]
    i_b, _, gg_b, o_b = activate(g_b)     # unused f-gate is DCE'd
    h_bwd = o_b * jnp.tanh(i_b * gg_b)

    # fc on concat(h_fwd, h_bwd) without an explicit concatenate:
    # [h_f | h_b] @ W = h_f @ W[:H] + h_b @ W[H:]; MXU operands in compute dtype,
    # f32 accumulate.  N=O<128 masked store is epilogue-only cost at these sizes.
    out = (jnp.dot(h_fwd.astype(cdt), wfcf_ref[...],
                   preferred_element_type=jnp.float32)
           + jnp.dot(h_bwd.astype(cdt), wfcb_ref[...],
                     preferred_element_type=jnp.float32)
           + bfc_ref[...])
    o_ref[...] = out


def bilstm_forward(x, params, *, compute_dtype=jnp.bfloat16, batch_tile=64):
    """x: (B, T, I) batch-first float32, like the PyTorch module."""
    B, T, I = x.shape
    H = params["w_hh_f"].shape[0]
    O = params["w_fc"].shape[1]

    Hp = _round_up(H, 128)                          # full-lane gate blocks
    sub = 16 if compute_dtype == jnp.bfloat16 else 8
    Bp = _round_up(B, sub)                          # sublane-aligned batch

    vmem_limit, n_tc = _chip_knobs()
    # Single-TC chips (v5e/v6e): one big tile (per-grid-step overhead is pure
    # serial loss).  v7x: >=2 batch tiles so the "parallel" axis shards across
    # both TensorCores — only when the split stays sublane-aligned.
    bt = min(Bp, batch_tile)
    if n_tc >= 2 and Bp // 2 >= sub and (Bp // 2) % sub == 0:
        bt = min(Bp // 2, batch_tile)
    Bp = _round_up(Bp, bt)

    # Two independent h/c chains per step when the tile splits into two
    # sublane-aligned halves (hides MXU result latency behind EUP/VPU work).
    scratch_dtype = compute_dtype
    sub_scr = 16 if scratch_dtype == jnp.bfloat16 else 8
    num_chains = 2 if (bt % (2 * sub_scr) == 0) else 1

    # Time-major, batch-padded input in the MXU operand dtype.  XLA fuses the
    # transpose+pad+cast into one pass over x; fine at small T*B (a very large
    # T*B would call for a time-chunked pipelined variant).
    x_tm = jnp.pad(jnp.transpose(x, (1, 0, 2)),
                   ((0, 0), (0, Bp - B), (0, 0))).astype(compute_dtype)

    # Weights pre-transposed to activation @ weight form; gates scattered so
    # each gate occupies its own 128-lane-aligned block of width Hp.  Zero
    # padding of the w_hh rows AND all gate columns/biases keeps the padded
    # hidden units exactly zero through the recurrence.
    wif = _scatter_gates(params["w_ih_f"], H, Hp).astype(compute_dtype)
    whf = _scatter_gates(jnp.pad(params["w_hh_f"], ((0, Hp - H), (0, 0))),
                         H, Hp).astype(compute_dtype)
    bf = _scatter_gates(params["b_f"], H, Hp)                      # f32
    wib = _scatter_gates(params["w_ih_b"], H, Hp).astype(compute_dtype)
    bb = _scatter_gates(params["b_b"], H, Hp)                      # f32
    # w_hh_b is intentionally NOT passed to the kernel: the reverse direction
    # only runs its first step from a zero state, so h @ w_hh_b would be a
    # matmul of zeros.
    wfc_f = jnp.pad(params["w_fc"][:H], ((0, Hp - H), (0, 0))).astype(compute_dtype)
    wfc_b = jnp.pad(params["w_fc"][H:], ((0, Hp - H), (0, 0))).astype(compute_dtype)
    bfc = params["b_fc"]                                           # (1, O) f32

    def full(shape):
        # These operands have constant index maps across the grid; Buffered(1)
        # would halve their VMEM but is left off for maximum compile portability.
        return pl.BlockSpec(shape, lambda b: (0,) * len(shape))

    kernel = functools.partial(_bilstm_kernel, num_chains=num_chains)

    out = pl.pallas_call(
        kernel,
        out_shape=jax.ShapeDtypeStruct((Bp, O), jnp.float32),
        grid_spec=pltpu.PrefetchScalarGridSpec(
            num_scalar_prefetch=0,
            grid=(Bp // bt,),                       # independent batch tiles
            in_specs=[
                pl.BlockSpec((T, bt, I), lambda b: (0, b, 0)),     # x (time-major)
                full((I, 4 * Hp)), full((Hp, 4 * Hp)), full((1, 4 * Hp)),  # fwd
                full((I, 4 * Hp)), full((1, 4 * Hp)),                      # bwd
                full((Hp, O)), full((Hp, O)), full((1, O)),                # fc
            ],
            out_specs=pl.BlockSpec((bt, O), lambda b: (b, 0)),
            scratch_shapes=[pltpu.VMEM((T, bt, 4 * Hp), scratch_dtype)],
        ),
        compiler_params=pltpu.CompilerParams(
            dimension_semantics=("parallel",),      # megacore-shard batch tiles
            vmem_limit_bytes=vmem_limit,            # per-chip (96M v5e/v6e, 48M v7x)
        ),
    )(x_tm, wif, whf, bf, wib, bb, wfc_f, wfc_b, bfc)
    return out[:B]


def init_params(key, input_size, hidden_size, output_size):
    """Deterministic synthetic params mirroring PyTorch's default init ranges."""
    k_lstm = 1.0 / float(hidden_size) ** 0.5
    k_fc = 1.0 / float(2 * hidden_size) ** 0.5
    keys = jax.random.split(key, 10)
    u = lambda k, shape, b: jax.random.uniform(k, shape, jnp.float32, -b, b)
    return {
        # forward direction (l0)
        "w_ih_f": u(keys[0], (input_size, 4 * hidden_size), k_lstm),
        "w_hh_f": u(keys[1], (hidden_size, 4 * hidden_size), k_lstm),
        "b_f":   (u(keys[2], (1, 4 * hidden_size), k_lstm)
                  + u(keys[3], (1, 4 * hidden_size), k_lstm)),   # b_ih + b_hh
        # reverse direction (l0_reverse)
        "w_ih_b": u(keys[4], (input_size, 4 * hidden_size), k_lstm),
        "w_hh_b": u(keys[5], (hidden_size, 4 * hidden_size), k_lstm),
        "b_b":   (u(keys[6], (1, 4 * hidden_size), k_lstm)
                  + u(keys[7], (1, 4 * hidden_size), k_lstm)),
        # fc: Linear(2H, O)
        "w_fc": u(keys[8], (2 * hidden_size, output_size), k_fc),
        "b_fc": u(keys[9], (1, output_size), k_fc),
    }


def reference_forward(x, p):
    """Pure-JAX f32 reference matching PyTorch BiLSTM + fc(out[:, -1, :])."""
    B, T, _ = x.shape
    H = p["w_hh_f"].shape[0]

    def cell(xt, h, c, wih, whh, b):
        g = xt @ wih + h @ whh + b
        i = jax.nn.sigmoid(g[:, :H])
        f = jax.nn.sigmoid(g[:, H:2 * H])
        gg = jnp.tanh(g[:, 2 * H:3 * H])
        o = jax.nn.sigmoid(g[:, 3 * H:])
        c = f * c + i * gg
        return o * jnp.tanh(c), c

    h = jnp.zeros((B, H), jnp.float32)
    c = jnp.zeros((B, H), jnp.float32)
    for t in range(T):
        h, c = cell(x[:, t, :], h, c, p["w_ih_f"], p["w_hh_f"], p["b_f"])
    hb, _ = cell(x[:, -1, :], jnp.zeros((B, H)), jnp.zeros((B, H)),
                 p["w_ih_b"], p["w_hh_b"], p["b_b"])
    feat = jnp.concatenate([h, hb], axis=1)
    return feat @ p["w_fc"] + p["b_fc"]


if __name__ == "__main__":
    B, T, I, H, O = 2, 8, 4, 32, 1
    key = jax.random.PRNGKey(0)
    kx, kp = jax.random.split(key)
    x = jax.random.normal(kx, (B, T, I), jnp.float32)
    params = init_params(kp, I, H, O)

    ref = reference_forward(x, params)

    # f32 operand path: bit-tight check of kernel logic (padding, gate scatter,
    # recurrence, interleaved chains, reverse single-cell, fc epilogue).
    out_f32 = jax.block_until_ready(
        bilstm_forward(x, params, compute_dtype=jnp.float32))
    assert out_f32.shape == (B, O)
    assert jnp.allclose(out_f32, ref, atol=1e-5, rtol=1e-5), (out_f32, ref)

    # Default bf16-operand / f32-accumulate MXU path (bf16 xg scratch + bf16 fc
    # weights): looser tolerance, accumulation stays f32.
    out_bf16 = jax.block_until_ready(bilstm_forward(x, params))
    assert out_bf16.shape == (B, O)
    assert jnp.allclose(out_bf16, ref, atol=5e-2, rtol=5e-2), (out_bf16, ref)

    print("KERNEL_OK")
</pallas_src>

<mosaic_0001>
module attributes {stable_mosaic.version = 11 : i64} {
  func.func @_bilstm_kernel(%arg0: i32, %arg1: memref<8x8x4xf32, #tpu.memory_space<vmem>>, %arg2: memref<4x512xf32, #tpu.memory_space<vmem>>, %arg3: memref<128x512xf32, #tpu.memory_space<vmem>>, %arg4: memref<1x512xf32, #tpu.memory_space<vmem>>, %arg5: memref<4x512xf32, #tpu.memory_space<vmem>>, %arg6: memref<1x512xf32, #tpu.memory_space<vmem>>, %arg7: memref<128x1xf32, #tpu.memory_space<vmem>>, %arg8: memref<128x1xf32, #tpu.memory_space<vmem>>, %arg9: memref<1x1xf32, #tpu.memory_space<vmem>>, %arg10: memref<8x1xf32, #tpu.memory_space<vmem>>, %arg11: memref<8x8x512xf32, #tpu.memory_space<vmem>>) attributes {dimension_semantics = [#tpu.dimension_semantics<parallel>], iteration_bounds = array<i64: 1>, scalar_prefetch = 0 : i64, scratch_operands = 1 : i64, tpu.core_type = #tpu.core_type<tc>, window_params = [{transform_indices = @transform_0, window_bounds = array<i64: 8, 8, 4>}, {pipeline_mode = #tpu.pipeline_mode<synchronous>, transform_indices = @transform_1, window_bounds = array<i64: 4, 512>}, {pipeline_mode = #tpu.pipeline_mode<synchronous>, transform_indices = @transform_2, window_bounds = array<i64: 128, 512>}, {pipeline_mode = #tpu.pipeline_mode<synchronous>, transform_indices = @transform_3, window_bounds = array<i64: 1, 512>}, {pipeline_mode = #tpu.pipeline_mode<synchronous>, transform_indices = @transform_4, window_bounds = array<i64: 4, 512>}, {pipeline_mode = #tpu.pipeline_mode<synchronous>, transform_indices = @transform_5, window_bounds = array<i64: 1, 512>}, {pipeline_mode = #tpu.pipeline_mode<synchronous>, transform_indices = @transform_6, window_bounds = array<i64: 128, 1>}, {pipeline_mode = #tpu.pipeline_mode<synchronous>, transform_indices = @transform_7, window_bounds = array<i64: 128, 1>}, {pipeline_mode = #tpu.pipeline_mode<synchronous>, transform_indices = @transform_8, window_bounds = array<i64: 1, 1>}, {transform_indices = @transform_9, window_bounds = array<i64: 8, 1>}]} {
    %c0 = arith.constant 0 : index
    %c0_0 = arith.constant 0 : index
    %c0_1 = arith.constant 0 : index
    %0 = vector.load %arg1[%c0, %c0_0, %c0_1] : memref<8x8x4xf32, #tpu.memory_space<vmem>>, vector<8x8x4xf32>
    %1 = vector.shape_cast %0 : vector<8x8x4xf32> to vector<64x4xf32>
    %c0_2 = arith.constant 0 : index
    %c0_3 = arith.constant 0 : index
    %2 = vector.load %arg2[%c0_2, %c0_3] : memref<4x512xf32, #tpu.memory_space<vmem>>, vector<4x512xf32>
    %cst = arith.constant dense<0.000000e+00> : vector<64x512xf32>
    %3 = tpu.matmul %1, %2, %cst {dimension_numbers = #tpu.dot_dimension_numbers<[1], [0], [0], [1], [0, 0, 1, 1], [], []>} : vector<64x4xf32>, vector<4x512xf32>, vector<64x512xf32> -> vector<64x512xf32>
    %c0_4 = arith.constant 0 : index
    %c0_5 = arith.constant 0 : index
    %4 = vector.load %arg4[%c0_4, %c0_5] : memref<1x512xf32, #tpu.memory_space<vmem>>, vector<1x512xf32>
    %5 = vector.broadcast %4 : vector<1x512xf32> to vector<64x512xf32>
    %6 = arith.addf %3, %5 : vector<64x512xf32>
    %7 = vector.shape_cast %6 : vector<64x512xf32> to vector<8x8x512xf32>
    %c0_6 = arith.constant 0 : index
    %c0_7 = arith.constant 0 : index
    %c0_8 = arith.constant 0 : index
    %8 = vector.load %arg11[%c0_6, %c0_7, %c0_8] : memref<8x8x512xf32, #tpu.memory_space<vmem>>, vector<8x8x512xf32>
    tpu.vector_store %arg11[%c0_6, %c0_7, %c0_8], %7 {strides = array<i32>} : memref<8x8x512xf32, #tpu.memory_space<vmem>>, vector<8x8x512xf32>,
    %cst_9 = arith.constant 0.000000e+00 : f32
    %9 = vector.broadcast %cst_9 : f32 to vector<8x128xf32>
    %c0_i32 = arith.constant 0 : i32
    %10 = arith.index_cast %c0_i32 : i32 to index
    %c0_10 = arith.constant 0 : index
    %c0_11 = arith.constant 0 : index
    %11 = vector.load %arg11[%10, %c0_10, %c0_11] : memref<8x8x512xf32, #tpu.memory_space<vmem>>, vector<1x8x512xf32>
    %12 = vector.shape_cast %11 : vector<1x8x512xf32> to vector<8x512xf32>
    %c0_12 = arith.constant 0 : index
    %c0_13 = arith.constant 0 : index
    %13 = vector.load %arg3[%c0_12, %c0_13] : memref<128x512xf32, #tpu.memory_space<vmem>>, vector<128x512xf32>
    %cst_14 = arith.constant dense<0.000000e+00> : vector<8x512xf32>
    %14 = tpu.matmul %9, %13, %cst_14 {dimension_numbers = #tpu.dot_dimension_numbers<[1], [0], [0], [1], [0, 0, 1, 1], [], []>} : vector<8x128xf32>, vector<128x512xf32>, vector<8x512xf32> -> vector<8x512xf32>
    %15 = arith.addf %12, %14 : vector<8x512xf32>
    %16 = vector.extract_strided_slice %15 {offsets = [0, 0], sizes = [8, 128], strides = [1, 1]} : vector<8x512xf32> to vector<8x128xf32>
    %17 = arith.negf %16 : vector<8x128xf32>
    %18 = math.exp %17 : vector<8x128xf32>
    %cst_15 = arith.constant 1.000000e+00 : f32
    %19 = vector.broadcast %cst_15 : f32 to vector<8x128xf32>
    %20 = arith.addf %19, %18 : vector<8x128xf32>
    %21 = arith.divf %19, %20 : vector<8x128xf32>
    %22 = vector.extract_strided_slice %15 {offsets = [0, 128], sizes = [8, 128], strides = [1, 1]} : vector<8x512xf32> to vector<8x128xf32>
    %23 = arith.negf %22 : vector<8x128xf32>
    %24 = math.exp %23 : vector<8x128xf32>
    %cst_16 = arith.constant 1.000000e+00 : f32
    %25 = vector.broadcast %cst_16 : f32 to vector<8x128xf32>
    %26 = arith.addf %25, %24 : vector<8x128xf32>
    %27 = arith.divf %25, %26 : vector<8x128xf32>
    %28 = vector.extract_strided_slice %15 {offsets = [0, 256], sizes = [8, 128], strides = [1, 1]} : vector<8x512xf32> to vector<8x128xf32>
    %29 = math.tanh %28 : vector<8x128xf32>
    %30 = vector.extract_strided_slice %15 {offsets = [0, 384], sizes = [8, 128], strides = [1, 1]} : vector<8x512xf32> to vector<8x128xf32>
    %31 = arith.negf %30 : vector<8x128xf32>
    %32 = math.exp %31 : vector<8x128xf32>
    %cst_17 = arith.constant 1.000000e+00 : f32
    %33 = vector.broadcast %cst_17 : f32 to vector<8x128xf32>
    %34 = arith.addf %33, %32 : vector<8x128xf32>
    %35 = arith.divf %33, %34 : vector<8x128xf32>
    %36 = arith.mulf %27, %9 : vector<8x128xf32>
    %37 = arith.mulf %21, %29 : vector<8x128xf32>
    %38 = arith.addf %36, %37 : vector<8x128xf32>
    %39 = math.tanh %38 : vector<8x128xf32>
    %40 = arith.mulf %35, %39 : vector<8x128xf32>
    %c1_i32 = arith.constant 1 : i32
    %41 = arith.index_cast %c1_i32 : i32 to index
    %c0_18 = arith.constant 0 : index
    %c0_19 = arith.constant 0 : index
    %42 = vector.load %arg11[%41, %c0_18, %c0_19] : memref<8x8x512xf32, #tpu.memory_space<vmem>>, vector<1x8x512xf32>
    %43 = vector.shape_cast %42 : vector<1x8x512xf32> to vector<8x512xf32>
    %c0_20 = arith.constant 0 : index
    %c0_21 = arith.constant 0 : index
    %44 = vector.load %arg3[%c0_20, %c0_21] : memref<128x512xf32, #tpu.memory_space<vmem>>, vector<128x512xf32>
    %cst_22 = arith.constant dense<0.000000e+00> : vector<8x512xf32>
    %45 = tpu.matmul %40, %44, %cst_22 {dimension_numbers = #tpu.dot_dimension_numbers<[1], [0], [0], [1], [0, 0, 1, 1], [], []>} : vector<8x128xf32>, vector<128x512xf32>, vector<8x512xf32> -> vector<8x512xf32>
    %46 = arith.addf %43, %45 : vector<8x512xf32>
    %47 = vector.extract_strided_slice %46 {offsets = [0, 0], sizes = [8, 128], strides = [1, 1]} : vector<8x512xf32> to vector<8x128xf32>
    %48 = arith.negf %47 : vector<8x128xf32>
    %49 = math.exp %48 : vector<8x128xf32>
    %cst_23 = arith.constant 1.000000e+00 : f32
    %50 = vector.broadcast %cst_23 : f32 to vector<8x128xf32>
    %51 = arith.addf %50, %49 : vector<8x128xf32>
    %52 = arith.divf %50, %51 : vector<8x128xf32>
    %53 = vector.extract_strided_slice %46 {offsets = [0, 128], sizes = [8, 128], strides = [1, 1]} : vector<8x512xf32> to vector<8x128xf32>
    %54 = arith.negf %53 : vector<8x128xf32>
    %55 = math.exp %54 : vector<8x128xf32>
    %cst_24 = arith.constant 1.000000e+00 : f32
    %56 = vector.broadcast %cst_24 : f32 to vector<8x128xf32>
    %57 = arith.addf %56, %55 : vector<8x128xf32>
    %58 = arith.divf %56, %57 : vector<8x128xf32>
    %59 = vector.extract_strided_slice %46 {offsets = [0, 256], sizes = [8, 128], strides = [1, 1]} : vector<8x512xf32> to vector<8x128xf32>
    %60 = math.tanh %59 : vector<8x128xf32>
    %61 = vector.extract_strided_slice %46 {offsets = [0, 384], sizes = [8, 128], strides = [1, 1]} : vector<8x512xf32> to vector<8x128xf32>
    %62 = arith.negf %61 : vector<8x128xf32>
    %63 = math.exp %62 : vector<8x128xf32>
    %cst_25 = arith.constant 1.000000e+00 : f32
    %64 = vector.broadcast %cst_25 : f32 to vector<8x128xf32>
    %65 = arith.addf %64, %63 : vector<8x128xf32>
    %66 = arith.divf %64, %65 : vector<8x128xf32>
    %67 = arith.mulf %58, %38 : vector<8x128xf32>
    %68 = arith.mulf %52, %60 : vector<8x128xf32>
    %69 = arith.addf %67, %68 : vector<8x128xf32>
    %70 = math.tanh %69 : vector<8x128xf32>
    %71 = arith.mulf %66, %70 : vector<8x128xf32>
    %c2_i32 = arith.constant 2 : i32
    %72 = arith.index_cast %c2_i32 : i32 to index
    %c0_26 = arith.constant 0 : index
    %c0_27 = arith.constant 0 : index
    %73 = vector.load %arg11[%72, %c0_26, %c0_27] : memref<8x8x512xf32, #tpu.memory_space<vmem>>, vector<1x8x512xf32>
    %74 = vector.shape_cast %73 : vector<1x8x512xf32> to vector<8x512xf32>
    %c0_28 = arith.constant 0 : index
    %c0_29 = arith.constant 0 : index
    %75 = vector.load %arg3[%c0_28, %c0_29] : memref<128x512xf32, #tpu.memory_space<vmem>>, vector<128x512xf32>
    %cst_30 = arith.constant dense<0.000000e+00> : vector<8x512xf32>
    %76 = tpu.matmul %71, %75, %cst_30 {dimension_numbers = #tpu.dot_dimension_numbers<[1], [0], [0], [1], [0, 0, 1, 1], [], []>} : vector<8x128xf32>, vector<128x512xf32>, vector<8x512xf32> -> vector<8x512xf32>
    %77 = arith.addf %74, %76 : vector<8x512xf32>
    %78 = vector.extract_strided_slice %77 {offsets = [0, 0], sizes = [8, 128], strides = [1, 1]} : vector<8x512xf32> to vector<8x128xf32>
    %79 = arith.negf %78 : vector<8x128xf32>
    %80 = math.exp %79 : vector<8x128xf32>
    %cst_31 = arith.constant 1.000000e+00 : f32
    %81 = vector.broadcast %cst_31 : f32 to vector<8x128xf32>
    %82 = arith.addf %81, %80 : vector<8x128xf32>
    %83 = arith.divf %81, %82 : vector<8x128xf32>
    %84 = vector.extract_strided_slice %77 {offsets = [0, 128], sizes = [8, 128], strides = [1, 1]} : vector<8x512xf32> to vector<8x128xf32>
    %85 = arith.negf %84 : vector<8x128xf32>
    %86 = math.exp %85 : vector<8x128xf32>
    %cst_32 = arith.constant 1.000000e+00 : f32
    %87 = vector.broadcast %cst_32 : f32 to vector<8x128xf32>
    %88 = arith.addf %87, %86 : vector<8x128xf32>
    %89 = arith.divf %87, %88 : vector<8x128xf32>
    %90 = vector.extract_strided_slice %77 {offsets = [0, 256], sizes = [8, 128], strides = [1, 1]} : vector<8x512xf32> to vector<8x128xf32>
    %91 = math.tanh %90 : vector<8x128xf32>
    %92 = vector.extract_strided_slice %77 {offsets = [0, 384], sizes = [8, 128], strides = [1, 1]} : vector<8x512xf32> to vector<8x128xf32>
    %93 = arith.negf %92 : vector<8x128xf32>
    %94 = math.exp %93 : vector<8x128xf32>
    %cst_33 = arith.constant 1.000000e+00 : f32
    %95 = vector.broadcast %cst_33 : f32 to vector<8x128xf32>
    %96 = arith.addf %95, %94 : vector<8x128xf32>
    %97 = arith.divf %95, %96 : vector<8x128xf32>
    %98 = arith.mulf %89, %69 : vector<8x128xf32>
    %99 = arith.mulf %83, %91 : vector<8x128xf32>
    %100 = arith.addf %98, %99 : vector<8x128xf32>
    %101 = math.tanh %100 : vector<8x128xf32>
    %102 = arith.mulf %97, %101 : vector<8x128xf32>
    %c3_i32 = arith.constant 3 : i32
    %103 = arith.index_cast %c3_i32 : i32 to index
    %c0_34 = arith.constant 0 : index
    %c0_35 = arith.constant 0 : index
    %104 = vector.load %arg11[%103, %c0_34, %c0_35] : memref<8x8x512xf32, #tpu.memory_space<vmem>>, vector<1x8x512xf32>
    %105 = vector.shape_cast %104 : vector<1x8x512xf32> to vector<8x512xf32>
    %c0_36 = arith.constant 0 : index
    %c0_37 = arith.constant 0 : index
    %106 = vector.load %arg3[%c0_36, %c0_37] : memref<128x512xf32, #tpu.memory_space<vmem>>, vector<128x512xf32>
    %cst_38 = arith.constant dense<0.000000e+00> : vector<8x512xf32>
    %107 = tpu.matmul %102, %106, %cst_38 {dimension_numbers = #tpu.dot_dimension_numbers<[1], [0], [0], [1], [0, 0, 1, 1], [], []>} : vector<8x128xf32>, vector<128x512xf32>, vector<8x512xf32> -> vector<8x512xf32>
    %108 = arith.addf %105, %107 : vector<8x512xf32>
    %109 = vector.extract_strided_slice %108 {offsets = [0, 0], sizes = [8, 128], strides = [1, 1]} : vector<8x512xf32> to vector<8x128xf32>
    %110 = arith.negf %109 : vector<8x128xf32>
    %111 = math.exp %110 : vector<8x128xf32>
    %cst_39 = arith.constant 1.000000e+00 : f32
    %112 = vector.broadcast %cst_39 : f32 to vector<8x128xf32>
    %113 = arith.addf %112, %111 : vector<8x128xf32>
    %114 = arith.divf %112, %113 : vector<8x128xf32>
    %115 = vector.extract_strided_slice %108 {offsets = [0, 128], sizes = [8, 128], strides = [1, 1]} : vector<8x512xf32> to vector<8x128xf32>
    %116 = arith.negf %115 : vector<8x128xf32>
    %117 = math.exp %116 : vector<8x128xf32>
    %cst_40 = arith.constant 1.000000e+00 : f32
    %118 = vector.broadcast %cst_40 : f32 to vector<8x128xf32>
    %119 = arith.addf %118, %117 : vector<8x128xf32>
    %120 = arith.divf %118, %119 : vector<8x128xf32>
    %121 = vector.extract_strided_slice %108 {offsets = [0, 256], sizes = [8, 128], strides = [1, 1]} : vector<8x512xf32> to vector<8x128xf32>
    %122 = math.tanh %121 : vector<8x128xf32>
    %123 = vector.extract_strided_slice %108 {offsets = [0, 384], sizes = [8, 128], strides = [1, 1]} : vector<8x512xf32> to vector<8x128xf32>
    %124 = arith.negf %123 : vector<8x128xf32>
    %125 = math.exp %124 : vector<8x128xf32>
    %cst_41 = arith.constant 1.000000e+00 : f32
    %126 = vector.broadcast %cst_41 : f32 to vector<8x128xf32>
    %127 = arith.addf %126, %125 : vector<8x128xf32>
    %128 = arith.divf %126, %127 : vector<8x128xf32>
    %129 = arith.mulf %120, %100 : vector<8x128xf32>
    %130 = arith.mulf %114, %122 : vector<8x128xf32>
    %131 = arith.addf %129, %130 : vector<8x128xf32>
    %132 = math.tanh %131 : vector<8x128xf32>
    %133 = arith.mulf %128, %132 : vector<8x128xf32>
    %c4_i32 = arith.constant 4 : i32
    %134 = arith.index_cast %c4_i32 : i32 to index
    %c0_42 = arith.constant 0 : index
    %c0_43 = arith.constant 0 : index
    %135 = vector.load %arg11[%134, %c0_42, %c0_43] : memref<8x8x512xf32, #tpu.memory_space<vmem>>, vector<1x8x512xf32>
    %136 = vector.shape_cast %135 : vector<1x8x512xf32> to vector<8x512xf32>
    %c0_44 = arith.constant 0 : index
    %c0_45 = arith.constant 0 : index
    %137 = vector.load %arg3[%c0_44, %c0_45] : memref<128x512xf32, #tpu.memory_space<vmem>>, vector<128x512xf32>
    %cst_46 = arith.constant dense<0.000000e+00> : vector<8x512xf32>
    %138 = tpu.matmul %133, %137, %cst_46 {dimension_numbers = #tpu.dot_dimension_numbers<[1], [0], [0], [1], [0, 0, 1, 1], [], []>} : vector<8x128xf32>, vector<128x512xf32>, vector<8x512xf32> -> vector<8x512xf32>
    %139 = arith.addf %136, %138 : vector<8x512xf32>
    %140 = vector.extract_strided_slice %139 {offsets = [0, 0], sizes = [8, 128], strides = [1, 1]} : vector<8x512xf32> to vector<8x128xf32>
    %141 = arith.negf %140 : vector<8x128xf32>
    %142 = math.exp %141 : vector<8x128xf32>
    %cst_47 = arith.constant 1.000000e+00 : f32
    %143 = vector.broadcast %cst_47 : f32 to vector<8x128xf32>
    %144 = arith.addf %143, %142 : vector<8x128xf32>
    %145 = arith.divf %143, %144 : vector<8x128xf32>
    %146 = vector.extract_strided_slice %139 {offsets = [0, 128], sizes = [8, 128], strides = [1, 1]} : vector<8x512xf32> to vector<8x128xf32>
    %147 = arith.negf %146 : vector<8x128xf32>
    %148 = math.exp %147 : vector<8x128xf32>
    %cst_48 = arith.constant 1.000000e+00 : f32
    %149 = vector.broadcast %cst_48 : f32 to vector<8x128xf32>
    %150 = arith.addf %149, %148 : vector<8x128xf32>
    %151 = arith.divf %149, %150 : vector<8x128xf32>
    %152 = vector.extract_strided_slice %139 {offsets = [0, 256], sizes = [8, 128], strides = [1, 1]} : vector<8x512xf32> to vector<8x128xf32>
    %153 = math.tanh %152 : vector<8x128xf32>
    %154 = vector.extract_strided_slice %139 {offsets = [0, 384], sizes = [8, 128], strides = [1, 1]} : vector<8x512xf32> to vector<8x128xf32>
    %155 = arith.negf %154 : vector<8x128xf32>
    %156 = math.exp %155 : vector<8x128xf32>
    %cst_49 = arith.constant 1.000000e+00 : f32
    %157 = vector.broadcast %cst_49 : f32 to vector<8x128xf32>
    %158 = arith.addf %157, %156 : vector<8x128xf32>
    %159 = arith.divf %157, %158 : vector<8x128xf32>
    %160 = arith.mulf %151, %131 : vector<8x128xf32>
    %161 = arith.mulf %145, %153 : vector<8x128xf32>
    %162 = arith.addf %160, %161 : vector<8x128xf32>
    %163 = math.tanh %162 : vector<8x128xf32>
    %164 = arith.mulf %159, %163 : vector<8x128xf32>
    %c5_i32 = arith.constant 5 : i32
    %165 = arith.index_cast %c5_i32 : i32 to index
    %c0_50 = arith.constant 0 : index
    %c0_51 = arith.constant 0 : index
    %166 = vector.load %arg11[%165, %c0_50, %c0_51] : memref<8x8x512xf32, #tpu.memory_space<vmem>>, vector<1x8x512xf32>
    %167 = vector.shape_cast %166 : vector<1x8x512xf32> to vector<8x512xf32>
    %c0_52 = arith.constant 0 : index
    %c0_53 = arith.constant 0 : index
    %168 = vector.load %arg3[%c0_52, %c0_53] : memref<128x512xf32, #tpu.memory_space<vmem>>, vector<128x512xf32>
    %cst_54 = arith.constant dense<0.000000e+00> : vector<8x512xf32>
    %169 = tpu.matmul %164, %168, %cst_54 {dimension_numbers = #tpu.dot_dimension_numbers<[1], [0], [0], [1], [0, 0, 1, 1], [], []>} : vector<8x128xf32>, vector<128x512xf32>, vector<8x512xf32> -> vector<8x512xf32>
    %170 = arith.addf %167, %169 : vector<8x512xf32>
    %171 = vector.extract_strided_slice %170 {offsets = [0, 0], sizes = [8, 128], strides = [1, 1]} : vector<8x512xf32> to vector<8x128xf32>
    %172 = arith.negf %171 : vector<8x128xf32>
    %173 = math.exp %172 : vector<8x128xf32>
    %cst_55 = arith.constant 1.000000e+00 : f32
    %174 = vector.broadcast %cst_55 : f32 to vector<8x128xf32>
    %175 = arith.addf %174, %173 : vector<8x128xf32>
    %176 = arith.divf %174, %175 : vector<8x128xf32>
    %177 = vector.extract_strided_slice %170 {offsets = [0, 128], sizes = [8, 128], strides = [1, 1]} : vector<8x512xf32> to vector<8x128xf32>
    %178 = arith.negf %177 : vector<8x128xf32>
    %179 = math.exp %178 : vector<8x128xf32>
    %cst_56 = arith.constant 1.000000e+00 : f32
    %180 = vector.broadcast %cst_56 : f32 to vector<8x128xf32>
    %181 = arith.addf %180, %179 : vector<8x128xf32>
    %182 = arith.divf %180, %181 : vector<8x128xf32>
    %183 = vector.extract_strided_slice %170 {offsets = [0, 256], sizes = [8, 128], strides = [1, 1]} : vector<8x512xf32> to vector<8x128xf32>
    %184 = math.tanh %183 : vector<8x128xf32>
    %185 = vector.extract_strided_slice %170 {offsets = [0, 384], sizes = [8, 128], strides = [1, 1]} : vector<8x512xf32> to vector<8x128xf32>
    %186 = arith.negf %185 : vector<8x128xf32>
    %187 = math.exp %186 : vector<8x128xf32>
    %cst_57 = arith.constant 1.000000e+00 : f32
    %188 = vector.broadcast %cst_57 : f32 to vector<8x128xf32>
    %189 = arith.addf %188, %187 : vector<8x128xf32>
    %190 = arith.divf %188, %189 : vector<8x128xf32>
    %191 = arith.mulf %182, %162 : vector<8x128xf32>
    %192 = arith.mulf %176, %184 : vector<8x128xf32>
    %193 = arith.addf %191, %192 : vector<8x128xf32>
    %194 = math.tanh %193 : vector<8x128xf32>
    %195 = arith.mulf %190, %194 : vector<8x128xf32>
    %c6_i32 = arith.constant 6 : i32
    %196 = arith.index_cast %c6_i32 : i32 to index
    %c0_58 = arith.constant 0 : index
    %c0_59 = arith.constant 0 : index
    %197 = vector.load %arg11[%196, %c0_58, %c0_59] : memref<8x8x512xf32, #tpu.memory_space<vmem>>, vector<1x8x512xf32>
    %198 = vector.shape_cast %197 : vector<1x8x512xf32> to vector<8x512xf32>
    %c0_60 = arith.constant 0 : index
    %c0_61 = arith.constant 0 : index
    %199 = vector.load %arg3[%c0_60, %c0_61] : memref<128x512xf32, #tpu.memory_space<vmem>>, vector<128x512xf32>
    %cst_62 = arith.constant dense<0.000000e+00> : vector<8x512xf32>
    %200 = tpu.matmul %195, %199, %cst_62 {dimension_numbers = #tpu.dot_dimension_numbers<[1], [0], [0], [1], [0, 0, 1, 1], [], []>} : vector<8x128xf32>, vector<128x512xf32>, vector<8x512xf32> -> vector<8x512xf32>
    %201 = arith.addf %198, %200 : vector<8x512xf32>
    %202 = vector.extract_strided_slice %201 {offsets = [0, 0], sizes = [8, 128], strides = [1, 1]} : vector<8x512xf32> to vector<8x128xf32>
    %203 = arith.negf %202 : vector<8x128xf32>
    %204 = math.exp %203 : vector<8x128xf32>
    %cst_63 = arith.constant 1.000000e+00 : f32
    %205 = vector.broadcast %cst_63 : f32 to vector<8x128xf32>
    %206 = arith.addf %205, %204 : vector<8x128xf32>
    %207 = arith.divf %205, %206 : vector<8x128xf32>
    %208 = vector.extract_strided_slice %201 {offsets = [0, 128], sizes = [8, 128], strides = [1, 1]} : vector<8x512xf32> to vector<8x128xf32>
    %209 = arith.negf %208 : vector<8x128xf32>
    %210 = math.exp %209 : vector<8x128xf32>
    %cst_64 = arith.constant 1.000000e+00 : f32
    %211 = vector.broadcast %cst_64 : f32 to vector<8x128xf32>
    %212 = arith.addf %211, %210 : vector<8x128xf32>
    %213 = arith.divf %211, %212 : vector<8x128xf32>
    %214 = vector.extract_strided_slice %201 {offsets = [0, 256], sizes = [8, 128], strides = [1, 1]} : vector<8x512xf32> to vector<8x128xf32>
    %215 = math.tanh %214 : vector<8x128xf32>
    %216 = vector.extract_strided_slice %201 {offsets = [0, 384], sizes = [8, 128], strides = [1, 1]} : vector<8x512xf32> to vector<8x128xf32>
    %217 = arith.negf %216 : vector<8x128xf32>
    %218 = math.exp %217 : vector<8x128xf32>
    %cst_65 = arith.constant 1.000000e+00 : f32
    %219 = vector.broadcast %cst_65 : f32 to vector<8x128xf32>
    %220 = arith.addf %219, %218 : vector<8x128xf32>
    %221 = arith.divf %219, %220 : vector<8x128xf32>
    %222 = arith.mulf %213, %193 : vector<8x128xf32>
    %223 = arith.mulf %207, %215 : vector<8x128xf32>
    %224 = arith.addf %222, %223 : vector<8x128xf32>
    %225 = math.tanh %224 : vector<8x128xf32>
    %226 = arith.mulf %221, %225 : vector<8x128xf32>
    %c7_i32 = arith.constant 7 : i32
    %227 = arith.index_cast %c7_i32 : i32 to index
    %c0_66 = arith.constant 0 : index
    %c0_67 = arith.constant 0 : index
    %228 = vector.load %arg11[%227, %c0_66, %c0_67] : memref<8x8x512xf32, #tpu.memory_space<vmem>>, vector<1x8x512xf32>
    %229 = vector.shape_cast %228 : vector<1x8x512xf32> to vector<8x512xf32>
    %c0_68 = arith.constant 0 : index
    %c0_69 = arith.constant 0 : index
    %230 = vector.load %arg3[%c0_68, %c0_69] : memref<128x512xf32, #tpu.memory_space<vmem>>, vector<128x512xf32>
    %cst_70 = arith.constant dense<0.000000e+00> : vector<8x512xf32>
    %231 = tpu.matmul %226, %230, %cst_70 {dimension_numbers = #tpu.dot_dimension_numbers<[1], [0], [0], [1], [0, 0, 1, 1], [], []>} : vector<8x128xf32>, vector<128x512xf32>, vector<8x512xf32> -> vector<8x512xf32>
    %232 = arith.addf %229, %231 : vector<8x512xf32>
    %233 = vector.extract_strided_slice %232 {offsets = [0, 0], sizes = [8, 128], strides = [1, 1]} : vector<8x512xf32> to vector<8x128xf32>
    %234 = arith.negf %233 : vector<8x128xf32>
    %235 = math.exp %234 : vector<8x128xf32>
    %cst_71 = arith.constant 1.000000e+00 : f32
    %236 = vector.broadcast %cst_71 : f32 to vector<8x128xf32>
    %237 = arith.addf %236, %235 : vector<8x128xf32>
    %238 = arith.divf %236, %237 : vector<8x128xf32>
    %239 = vector.extract_strided_slice %232 {offsets = [0, 128], sizes = [8, 128], strides = [1, 1]} : vector<8x512xf32> to vector<8x128xf32>
    %240 = arith.negf %239 : vector<8x128xf32>
    %241 = math.exp %240 : vector<8x128xf32>
    %cst_72 = arith.constant 1.000000e+00 : f32
    %242 = vector.broadcast %cst_72 : f32 to vector<8x128xf32>
    %243 = arith.addf %242, %241 : vector<8x128xf32>
    %244 = arith.divf %242, %243 : vector<8x128xf32>
    %245 = vector.extract_strided_slice %232 {offsets = [0, 256], sizes = [8, 128], strides = [1, 1]} : vector<8x512xf32> to vector<8x128xf32>
    %246 = math.tanh %245 : vector<8x128xf32>
    %247 = vector.extract_strided_slice %232 {offsets = [0, 384], sizes = [8, 128], strides = [1, 1]} : vector<8x512xf32> to vector<8x128xf32>
    %248 = arith.negf %247 : vector<8x128xf32>
    %249 = math.exp %248 : vector<8x128xf32>
    %cst_73 = arith.constant 1.000000e+00 : f32
    %250 = vector.broadcast %cst_73 : f32 to vector<8x128xf32>
    %251 = arith.addf %250, %249 : vector<8x128xf32>
    %252 = arith.divf %250, %251 : vector<8x128xf32>
    %253 = arith.mulf %244, %224 : vector<8x128xf32>
    %254 = arith.mulf %238, %246 : vector<8x128xf32>
    %255 = arith.addf %253, %254 : vector<8x128xf32>
    %256 = math.tanh %255 : vector<8x128xf32>
    %257 = arith.mulf %252, %256 : vector<8x128xf32>
    %c8_i32 = arith.constant 8 : i32
    %c7 = arith.constant 7 : index
    %c0_74 = arith.constant 0 : index
    %c0_75 = arith.constant 0 : index
    %258 = vector.load %arg1[%c7, %c0_74, %c0_75] : memref<8x8x4xf32, #tpu.memory_space<vmem>>, vector<1x8x4xf32>
    %259 = vector.shape_cast %258 : vector<1x8x4xf32> to vector<8x4xf32>
    %c0_76 = arith.constant 0 : index
    %c0_77 = arith.constant 0 : index
    %260 = vector.load %arg5[%c0_76, %c0_77] : memref<4x512xf32, #tpu.memory_space<vmem>>, vector<4x512xf32>
    %cst_78 = arith.constant dense<0.000000e+00> : vector<8x512xf32>
    %261 = tpu.matmul %259, %260, %cst_78 {dimension_numbers = #tpu.dot_dimension_numbers<[1], [0], [0], [1], [0, 0, 1, 1], [], []>} : vector<8x4xf32>, vector<4x512xf32>, vector<8x512xf32> -> vector<8x512xf32>
    %c0_79 = arith.constant 0 : index
    %c0_80 = arith.constant 0 : index
    %262 = vector.load %arg6[%c0_79, %c0_80] : memref<1x512xf32, #tpu.memory_space<vmem>>, vector<1x512xf32>
    %263 = vector.broadcast %262 : vector<1x512xf32> to vector<8x512xf32>
    %264 = arith.addf %261, %263 : vector<8x512xf32>
    %265 = vector.extract_strided_slice %264 {offsets = [0, 0], sizes = [8, 128], strides = [1, 1]} : vector<8x512xf32> to vector<8x128xf32>
    %266 = arith.negf %265 : vector<8x128xf32>
    %267 = math.exp %266 : vector<8x128xf32>
    %cst_81 = arith.constant 1.000000e+00 : f32
    %268 = vector.broadcast %cst_81 : f32 to vector<8x128xf32>
    %269 = arith.addf %268, %267 : vector<8x128xf32>
    %270 = arith.divf %268, %269 : vector<8x128xf32>
    %271 = vector.extract_strided_slice %264 {offsets = [0, 256], sizes = [8, 128], strides = [1, 1]} : vector<8x512xf32> to vector<8x128xf32>
    %272 = math.tanh %271 : vector<8x128xf32>
    %273 = vector.extract_strided_slice %264 {offsets = [0, 384], sizes = [8, 128], strides = [1, 1]} : vector<8x512xf32> to vector<8x128xf32>
    %274 = arith.negf %273 : vector<8x128xf32>
    %275 = math.exp %274 : vector<8x128xf32>
    %cst_82 = arith.constant 1.000000e+00 : f32
    %276 = vector.broadcast %cst_82 : f32 to vector<8x128xf32>
    %277 = arith.addf %276, %275 : vector<8x128xf32>
    %278 = arith.divf %276, %277 : vector<8x128xf32>
    %279 = arith.mulf %270, %272 : vector<8x128xf32>
    %280 = math.tanh %279 : vector<8x128xf32>
    %281 = arith.mulf %278, %280 : vector<8x128xf32>
    %c0_83 = arith.constant 0 : index
    %c0_84 = arith.constant 0 : index
    %282 = vector.load %arg7[%c0_83, %c0_84] : memref<128x1xf32, #tpu.memory_space<vmem>>, vector<128x1xf32>
    %cst_85 = arith.constant dense<0.000000e+00> : vector<8x1xf32>
    %283 = tpu.matmul %257, %282, %cst_85 {dimension_numbers = #tpu.dot_dimension_numbers<[1], [0], [0], [1], [0, 0, 1, 1], [], []>} : vector<8x128xf32>, vector<128x1xf32>, vector<8x1xf32> -> vector<8x1xf32>
    %c0_86 = arith.constant 0 : index
    %c0_87 = arith.constant 0 : index
    %284 = vector.load %arg8[%c0_86, %c0_87] : memref<128x1xf32, #tpu.memory_space<vmem>>, vector<128x1xf32>
    %cst_88 = arith.constant dense<0.000000e+00> : vector<8x1xf32>
    %285 = tpu.matmul %281, %284, %cst_88 {dimension_numbers = #tpu.dot_dimension_numbers<[1], [0], [0], [1], [0, 0, 1, 1], [], []>} : vector<8x128xf32>, vector<128x1xf32>, vector<8x1xf32> -> vector<8x1xf32>
    %286 = arith.addf %283, %285 : vector<8x1xf32>
    %c0_89 = arith.constant 0 : index
    %c0_90 = arith.constant 0 : index
    %287 = vector.load %arg9[%c0_89, %c0_90] : memref<1x1xf32, #tpu.memory_space<vmem>>, vector<1x1xf32>
    %288 = vector.broadcast %287 : vector<1x1xf32> to vector<8x1xf32>
    %289 = arith.addf %286, %288 : vector<8x1xf32>
    %c0_91 = arith.constant 0 : index
    %c0_92 = arith.constant 0 : index
    %290 = vector.load %arg10[%c0_91, %c0_92] : memref<8x1xf32, #tpu.memory_space<vmem>>, vector<8x1xf32>
    tpu.vector_store %arg10[%c0_91, %c0_92], %289 {strides = array<i32>} : memref<8x1xf32, #tpu.memory_space<vmem>>, vector<8x1xf32>,
    return
  }
  func.func @transform_0(%arg0: i32) -> (i32, i32, i32) {
    %c0_i32 = arith.constant 0 : i32
    %c0_i32_0 = arith.constant 0 : i32
    %c0_i32_1 = arith.constant 0 : i32
    return %c0_i32, %arg0, %c0_i32_0 : i32, i32, i32
  }
  func.func @transform_1(%arg0: i32) -> (i32, i32) {
    %c0_i32 = arith.constant 0 : i32
    %c0_i32_0 = arith.constant 0 : i32
    %c0_i32_1 = arith.constant 0 : i32
    return %c0_i32, %c0_i32_0 : i32, i32
  }
  func.func @transform_2(%arg0: i32) -> (i32, i32) {
    %c0_i32 = arith.constant 0 : i32
    %c0_i32_0 = arith.constant 0 : i32
    %c0_i32_1 = arith.constant 0 : i32
    return %c0_i32, %c0_i32_0 : i32, i32
  }
  func.func @transform_3(%arg0: i32) -> (i32, i32) {
    %c0_i32 = arith.constant 0 : i32
    %c0_i32_0 = arith.constant 0 : i32
    %c0_i32_1 = arith.constant 0 : i32
    return %c0_i32, %c0_i32_0 : i32, i32
  }
  func.func @transform_4(%arg0: i32) -> (i32, i32) {
    %c0_i32 = arith.constant 0 : i32
    %c0_i32_0 = arith.constant 0 : i32
    %c0_i32_1 = arith.constant 0 : i32
    return %c0_i32, %c0_i32_0 : i32, i32
  }
  func.func @transform_5(%arg0: i32) -> (i32, i32) {
    %c0_i32 = arith.constant 0 : i32
    %c0_i32_0 = arith.constant 0 : i32
    %c0_i32_1 = arith.constant 0 : i32
    return %c0_i32, %c0_i32_0 : i32, i32
  }
  func.func @transform_6(%arg0: i32) -> (i32, i32) {
    %c0_i32 = arith.constant 0 : i32
    %c0_i32_0 = arith.constant 0 : i32
    %c0_i32_1 = arith.constant 0 : i32
    return %c0_i32, %c0_i32_0 : i32, i32
  }
  func.func @transform_7(%arg0: i32) -> (i32, i32) {
    %c0_i32 = arith.constant 0 : i32
    %c0_i32_0 = arith.constant 0 : i32
    %c0_i32_1 = arith.constant 0 : i32
    return %c0_i32, %c0_i32_0 : i32, i32
  }
  func.func @transform_8(%arg0: i32) -> (i32, i32) {
    %c0_i32 = arith.constant 0 : i32
    %c0_i32_0 = arith.constant 0 : i32
    %c0_i32_1 = arith.constant 0 : i32
    return %c0_i32, %c0_i32_0 : i32, i32
  }
  func.func @transform_9(%arg0: i32) -> (i32, i32) {
    %c0_i32 = arith.constant 0 : i32
    %c0_i32_0 = arith.constant 0 : i32
    return %arg0, %c0_i32 : i32, i32
  }
}

</mosaic_0001>

<bundles_post_ra>
// kernel: tpu_custom_call.1
= control target key start
LH: loop header
LB: loop body
LE: loop exit
PB: predicated region body
PF: predicated region fallthrough
CT: control target
= control target key end

     0   :  { %s3314_s0 = inlined_call_operand.vmem [shape: f32[8,8,4], index: 0, kind: input, shape index: {}]   ;;  %s3315_s1 = inlined_call_operand.vmem [shape: f32[4,512], index: 1, kind: input, shape index: {}]   ;;  %s3316_s2 = inlined_call_operand.hbm [shape: f32[128,512], index: 2, kind: input, shape index: {}]   ;;  %s3317_s3 = inlined_call_operand.vmem [shape: f32[1,512], index: 3, kind: input, shape index: {}]   ;;  %s3318_s4 = inlined_call_operand.vmem [shape: f32[4,512], index: 4, kind: input, shape index: {}]   ;;  %s3319_s5 = inlined_call_operand.vmem [shape: f32[1,512], index: 5, kind: input, shape index: {}]   ;;  %s3320_s6 = inlined_call_operand.vmem [shape: f32[128,1], index: 6, kind: input, shape index: {}]   ;;  %s3321_s7 = inlined_call_operand.vmem [shape: f32[128,1], index: 7, kind: input, shape index: {}]   ;;  %s3322_s8 = inlined_call_operand.<no memory space> [shape: f32[1,1], index: 8, kind: input, shape index: {}]   ;;  %s3323_s9 = inlined_call_operand.vmem [shape: f32[8,1], index: 9, kind: output, shape index: {}]  }
   0x1   :  { %v14_v0 = vstv %s3322_s8 }
   0x2   :  { %15 = vst [vmem:[#allocation3] sm:$0x1] %v14_v0 }
   0x3   :  { %16 = vsyncpa [#allocation5], 0  ;;  %s25_s13 = sshll.u32 %s3316_s2, 4  ;;  %s2108_s14 = smov [#allocation4]   ;;  %s26_s13 = int_to_ptr.hbm [resolvable:$true] %s25_s13 }
   0x4   :  { %s27_s15 = sshll.u32 %s2108_s14, 4  ;;  %s2109_s16 = smov 512   ;;  %s28_s15 = int_to_ptr.vmem [resolvable:$true] %s27_s15 }
   0x5   :  { %s2110_s17 = smov 32  }
   0x6   :  { %33 = dma.hbm_to_vmem [thread:$0]  %s26_s13, 8192, %s28_s15, [#allocation5], %s2109_s16, %s2109_s16, %s2110_s17  }
   0x7   :  { %2106 = dma.done.wait [#allocation5], 8192  }
   0x8   :  { %2107 = vsyncadd [#allocation5], 4294959104  ;;  %v58_v1 = vld [vmem:[%s3315_s1] sm:$0xff]  ;;  %v59_v2 = vld [vmem:[%s3315_s1 + $0x8] sm:$0xff]  ;;  %vm104_vm0 = vcmask 1043456   ;;  %vm79_vm1 = vcmask 31744  }
   0x9   :  { %72 = vst [vmem:[#allocation1] ss:$2 sm:$0xff] %v58_v1  ;;  %v1591_v3 = vld [vmem:[%s3318_s4 + $0x8] sm:$0xff]  ;;  %v2180_v4 = vld [vmem:[%s3314_s0] sm:$0xff]  ;;  %v2185_v5 = vld [vmem:[%s3314_s0 + $0x30] sm:$0xff] }
   0xa   :  { %74 = vst [vmem:[#allocation1 + $0x10] ss:$2 sm:$0xff] %v59_v2  ;;  %v1590_v6 = vld [vmem:[%s3318_s4] sm:$0xff]  ;;  %v2194_v11 = vld [vmem:[#allocation4 + $0x1e8] sm:$0xff]  ;;  %v2200_v12 = vld [vmem:[#allocation4 + $0x1e0] sm:$0xff] }
   0xb   :  { %3425 = vst [vmem:[#allocation7_spill] sm:$0xff] %v2200_v12  ;;  %v2202_v13 = vld [vmem:[#allocation4 + $0x1f8] sm:$0xff]  ;;  %v2207_v14 = vld [vmem:[#allocation4 + $0x1c8] sm:$0xff]  ;;  %v2209_v15 = vld [vmem:[#allocation4 + $0x1f0] sm:$0xff] }
   0xc   :  { %v2214_v16 = vld [vmem:[#allocation4 + $0x1c0] sm:$0xff]  ;;  %v2216_v17 = vld [vmem:[#allocation4 + $0x1d8] sm:$0xff]  ;;  %v2220_v18 = vld [vmem:[#allocation4 + $0x1a8] sm:$0xff] }
   0xd   :  { %3426 = vst [vmem:[#allocation8_spill] sm:$0xff] %v2214_v16  ;;  %v2222_v19 = vld [vmem:[#allocation4 + $0x1d0] sm:$0xff]  ;;  %v2225_v20 = vld [vmem:[#allocation4 + $0x1a0] sm:$0xff]  ;;  %v2227_v21 = vld [vmem:[#allocation4 + $0x1b8] sm:$0xff] }
   0xe   :  { %v2233_v22 = vld [vmem:[%s3314_s0 + $0x8] sm:$0xff]  ;;  %v2238_v23 = vld [vmem:[%s3314_s0 + $0x38] sm:$0xff]  ;;  %v2287_v36 = vld [vmem:[%s3314_s0 + $0x10] sm:$0xff] }
   0xf   :  { %v2242_v24 = vld [vmem:[#allocation4 + $0x180] sm:$0xff]  ;;  %v2247_v25 = vld [vmem:[#allocation4 + $0x188] sm:$0xff]  ;;  %v2256_v27 = vld [vmem:[#allocation4 + $0x198] sm:$0xff] }
  0x10   :  { %v75_v7 = vld.sshfl [vmem:[#allocation1] sm:$0xff pattern:$0x75316420]  ;;  %v76_v8 = vld.sshfl [vmem:[#allocation1 + $0x8] sm:$0xff pattern:$0x75316420] }
  0x11   :  { %1803 = vmatpush.msk.msra.mxu0 %vm104_vm0, %v75_v7  ;;  %1872 = vmatpush.msk.msra.mxu1 %vm104_vm0, %v75_v7  ;;  %v77_v9 = vld.sshfl [vmem:[#allocation1 + $0x10] sm:$0xff pattern:$0x75316420]  ;;  %v78_v10 = vld.sshfl [vmem:[#allocation1 + $0x18] sm:$0xff pattern:$0x75316420] }
  0x12   :  { %1821 = vmatpush.msk.msra.mxu2 %vm104_vm0, %v77_v9  ;;  %1830 = vmatpush.msk.msra.mxu3 %vm104_vm0, %v78_v10  ;;  %1604 = vst [vmem:[#allocation1 + $0x10] ss:$2 sm:$0xff] %v1591_v3  ;;  %v2254_v26 = vld [vmem:[#allocation4 + $0x160] sm:$0xff]  ;;  %v2261_v28 = vld [vmem:[#allocation4 + $0x168] sm:$0xff]  ;;  %v2263_v29 = vld [vmem:[#allocation4 + $0x1b0] sm:$0xff] }
  0x13   :  { %1804 = vmatmul.msk.f32.vlgmr.msra.gmra.mxu0 %vm79_vm1, %v2180_v4  ;;  %1810 = vmatmul.msk.f32.vlgmr.msra.gmra.mxu1 %vm79_vm1, %v2185_v5  ;;  %1602 = vst [vmem:[#allocation1] ss:$2 sm:$0xff] %v1590_v6  ;;  %v2267_v30 = vld [vmem:[#allocation4 + $0x140] sm:$0xff]  ;;  %v2270_v31 = vld [vmem:[#allocation4 + $0x178] sm:$0xff]  ;;  %v2274_v32 = vld [vmem:[#allocation4 + $0x148] sm:$0xff] }
  0x14   :  { %1812 = vmatpush.msk.msrb.mxu1 %vm104_vm0, %v76_v8  ;;  %1822 = vmatmul.msk.f32.vlgmr.msra.gmra.mxu2 %vm79_vm1, %v2180_v4  ;;  %v2276_v33 = vld [vmem:[#allocation4 + $0x190] sm:$0xff]  ;;  %v2278_v34 = vld [vmem:[#allocation4 + $0x120] sm:$0xff]  ;;  %v2282_v35 = vld [vmem:[#allocation4 + $0x158] sm:$0xff] }
  0x15   :  { %1831 = vmatmul.msk.f32.vlgmr.msra.gmra.mxu3 %vm79_vm1, %v2180_v4  ;;  %377 = vmatpush.msrb.mxu0 %v2200_v12  ;;  %v2291_v37 = vld [vmem:[#allocation4 + $0x100] sm:$0xff]  ;;  %v2296_v38 = vld [vmem:[#allocation4 + $0x128] sm:$0xff]  ;;  %v2305_v40 = vld [vmem:[#allocation4 + $0x170] sm:$0xff] }
  0x16   :  { %397 = vmatpush.msra.mxu1 %v2194_v11  ;;  %437 = vmatpush.msrb.mxu3 %v2202_v13  ;;  %v2303_v39 = vld [vmem:[#allocation4 + $0xe0] sm:$0xff]  ;;  %v2310_v41 = vld [vmem:[#allocation4 + $0x108] sm:$0xff]  ;;  %v2312_v42 = vld [vmem:[#allocation4 + $0x138] sm:$0xff] }
  0x17   :  { %417 = vmatpush.msrb.mxu2 %v2209_v15  ;;  %378 = vmatpush.msrb.mxu0 %v2214_v16  ;;  %v2316_v43 = vld [vmem:[#allocation4 + $0xc0] sm:$0xff]  ;;  %v2319_v44 = vld [vmem:[#allocation4 + $0x150] sm:$0xff]  ;;  %v2323_v45 = vld [vmem:[#allocation4 + $0x118] sm:$0xff] }
  0x18   :  { %398 = vmatpush.msra.mxu1 %v2207_v14  ;;  %438 = vmatpush.msrb.mxu3 %v2216_v17  ;;  %v2325_v46 = vld [vmem:[#allocation4 + $0xe8] sm:$0xff]  ;;  %v2327_v47 = vld [vmem:[#allocation4 + $0xa0] sm:$0xff]  ;;  %v2330_v48 = vld [vmem:[#allocation4 + $0x130] sm:$0xff] }
  0x19   :  { %418 = vmatpush.msrb.mxu2 %v2222_v19  ;;  %379 = vmatpush.msrb.mxu0 %v2225_v20  ;;  %3427 = vst [vmem:[#allocation9_spill] sm:$0xff] %v2327_v47  ;;  %v2336_v49 = vld [vmem:[%s3314_s0 + $0x18] sm:$0xff]  ;;  %v2340_v50 = vld [vmem:[#allocation4 + $0x80] sm:$0xff]  ;;  %v2354_v53 = vld [vmem:[#allocation4 + $0xf8] sm:$0xff] }
  0x1a   :  { %399 = vmatpush.msra.mxu1 %v2220_v18  ;;  %439 = vmatpush.msrb.mxu3 %v2227_v21  ;;  %3428 = vst [vmem:[#allocation10_spill] sm:$0xff] %v2340_v50  ;;  %v2346_v51 = vld [vmem:[#allocation4 + $0x110] sm:$0xff]  ;;  %v2352_v52 = vld [vmem:[#allocation4 + $0x60] sm:$0xff]  ;;  %v2361_v55 = vld [vmem:[#allocation4 + $0xc8] sm:$0xff] }
  0x1b   :  { %1805 = vmatmul.msk.f32.gmra.mxu0 %vm79_vm1, %v2233_v22  ;;  %1811 = vmatmul.msk.f32.gmra.mxu1 %vm79_vm1, %v2238_v23  ;;  %3429 = vst [vmem:[#allocation11_spill] sm:$0xff] %v2352_v52  ;;  %v2359_v54 = vld [vmem:[#allocation4 + $0xf0] sm:$0xff]  ;;  %v2365_v56 = vld [vmem:[#allocation4 + $0x40] sm:$0xff]  ;;  %v2368_v57 = vld [vmem:[#allocation4 + $0xd8] sm:$0xff] }
  0x1c   :  { %1823 = vmatmul.msk.f32.gmra.mxu2 %vm79_vm1, %v2233_v22  ;;  %380 = vmatpush.msrb.mxu0 %v2242_v24  ;;  %3430 = vst [vmem:[#allocation12_spill] sm:$0xff] %v2365_v56  ;;  %v2372_v58 = vld [vmem:[#allocation4 + $0xd0] sm:$0xff]  ;;  %v2374_v59 = vld [vmem:[#allocation4 + $0xa8] sm:$0xff]  ;;  %v2376_v60 = vld [vmem:[#allocation4 + $0x20] sm:$0xff] }
  0x1d   :  { %1832 = vmatmul.msk.f32.gmra.mxu3 %vm79_vm1, %v2233_v22  ;;  %400 = vmatpush.msra.mxu1 %v2247_v25  ;;  %3431 = vst [vmem:[#allocation13_spill] sm:$0xff] %v2368_v57  ;;  %v2380_v61 = vld [vmem:[#allocation4 + $0xb8] sm:$0xff]  ;;  %v2387_v63 = vld [vmem:[#allocation4] sm:$0xff]  ;;  %v2392_v0 = vld [vmem:[#allocation4 + $0xb0] sm:$0xff] }
  0x1e   :  { %381 = vmatpush.msrb.mxu0 %v2254_v26  ;;  %440 = vmatpush.msrb.mxu3 %v2256_v27  ;;  %3432 = vst [vmem:[#allocation14_spill] sm:$0xff] %v2372_v58  ;;  %v54_v62 = vld [vmem:[%s3314_s0 + $0x20] sm:$0xff]  ;;  %v2400_v2 = vld [vmem:[#allocation4 + $0x88] sm:$0xff]  ;;  %v55_v10 = vld [vmem:[%s3314_s0 + $0x28] sm:$0xff] }
  0x1f   :  { %401 = vmatpush.msra.mxu1 %v2261_v28  ;;  %419 = vmatpush.msrb.mxu2 %v2263_v29  ;;  %3433 = vst [vmem:[#allocation15_spill] sm:$0xff] %v2374_v59  ;;  %v2398_v1 = vld [vmem:[#allocation4 + $0x98] sm:$0xff]  ;;  %v2404_v3 = vld [vmem:[#allocation4 + $0x90] sm:$0xff]  ;;  %v2410_v6 = vld [vmem:[#allocation4 + $0x68] sm:$0xff] }
  0x20   :  { %382 = vmatpush.msrb.mxu0 %v2267_v30  ;;  %441 = vmatpush.msrb.mxu3 %v2270_v31  ;;  %3434 = vst [vmem:[#allocation16_spill] sm:$0xff] %v2376_v60  ;;  %v2413_v7 = vld [vmem:[#allocation4 + $0x70] sm:$0xff]  ;;  %v2417_v8 = vld [vmem:[#allocation4 + $0x58] sm:$0xff]  ;;  %v2419_v9 = vld [vmem:[#allocation4 + $0x48] sm:$0xff] }
  0x21   :  { %402 = vmatpush.msra.mxu1 %v2274_v32  ;;  %420 = vmatpush.msrb.mxu2 %v2276_v33  ;;  %3435 = vst [vmem:[#allocation17_spill] sm:$0xff] %v2380_v61 }
  0x22   :  { %383 = vmatpush.msrb.mxu0 %v2278_v34  ;;  %442 = vmatpush.msrb.mxu3 %v2282_v35  ;;  %3436 = vst [vmem:[#allocation18_spill] sm:$0xff] %v2387_v63 }
  0x23   :  { %1806 = vmatmul.msk.f32.gmra.mxu0 %vm79_vm1, %v2287_v36  ;;  %1813 = vmatmul.msk.f32.vlgmr.msrb.gmra.mxu1 %vm79_vm1, %v2180_v4  ;;  %3437 = vst [vmem:[#allocation19_spill] sm:$0xff] %v2392_v0  ;;  %v2408_v4 = vld [vmem:[#allocation4 + $0x78] sm:$0xff] }
  0x24   :  { %1824 = vmatmul.msk.f32.gmra.mxu2 %vm79_vm1, %v2287_v36  ;;  %384 = vmatpush.msrb.mxu0 %v2291_v37  ;;  %3438 = vst [vmem:[#allocation20_spill] sm:$0xff] %v2398_v1 }
  0x25   :  { %1833 = vmatmul.msk.f32.gmra.mxu3 %vm79_vm1, %v2287_v36  ;;  %403 = vmatpush.msra.mxu1 %v2296_v38  ;;  %3439 = vst [vmem:[#allocation21_spill] sm:$0xff] %v2400_v2 }
  0x26   :  { %385 = vmatpush.msrb.mxu0 %v2303_v39  ;;  %421 = vmatpush.msrb.mxu2 %v2305_v40  ;;  %3440 = vst [vmem:[#allocation22_spill] sm:$0xff] %v2404_v3 }
  0x27   :  { %404 = vmatpush.msra.mxu1 %v2310_v41  ;;  %443 = vmatpush.msrb.mxu3 %v2312_v42  ;;  %3441 = vst [vmem:[#allocation23_spill] sm:$0xff] %v2408_v4 }
  0x28   :  { %386 = vmatpush.msrb.mxu0 %v2316_v43  ;;  %422 = vmatpush.msrb.mxu2 %v2319_v44  ;;  %3442 = vst [vmem:[#allocation24_spill] sm:$0xff] %v2410_v6 }
  0x29   :  { %444 = vmatpush.msrb.mxu3 %v2323_v45  ;;  %405 = vmatpush.msra.mxu1 %v2325_v46  ;;  %3443 = vst [vmem:[#allocation25_spill] sm:$0xff] %v2413_v7 }
  0x2a   :  { %387 = vmatpush.msrb.mxu0 %v2327_v47  ;;  %423 = vmatpush.msrb.mxu2 %v2330_v48  ;;  %3444 = vst [vmem:[#allocation26_spill] sm:$0xff] %v2417_v8 }
  0x2b   :  { %1807 = vmatmul.msk.f32.gmra.mxu0 %vm79_vm1, %v2336_v49  ;;  %1814 = vmatmul.msk.f32.gmra.mxu1 %vm79_vm1, %v2233_v22  ;;  %3445 = vst [vmem:[#allocation27_spill] sm:$0xff] %v2419_v9  ;;  %v2428_v22 = vld [vmem:[#allocation4 + $0x38] sm:$0xff] }
  0x2c   :  { %1825 = vmatmul.msk.f32.gmra.mxu2 %vm79_vm1, %v2336_v49  ;;  %388 = vmatpush.msrb.mxu0 %v2340_v50  ;;  %3446 = vst [vmem:[#allocation28_spill] sm:$0xff] %v2428_v22 }
  0x2d   :  { %1834 = vmatmul.msk.f32.gmra.mxu3 %vm79_vm1, %v2336_v49  ;;  %424 = vmatpush.msrb.mxu2 %v2346_v51 }
  0x2e   :  { %389 = vmatpush.msrb.mxu0 %v2352_v52  ;;  %445 = vmatpush.msrb.mxu3 %v2354_v53 }
  0x2f   :  { %425 = vmatpush.msrb.mxu2 %v2359_v54  ;;  %406 = vmatpush.msra.mxu1 %v2361_v55 }
  0x30   :  { %390 = vmatpush.msrb.mxu0 %v2365_v56  ;;  %446 = vmatpush.msrb.mxu3 %v2368_v57 }
  0x31   :  { %426 = vmatpush.msrb.mxu2 %v2372_v58  ;;  %407 = vmatpush.msra.mxu1 %v2374_v59 }
  0x32   :  { %391 = vmatpush.msrb.mxu0 %v2376_v60  ;;  %447 = vmatpush.msrb.mxu3 %v2380_v61  ;;  %v2443_v60 = vld [vmem:[#allocation4 + $0x30] sm:$0xff] }
  0x33   :  { %1808 = vmatmul.msk.f32.gmra.mxu0 %vm79_vm1, %v54_v62  ;;  %1815 = vmatmul.msk.f32.gmra.mxu1 %vm79_vm1, %v2287_v36  ;;  %v2431_v36 = vld [vmem:[#allocation4 + $0x50] sm:$0xff]  ;;  %3450 = vst [vmem:[#allocation32_spill] sm:$0xff] %v2443_v60 }
  0x34   :  { %1826 = vmatmul.msk.f32.gmra.mxu2 %vm79_vm1, %v54_v62  ;;  %392 = vmatpush.msrb.mxu0 %v2387_v63  ;;  %3447 = vst [vmem:[#allocation29_spill] sm:$0xff] %v2431_v36  ;;  %v2440_v63 = vld [vmem:[#allocation4 + $0x28] sm:$0xff] }
  0x35   :  { %1835 = vmatmul.msk.f32.gmra.mxu3 %vm79_vm1, %v54_v62  ;;  %427 = vmatpush.msrb.mxu2 %v2392_v0  ;;  %3449 = vst [vmem:[#allocation31_spill] sm:$0xff] %v2440_v63 }
  0x36   :  { %448 = vmatpush.msrb.mxu3 %v2398_v1  ;;  %408 = vmatpush.msra.mxu1 %v2400_v2 }
  0x37   :  { %428 = vmatpush.msrb.mxu2 %v2404_v3  ;;  %529 = vmatpush.msra.mxu0 %v2200_v12  ;;  %v2438_v12 = vld [vmem:[#allocation4 + $0x18] sm:$0xff] }
  0x38   :  { %449 = vmatpush.msrb.mxu3 %v2408_v4  ;;  %409 = vmatpush.msra.mxu1 %v2410_v6  ;;  %3448 = vst [vmem:[#allocation30_spill] sm:$0xff] %v2438_v12 }
  0x39   :  { %429 = vmatpush.msrb.mxu2 %v2413_v7  ;;  %530 = vmatpush.msra.mxu0 %v2214_v16  ;;  %v2448_v16 = vld [vmem:[#allocation4 + $0x8] sm:$0xff] }
  0x3a   :  { %450 = vmatpush.msrb.mxu3 %v2417_v8  ;;  %410 = vmatpush.msra.mxu1 %v2419_v9  ;;  %3451 = vst [vmem:[#allocation33_spill] sm:$0xff] %v2448_v16  ;;  %v2450_v8 = vld [vmem:[#allocation4 + $0x10] sm:$0xff] }
  0x3b   :  { %1809 = vmatmul.msk.f32.gmra.mxu0 %vm79_vm1, %v55_v10  ;;  %1816 = vmatmul.msk.f32.gmra.mxu1 %vm79_vm1, %v2336_v49  ;;  %3452 = vst [vmem:[#allocation34_spill] sm:$0xff] %v2450_v8  ;;  %v2111_v49 = vmov 0.0  }
  0x3c   :  { %1827 = vmatmul.msk.f32.gmra.mxu2 %vm79_vm1, %v55_v10  ;;  %451 = vmatpush.msrb.mxu3 %v2428_v22 }
  0x3d   :  { %1836 = vmatmul.msk.f32.gmra.mxu3 %vm79_vm1, %v55_v10  ;;  %430 = vmatpush.msrb.mxu2 %v2431_v36 }
  0x3e   :  { %452 = vmatpush.msrb.mxu3 %v2438_v12  ;;  %411 = vmatpush.msra.mxu1 %v2440_v63 }
  0x3f   :  { %431 = vmatpush.msrb.mxu2 %v2443_v60  ;;  %531 = vmatpush.msra.mxu0 %v2225_v20 }
  0x40   :  { %589 = vmatpush.msra.mxu3 %v2202_v13  ;;  %412 = vmatpush.msra.mxu1 %v2448_v16 }
  0x41   :  { %432 = vmatpush.msrb.mxu2 %v2450_v8  ;;  %532 = vmatpush.msra.mxu0 %v2242_v24 }
  0x42   :  { %549 = vmatpush.msrb.mxu1 %v2194_v11  ;;  %590 = vmatpush.msra.mxu3 %v2216_v17 }
  0x43   :  { %569 = vmatpush.msra.mxu2 %v2209_v15  ;;  %1817 = vmatmul.msk.f32.gmra.mxu1 %vm79_vm1, %v54_v62  ;;  %v3455_v62 = vld [vmem:[#allocation18_spill] sm:$0xff] }
  0x44   :  { %393 = vmatmul.f32.vlgmr.msrb.gmra.mxu0 %v2111_v49  ;;  %1828 = vmatmul.msk.f32.gmra.mxu2 %vm79_vm1, %v2185_v5 }
  0x45   :  { %550 = vmatpush.msrb.mxu1 %v2207_v14  ;;  %1837 = vmatmul.msk.f32.gmra.mxu3 %vm79_vm1, %v2185_v5 }
  0x46   :  { %570 = vmatpush.msra.mxu2 %v2222_v19  ;;  %591 = vmatpush.msra.mxu3 %v2227_v21 }
  0x47   :  { %551 = vmatpush.msrb.mxu1 %v2220_v18  ;;  %533 = vmatpush.msra.mxu0 %v2254_v26 }
  0x48   :  { %571 = vmatpush.msra.mxu2 %v2263_v29  ;;  %592 = vmatpush.msra.mxu3 %v2256_v27 }
  0x49   :  { %552 = vmatpush.msrb.mxu1 %v2247_v25  ;;  %534 = vmatpush.msra.mxu0 %v2267_v30 }
  0x4a   :  { %572 = vmatpush.msra.mxu2 %v2276_v33  ;;  %593 = vmatpush.msra.mxu3 %v2270_v31 }
  0x4b   :  { %553 = vmatpush.msrb.mxu1 %v2261_v28  ;;  %535 = vmatpush.msra.mxu0 %v2278_v34 }
  0x4c   :  { %1818 = vmatmul.msk.f32.gmra.mxu1 %vm79_vm1, %v55_v10  ;;  %573 = vmatpush.msra.mxu2 %v2305_v40  ;;  %v3456_v10 = vld [vmem:[#allocation7_spill] sm:$0xff] }
  0x4d   :  { %1829 = vmatmul.msk.f32.gmra.mxu2 %vm79_vm1, %v2238_v23  ;;  %1838 = vmatmul.msk.f32.gmra.mxu3 %vm79_vm1, %v2238_v23 }
  0x4e   :  { %554 = vmatpush.msrb.mxu1 %v2274_v32  ;;  %574 = vmatpush.msra.mxu2 %v2319_v44 }
  0x4f   :  { %594 = vmatpush.msra.mxu3 %v2282_v35  ;;  %536 = vmatpush.msra.mxu0 %v2291_v37 }
  0x50   :  { %555 = vmatpush.msrb.mxu1 %v2296_v38  ;;  %575 = vmatpush.msra.mxu2 %v2330_v48 }
  0x51   :  { %595 = vmatpush.msra.mxu3 %v2312_v42  ;;  %537 = vmatpush.msra.mxu0 %v2303_v39 }
  0x52   :  { %556 = vmatpush.msrb.mxu1 %v2310_v41  ;;  %576 = vmatpush.msra.mxu2 %v2346_v51 }
  0x53   :  { %596 = vmatpush.msra.mxu3 %v2323_v45  ;;  %538 = vmatpush.msra.mxu0 %v2316_v43 }
  0x54   :  { %1819 = vmatmul.msk.f32.gmra.mxu1 %vm79_vm1, %v2185_v5  ;;  %577 = vmatpush.msra.mxu2 %v2359_v54  ;;  %v3453_v5 = vld [vmem:[#allocation26_spill] sm:$0xff] }
  0x55   :  { %433 = vmatmul.f32.vlgmr.msrb.gmra.mxu2 %v2111_v49  ;;  %557 = vmatpush.msrb.mxu1 %v2325_v46 }
  0x56   :  { %453 = vmatmul.f32.vlgmr.msrb.gmra.mxu3 %v2111_v49  ;;  %578 = vmatpush.msra.mxu2 %v2372_v58 }
  0x57   :  { %597 = vmatpush.msra.mxu3 %v2354_v53  ;;  %558 = vmatpush.msrb.mxu1 %v2361_v55 }
  0x58   :  { %539 = vmatpush.msra.mxu0 %v2327_v47  ;;  %579 = vmatpush.msra.mxu2 %v2392_v0 }
  0x59   :  { %598 = vmatpush.msra.mxu3 %v2368_v57  ;;  %559 = vmatpush.msrb.mxu1 %v2374_v59 }
  0x5a   :  { %540 = vmatpush.msra.mxu0 %v2340_v50  ;;  %580 = vmatpush.msra.mxu2 %v2404_v3 }
  0x5b   :  { %599 = vmatpush.msra.mxu3 %v2380_v61  ;;  %560 = vmatpush.msrb.mxu1 %v2400_v2 }
  0x5c   :  { %1820 = vmatmul.msk.f32.gmra.mxu1 %vm79_vm1, %v2238_v23  ;;  %541 = vmatpush.msra.mxu0 %v2352_v52  ;;  %v3454_v23 = vld [vmem:[#allocation16_spill] sm:$0xff] }
  0x5d   :  { %600 = vmatpush.msra.mxu3 %v2398_v1  ;;  %581 = vmatpush.msra.mxu2 %v2413_v7 }
  0x5e   :  { %561 = vmatpush.msrb.mxu1 %v2410_v6  ;;  %542 = vmatpush.msra.mxu0 %v2365_v56 }
  0x5f   :  { %601 = vmatpush.msra.mxu3 %v2408_v4  ;;  %582 = vmatpush.msra.mxu2 %v2431_v36 }
  0x60   :  { %562 = vmatpush.msrb.mxu1 %v2419_v9  ;;  %543 = vmatpush.msra.mxu0 %v3454_v23 }
  0x61   :  { %602 = vmatpush.msra.mxu3 %v3453_v5  ;;  %583 = vmatpush.msra.mxu2 %v2443_v60  ;;  %v3457_v60 = vld [vmem:[#allocation8_spill] sm:$0xff] }
  0x62   :  { %563 = vmatpush.msrb.mxu1 %v2440_v63  ;;  %544 = vmatpush.msra.mxu0 %v3455_v62 }
  0x63   :  { %603 = vmatpush.msra.mxu3 %v2428_v22  ;;  %584 = vmatpush.msra.mxu2 %v2450_v8 }
  0x64   :  { %413 = vmatmul.f32.vlgmr.msra.gmra.mxu1 %v2111_v49  ;;  %681 = vmatpush.msrb.mxu0 %v3456_v10  ;;  %v3458_v49 = vld [vmem:[#allocation32_spill] sm:$0xff] }
  0x65   :  { %564 = vmatpush.msrb.mxu1 %v2448_v16  ;;  %604 = vmatpush.msra.mxu3 %v2438_v12 }
  0x66   :  { %721 = vmatpush.msrb.mxu2 %v2209_v15  ;;  %682 = vmatpush.msrb.mxu0 %v3457_v60 }
  0x67   :  { %701 = vmatpush.msra.mxu1 %v2194_v11  ;;  %741 = vmatpush.msrb.mxu3 %v2202_v13 }
  0x68   :  { %722 = vmatpush.msrb.mxu2 %v2222_v19  ;;  %683 = vmatpush.msrb.mxu0 %v2225_v20 }
  0x69   :  { %702 = vmatpush.msra.mxu1 %v2207_v14  ;;  %742 = vmatpush.msrb.mxu3 %v2216_v17 }
  0x6a   :  { %723 = vmatpush.msrb.mxu2 %v2263_v29  ;;  %684 = vmatpush.msrb.mxu0 %v2242_v24 }
  0x6b   :  { %703 = vmatpush.msra.mxu1 %v2220_v18  ;;  %743 = vmatpush.msrb.mxu3 %v2227_v21 }
  0x6c   :  { %724 = vmatpush.msrb.mxu2 %v2276_v33  ;;  %685 = vmatpush.msrb.mxu0 %v2254_v26 }
  0x6d   :  { %704 = vmatpush.msra.mxu1 %v2247_v25  ;;  %744 = vmatpush.msrb.mxu3 %v2256_v27 }
  0x6e   :  { %725 = vmatpush.msrb.mxu2 %v2305_v40  ;;  %686 = vmatpush.msrb.mxu0 %v2267_v30 }
  0x6f   :  { %705 = vmatpush.msra.mxu1 %v2261_v28  ;;  %745 = vmatpush.msrb.mxu3 %v2270_v31 }
  0x70   :  { %726 = vmatpush.msrb.mxu2 %v2319_v44  ;;  %687 = vmatpush.msrb.mxu0 %v2278_v34 }
  0x71   :  { %706 = vmatpush.msra.mxu1 %v2274_v32  ;;  %746 = vmatpush.msrb.mxu3 %v2282_v35 }
  0x72   :  { %727 = vmatpush.msrb.mxu2 %v2330_v48  ;;  %688 = vmatpush.msrb.mxu0 %v2291_v37 }
  0x73   :  { %707 = vmatpush.msra.mxu1 %v2296_v38  ;;  %747 = vmatpush.msrb.mxu3 %v2312_v42 }
  0x74   :  { %728 = vmatpush.msrb.mxu2 %v2346_v51  ;;  %689 = vmatpush.msrb.mxu0 %v2303_v39 }
  0x75   :  { %708 = vmatpush.msra.mxu1 %v2310_v41  ;;  %748 = vmatpush.msrb.mxu3 %v2323_v45 }
  0x76   :  { %729 = vmatpush.msrb.mxu2 %v2359_v54  ;;  %690 = vmatpush.msrb.mxu0 %v2316_v43 }
  0x77   :  { %709 = vmatpush.msra.mxu1 %v2325_v46  ;;  %749 = vmatpush.msrb.mxu3 %v2354_v53 }
  0x78   :  { %730 = vmatpush.msrb.mxu2 %v2372_v58  ;;  %691 = vmatpush.msrb.mxu0 %v2327_v47 }
  0x79   :  { %710 = vmatpush.msra.mxu1 %v2361_v55  ;;  %750 = vmatpush.msrb.mxu3 %v2368_v57 }
  0x7a   :  { %731 = vmatpush.msrb.mxu2 %v2392_v0  ;;  %692 = vmatpush.msrb.mxu0 %v2340_v50 }
  0x7b   :  { %711 = vmatpush.msra.mxu1 %v2374_v59  ;;  %751 = vmatpush.msrb.mxu3 %v2380_v61 }
  0x7c   :  { %732 = vmatpush.msrb.mxu2 %v2404_v3  ;;  %693 = vmatpush.msrb.mxu0 %v2352_v52 }
  0x7d   :  { %712 = vmatpush.msra.mxu1 %v2400_v2  ;;  %752 = vmatpush.msrb.mxu3 %v2398_v1 }
  0x7e   :  { %733 = vmatpush.msrb.mxu2 %v2413_v7  ;;  %694 = vmatpush.msrb.mxu0 %v2365_v56 }
  0x7f   :  { %713 = vmatpush.msra.mxu1 %v2410_v6  ;;  %753 = vmatpush.msrb.mxu3 %v2408_v4 }
  0x80   :  { %734 = vmatpush.msrb.mxu2 %v2431_v36  ;;  %695 = vmatpush.msrb.mxu0 %v3454_v23 }
  0x81   :  { %714 = vmatpush.msra.mxu1 %v2419_v9  ;;  %754 = vmatpush.msrb.mxu3 %v3453_v5  ;;  %v60_v5 = vld [vmem:[%s3317_s3] sm:$0xf] }
  0x82   :  { %735 = vmatpush.msrb.mxu2 %v3458_v49  ;;  %696 = vmatpush.msrb.mxu0 %v3455_v62  ;;  %v62_v36 = vperm.slane %v60_v5, 0 }
  0x83   :  { %715 = vmatpush.msra.mxu1 %v2440_v63  ;;  %755 = vmatpush.msrb.mxu3 %v2428_v22 }
  0x84   :  { %736 = vmatpush.msrb.mxu2 %v2450_v8  ;;  %v2612_v8 = vperm.slane %v60_v5, 2 }
  0x85   :  { %716 = vmatpush.msra.mxu1 %v2448_v16  ;;  %756 = vmatpush.msrb.mxu3 %v2438_v12  ;;  %v65_v12 = vperm.slane %v60_v5, 3 }
  0x90   :  { %v130_v23 = vpop.f32.mrf.mxu0  ;;  %v148_v9 = vpop.f32.mrf.mxu1 }
  0x91   :  { %v2604_v63 = vadd.f32 %v148_v9, %v62_v36 }
  0x93   :  { %3459 = vst [vmem:[#allocation7_spill] sm:$0xff] %v2604_v63 }
  0x97   :  { %v2606_v49 = vpop.f32.mrf.mxu2 }
  0x98   :  { %v253_v22 = vpop.f32.mrf.mxu3  ;;  %v133_v56 = vpop.f32.mrf.mxu0 }
  0x99   :  { %v2608_v62 = vadd.f32 %v133_v56, %v62_v36  ;;  %v151_v16 = vpop.f32.mrf.mxu1  ;;  %v63_v56 = vperm.slane %v60_v5, 1 }
  0x9a   :  { %v2610_v4 = vadd.f32 %v151_v16, %v62_v36 }
  0x9b   :  { %3460 = vst [vmem:[#allocation8_spill] sm:$0xff] %v2608_v62 }
  0x9c   :  { %3461 = vst [vmem:[#allocation35_spill] sm:$0xff] %v2610_v4 }
  0x9f   :  { %v215_v7 = vpop.f32.mrf.mxu2 }
  0xa0   :  { %v2615_v6 = vadd.f32 %v215_v7, %v2612_v8  ;;  %v256_v52 = vpop.f32.mrf.mxu3  ;;  %v136_v1 = vpop.f32.mrf.mxu0 }
  0xa1   :  { %v2617_v9 = vadd.f32 %v256_v52, %v65_v12  ;;  %v2619_v63 = vadd.f32 %v136_v1, %v62_v36  ;;  %v171_v3 = vpop.f32.mrf.mxu1 }
  0xa2   :  { %3462 = vst [vmem:[#allocation36_spill] sm:$0xff] %v2615_v6 }
  0xa3   :  { %3463 = vst [vmem:[#allocation37_spill] sm:$0xff] %v2617_v9 }
  0xa4   :  { %3464 = vst [vmem:[#allocation38_spill] sm:$0xff] %v2619_v63 }
  0xa7   :  { %v218_v2 = vpop.f32.mrf.mxu2 }
  0xa8   :  { %v2622_v62 = vadd.f32 %v218_v2, %v2612_v8  ;;  %v259_v16 = vpop.f32.mrf.mxu3  ;;  %v139_v4 = vpop.f32.mrf.mxu0 }
  0xa9   :  { %v2624_v50 = vadd.f32 %v259_v16, %v65_v12  ;;  %v2626_v61 = vadd.f32 %v139_v4, %v62_v36  ;;  %v174_v7 = vpop.f32.mrf.mxu1 }
  0xaa   :  { %3465 = vst [vmem:[#allocation39_spill] sm:$0xff] %v2622_v62  ;;  %v2628_v6 = vadd.f32 %v174_v7, %v63_v56 }
  0xab   :  { %3466 = vst [vmem:[#allocation40_spill] sm:$0xff] %v2624_v50 }
  0xac   :  { %3467 = vst [vmem:[#allocation41_spill] sm:$0xff] %v2626_v61 }
  0xad   :  { %3468 = vst [vmem:[#allocation42_spill] sm:$0xff] %v2628_v6 }
  0xaf   :  { %v221_v0 = vpop.f32.mrf.mxu2 }
  0xb0   :  { %v2631_v52 = vadd.f32 %v221_v0, %v2612_v8  ;;  %v262_v1 = vpop.f32.mrf.mxu3  ;;  %v142_v63 = vpop.f32.mrf.mxu0 }
  0xb1   :  { %v2633_v9 = vadd.f32 %v262_v1, %v65_v12  ;;  %v2635_v5 = vadd.f32 %v142_v63, %v62_v36  ;;  %v177_v2 = vpop.f32.mrf.mxu1 }
  0xb2   :  { %3469 = vst [vmem:[#allocation43_spill] sm:$0xff] %v2631_v52  ;;  %v2637_v62 = vadd.f32 %v177_v2, %v63_v56 }
  0xb3   :  { %3470 = vst [vmem:[#allocation44_spill] sm:$0xff] %v2633_v9 }
  0xb4   :  { %3471 = vst [vmem:[#allocation45_spill] sm:$0xff] %v2635_v5 }
  0xb5   :  { %3472 = vst [vmem:[#allocation46_spill] sm:$0xff] %v2637_v62 }
  0xb7   :  { %v224_v16 = vpop.f32.mrf.mxu2 }
  0xb8   :  { %v2640_v4 = vadd.f32 %v224_v16, %v2612_v8  ;;  %v265_v61 = vpop.f32.mrf.mxu3  ;;  %v145_v7 = vpop.f32.mrf.mxu0 }
  0xb9   :  { %v2642_v50 = vadd.f32 %v265_v61, %v65_v12  ;;  %v2644_v6 = vadd.f32 %v145_v7, %v62_v36  ;;  %v180_v0 = vpop.f32.mrf.mxu1 }
  0xba   :  { %3473 = vst [vmem:[#allocation47_spill] sm:$0xff] %v2640_v4  ;;  %v2646_v52 = vadd.f32 %v180_v0, %v63_v56 }
  0xbb   :  { %3474 = vst [vmem:[#allocation48_spill] sm:$0xff] %v2642_v50  ;;  %v131_v50 = vadd.f32 %v130_v23, %v62_v36 }
  0xbc   :  { %3475 = vst [vmem:[#allocation49_spill] sm:$0xff] %v2644_v6 }
  0xbd   :  { %3476 = vst [vmem:[#allocation50_spill] sm:$0xff] %v2646_v52 }
  0xbf   :  { %v227_v1 = vpop.f32.mrf.mxu2 }
  0xc0   :  { %v2649_v63 = vadd.f32 %v227_v1, %v2612_v8  ;;  %v268_v5 = vpop.f32.mrf.mxu3 }
  0xc1   :  { %v2651_v2 = vadd.f32 %v268_v5, %v65_v12  ;;  %v183_v9 = vpop.f32.mrf.mxu1  ;;  %v394_v7 = vpop.f32.mrf.mxu0 }
  0xc2   :  { %3477 = vst [vmem:[#allocation51_spill] sm:$0xff] %v2649_v63  ;;  %v2653_v62 = vadd.f32 %v183_v9, %v63_v56  ;;  %v457_v1 = vadd.f32 %v394_v7, %v131_v50 }
  0xc3   :  { %3478 = vst [vmem:[#allocation52_spill] sm:$0xff] %v2651_v2 }
  0xc4   :  { %3479 = vst [vmem:[#allocation53_spill] sm:$0xff] %v2653_v62  ;;  %v1839_v59 = vmul.f32 -1.442695, %v457_v1 }
  0xc6   :  { %1878 = vpow2.f32 %v1839_v59 }
  0xc7   :  { %v230_v16 = vpop.f32.mrf.mxu2 }
  0xc8   :  { %v2656_v4 = vadd.f32 %v230_v16, %v2612_v8  ;;  %v271_v61 = vpop.f32.mrf.mxu3 }
  0xc9   :  { %v2658_v6 = vadd.f32 %v271_v61, %v65_v12  ;;  %v186_v0 = vpop.f32.mrf.mxu1 }
  0xca   :  { %3480 = vst [vmem:[#allocation54_spill] sm:$0xff] %v2656_v4  ;;  %v2660_v52 = vadd.f32 %v186_v0, %v63_v56  ;;  %v254_v4 = vadd.f32 %v253_v22, %v65_v12  ;;  %v172_v0 = vadd.f32 %v171_v3, %v63_v56 }
  0xcb   :  { %3481 = vst [vmem:[#allocation55_spill] sm:$0xff] %v2658_v6 }
  0xcc   :  { %3482 = vst [vmem:[#allocation56_spill] sm:$0xff] %v2660_v52  ;;  %v1879_v47 = vpop.eup %1878 }
  0xcd   :  { %v464_v50 = vadd.f32 1.0, %v1879_v47  ;;  %v213_v47 = vadd.f32 %v2606_v49, %v2612_v8 }
  0xcf   :  { %1880 = vrcp.f32 %v464_v50  ;;  %vm470_vm3 = vweird.f32 %v464_v50 }
  0xd0   :  { %v233_v63 = vpop.f32.mrf.mxu2  ;;  %v274_v9 = vpop.f32.mrf.mxu3 }
  0xd1   :  { %v2663_v5 = vadd.f32 %v233_v63, %v2612_v8  ;;  %v2665_v2 = vadd.f32 %v274_v9, %v65_v12  ;;  %v189_v62 = vpop.f32.mrf.mxu1 }
  0xd2   :  { %v2667_v16 = vadd.f32 %v189_v62, %v63_v56 }
  0xd3   :  { %3483 = vst [vmem:[#allocation57_spill] sm:$0xff] %v2663_v5 }
  0xd4   :  { %3484 = vst [vmem:[#allocation58_spill] sm:$0xff] %v2665_v2 }
  0xd5   :  { %3485 = vst [vmem:[#allocation59_spill] sm:$0xff] %v2667_v16  ;;  %v1881_v5 = vpop.eup %1880 }
  0xd6   :  { %v466_v2 = vmul.f32 %v1881_v5, %v464_v50  ;;  %vm471_vm2 = vweird.f32 %v1881_v5 }
  0xd7   :  { %vm472_vm4 = vmor %vm470_vm3, %vm471_vm2 }
  0xd8   :  { %v467_v16 = vsub.f32 1.0, %v466_v2 }
  0xd9   :  { %v454_v61 = vpop.f32.mrf.mxu3  ;;  %v192_v6 = vpop.f32.mrf.mxu1 }
  0xda   :  { %v460_v36 = vadd.f32 %v454_v61, %v254_v4  ;;  %v2669_v23 = vadd.f32 %v192_v6, %v63_v56  ;;  %v434_v6 = vpop.f32.mrf.mxu2  ;;  %v468_v3 = vmul.f32 %v1881_v5, %v467_v16 }
  0xdb   :  { %v459_v56 = vadd.f32 %v434_v6, %v213_v47 }
  0xdc   :  { %3486 = vst [vmem:[#allocation60_spill] sm:$0xff] %v2669_v23  ;;  %v1841_v7 = vmul.f32 -1.442695, %v460_v36  ;;  %v469_v36 = vadd.f32 %v1881_v5, %v468_v3 }
  0xde   :  { %1882 = vpow2.f32 %v1841_v7 }
  0xe1   :  { %v414_v63 = vpop.f32.mrf.mxu1 }
  0xe2   :  { %v458_v1 = vadd.f32 %v414_v63, %v172_v0  ;;  %v476_v0 = vand.u32 2147483648, %v464_v50 }
  0xe4   :  { %v1840_v9 = vmul.f32 -1.442695, %v458_v1  ;;  %v1883_v62 = vpop.eup %1882  ;;  %v474_v1 = vand.u32 2147483647, %v464_v50  ;;  %v477_v8 = vor.u32 1.1754944e-38, %v476_v0 }
  0xe5   :  { %v503_v59 = vadd.f32 1.0, %v1883_v62  ;;  %v473_v62 = vsel %vm472_vm4, %v1881_v5, %v469_v36 }
  0xe6   :  { %1884 = vpow2.f32 %v1840_v9  ;;  %vm475_vm6 = vcmp.eq.f32.partialorder %v474_v1, 8.507059e+37 }
  0xe7   :  { %1886 = vrcp.f32 %v503_v59  ;;  %v478_v47 = vsel %vm475_vm6, %v477_v8, %v473_v62  ;;  %v515_v36 = vand.u32 2147483648, %v503_v59  ;;  %vm509_vm11 = vweird.f32 %v503_v59  ;;  %v3516_v8 = vld [vmem:[#allocation36_spill] sm:$0xff] }
  0xe8   :  { %v513_v0 = vand.u32 2147483647, %v503_v59 }
  0xea   :  { %vm514_vm13 = vcmp.eq.f32.partialorder %v513_v0, 8.507059e+37 }
  0xec   :  { %v1885_v12 = vpop.eup %1884 }
  0xed   :  { %v483_v22 = vadd.f32 1.0, %v1885_v12  ;;  %v1887_v4 = vpop.eup %1886 }
  0xee   :  { %v505_v63 = vmul.f32 %v1887_v4, %v503_v59  ;;  %vm510_vm10 = vweird.f32 %v1887_v4 }
  0xef   :  { %1888 = vrcp.f32 %v483_v22  ;;  %v495_v2 = vand.u32 2147483648, %v483_v22  ;;  %v493_v23 = vand.u32 2147483647, %v483_v22  ;;  %vm489_vm7 = vweird.f32 %v483_v22  ;;  %vm511_vm12 = vmor %vm509_vm11, %vm510_vm10 }
  0xf0   :  { %1890 = vtanh.f32 %v459_v56  ;;  %v506_v49 = vsub.f32 1.0, %v505_v63  ;;  %v516_v63 = vor.u32 1.1754944e-38, %v515_v36 }
  0xf1   :  { %v496_v3 = vor.u32 1.1754944e-38, %v495_v2  ;;  %vm494_vm9 = vcmp.eq.f32.partialorder %v493_v23, 8.507059e+37 }
  0xf2   :  { %v507_v50 = vmul.f32 %v1887_v4, %v506_v49 }
  0xf4   :  { %v508_v5 = vadd.f32 %v1887_v4, %v507_v50 }
  0xf5   :  { %v1889_v61 = vpop.eup %1888 }
  0xf6   :  { %v485_v7 = vmul.f32 %v1889_v61, %v483_v22  ;;  %vm490_vm5 = vweird.f32 %v1889_v61  ;;  %v1891_v6 = vpop.eup %1890  ;;  %v512_v22 = vsel %vm511_vm12, %v1887_v4, %v508_v5 }
  0xf7   :  { %vm491_vm8 = vmor %vm489_vm7, %vm490_vm5 }
  0xf8   :  { %v486_v9 = vsub.f32 1.0, %v485_v7  ;;  %v520_v7 = vmul.f32 %v1891_v6, %v478_v47 }
  0xfa   :  { %v487_v12 = vmul.f32 %v1889_v61, %v486_v9 }
  0xfc   :  { %v488_v16 = vadd.f32 %v1889_v61, %v487_v12 }
  0xfe   :  { %v492_v56 = vsel %vm491_vm8, %v1889_v61, %v488_v16  ;;  %v517_v61 = vsel %vm514_vm13, %v516_v63, %v512_v22 }
  0xff   :  { %v497_v52 = vsel %vm494_vm9, %v496_v3, %v492_v56 }
 0x100   :  { %v519_v57 = vmul.f32 0.0, %v497_v52 }
 0x102   :  { %v2673_v58 = vadd.f32 %v520_v7, %v519_v57 }
 0x104   :  { %1892 = vtanh.f32 %v2673_v58 }
 0x10a   :  { %v1893_v1 = vpop.eup %1892 }
 0x10b   :  { %v523_v23 = vmul.f32 %v1893_v1, %v517_v61 }
 0x10d   :  { %545 = vmatmul.f32.vlgmr.msra.gmra.mxu0 %v523_v23  ;;  %565 = vmatmul.f32.vlgmr.msrb.gmra.mxu1 %v523_v23 }
 0x10e   :  { %585 = vmatmul.f32.vlgmr.msra.gmra.mxu2 %v523_v23  ;;  %605 = vmatmul.f32.vlgmr.msra.gmra.mxu3 %v523_v23 }
 0x10f   :  { %833 = vmatpush.msra.mxu0 %v3456_v10  ;;  %853 = vmatpush.msrb.mxu1 %v2194_v11  ;;  %v3487_v11 = vld [vmem:[#allocation14_spill] sm:$0xff] }
 0x110   :  { %873 = vmatpush.msra.mxu2 %v2209_v15  ;;  %893 = vmatpush.msra.mxu3 %v2202_v13  ;;  %v3488_v13 = vld [vmem:[#allocation13_spill] sm:$0xff]  ;;  %v3490_v15 = vld [vmem:[#allocation15_spill] sm:$0xff] }
 0x111   :  { %834 = vmatpush.msra.mxu0 %v3457_v60  ;;  %854 = vmatpush.msrb.mxu1 %v2207_v14  ;;  %v3489_v14 = vld [vmem:[#allocation9_spill] sm:$0xff] }
 0x112   :  { %874 = vmatpush.msra.mxu2 %v2222_v19  ;;  %894 = vmatpush.msra.mxu3 %v2216_v17  ;;  %v3491_v17 = vld [vmem:[#allocation19_spill] sm:$0xff]  ;;  %v3493_v19 = vld [vmem:[#allocation10_spill] sm:$0xff] }
 0x113   :  { %835 = vmatpush.msra.mxu0 %v2225_v20  ;;  %855 = vmatpush.msrb.mxu1 %v2220_v18  ;;  %v3492_v18 = vld [vmem:[#allocation17_spill] sm:$0xff] }
 0x114   :  { %875 = vmatpush.msra.mxu2 %v2263_v29  ;;  %895 = vmatpush.msra.mxu3 %v2227_v21  ;;  %v3494_v20 = vld [vmem:[#allocation21_spill] sm:$0xff]  ;;  %v3495_v21 = vld [vmem:[#allocation22_spill] sm:$0xff]  ;;  %v3501_v29 = vld [vmem:[#allocation12_spill] sm:$0xff] }
 0x115   :  { %836 = vmatpush.msra.mxu0 %v2242_v24  ;;  %856 = vmatpush.msrb.mxu1 %v2247_v25  ;;  %v3496_v24 = vld [vmem:[#allocation20_spill] sm:$0xff]  ;;  %v3497_v25 = vld [vmem:[#allocation11_spill] sm:$0xff] }
 0x116   :  { %876 = vmatpush.msra.mxu2 %v2276_v33  ;;  %896 = vmatpush.msra.mxu3 %v2256_v27  ;;  %v3499_v27 = vld [vmem:[#allocation25_spill] sm:$0xff]  ;;  %v3505_v33 = vld [vmem:[#allocation16_spill] sm:$0xff] }
 0x117   :  { %837 = vmatpush.msra.mxu0 %v2254_v26  ;;  %857 = vmatpush.msrb.mxu1 %v2261_v28  ;;  %v3498_v26 = vld [vmem:[#allocation24_spill] sm:$0xff]  ;;  %v3500_v28 = vld [vmem:[#allocation23_spill] sm:$0xff] }
 0x118   :  { %877 = vmatpush.msra.mxu2 %v2305_v40  ;;  %897 = vmatpush.msra.mxu3 %v2270_v31  ;;  %v3503_v31 = vld [vmem:[#allocation29_spill] sm:$0xff]  ;;  %v3511_v40 = vld [vmem:[#allocation34_spill] sm:$0xff] }
 0x119   :  { %838 = vmatpush.msra.mxu0 %v2267_v30  ;;  %858 = vmatpush.msrb.mxu1 %v2274_v32  ;;  %v3502_v30 = vld [vmem:[#allocation27_spill] sm:$0xff]  ;;  %v3504_v32 = vld [vmem:[#allocation26_spill] sm:$0xff] }
 0x11a   :  { %878 = vmatpush.msra.mxu2 %v2319_v44  ;;  %898 = vmatpush.msra.mxu3 %v2282_v35  ;;  %v3507_v35 = vld [vmem:[#allocation32_spill] sm:$0xff] }
 0x11b   :  { %839 = vmatpush.msra.mxu0 %v2278_v34  ;;  %859 = vmatpush.msrb.mxu1 %v2296_v38  ;;  %v3506_v34 = vld [vmem:[#allocation31_spill] sm:$0xff]  ;;  %v3509_v38 = vld [vmem:[#allocation18_spill] sm:$0xff]  ;;  %v3513_v44 = vld [vmem:[#allocation8_spill] sm:$0xff] }
 0x11c   :  { %879 = vmatpush.msra.mxu2 %v2330_v48  ;;  %899 = vmatpush.msra.mxu3 %v2312_v42 }
 0x11d   :  { %840 = vmatpush.msra.mxu0 %v2291_v37  ;;  %860 = vmatpush.msrb.mxu1 %v2310_v41  ;;  %v3508_v37 = vld [vmem:[#allocation28_spill] sm:$0xff]  ;;  %v3512_v41 = vld [vmem:[#allocation30_spill] sm:$0xff] }
 0x11e   :  { %880 = vmatpush.msra.mxu2 %v2346_v51  ;;  %900 = vmatpush.msra.mxu3 %v2323_v45 }
 0x11f   :  { %841 = vmatpush.msra.mxu0 %v2303_v39  ;;  %861 = vmatpush.msrb.mxu1 %v2325_v46  ;;  %v3510_v39 = vld [vmem:[#allocation33_spill] sm:$0xff]  ;;  %v3514_v46 = vld [vmem:[#allocation42_spill] sm:$0xff] }
 0x120   :  { %881 = vmatpush.msra.mxu2 %v2359_v54  ;;  %901 = vmatpush.msra.mxu3 %v2354_v53 }
 0x121   :  { %842 = vmatpush.msra.mxu0 %v2316_v43  ;;  %862 = vmatpush.msrb.mxu1 %v2361_v55  ;;  %v3515_v55 = vld [vmem:[#allocation37_spill] sm:$0xff] }
 0x122   :  { %882 = vmatpush.msra.mxu2 %v3487_v11  ;;  %902 = vmatpush.msra.mxu3 %v3488_v13 }
 0x123   :  { %843 = vmatpush.msra.mxu0 %v3489_v14  ;;  %863 = vmatpush.msrb.mxu1 %v3490_v15 }
 0x124   :  { %883 = vmatpush.msra.mxu2 %v3491_v17  ;;  %903 = vmatpush.msra.mxu3 %v3492_v18 }
 0x125   :  { %844 = vmatpush.msra.mxu0 %v3493_v19  ;;  %864 = vmatpush.msrb.mxu1 %v3494_v20 }
 0x126   :  { %884 = vmatpush.msra.mxu2 %v3495_v21  ;;  %904 = vmatpush.msra.mxu3 %v3496_v24 }
 0x127   :  { %845 = vmatpush.msra.mxu0 %v3497_v25  ;;  %865 = vmatpush.msrb.mxu1 %v3498_v26 }
 0x128   :  { %885 = vmatpush.msra.mxu2 %v3499_v27  ;;  %905 = vmatpush.msra.mxu3 %v3500_v28 }
 0x129   :  { %846 = vmatpush.msra.mxu0 %v3501_v29  ;;  %866 = vmatpush.msrb.mxu1 %v3502_v30 }
 0x12a   :  { %886 = vmatpush.msra.mxu2 %v3503_v31  ;;  %906 = vmatpush.msra.mxu3 %v3504_v32 }
 0x12b   :  { %847 = vmatpush.msra.mxu0 %v3505_v33  ;;  %867 = vmatpush.msrb.mxu1 %v3506_v34 }
 0x12c   :  { %887 = vmatpush.msra.mxu2 %v3507_v35  ;;  %907 = vmatpush.msra.mxu3 %v3508_v37 }
 0x12d   :  { %848 = vmatpush.msra.mxu0 %v3509_v38  ;;  %868 = vmatpush.msrb.mxu1 %v3510_v39 }
 0x12e   :  { %888 = vmatpush.msra.mxu2 %v3511_v40  ;;  %908 = vmatpush.msra.mxu3 %v3512_v41 }
 0x18a   :  { %v546_v42 = vpop.f32.mrf.mxu0  ;;  %v566_v43 = vpop.f32.mrf.mxu1 }
 0x18b   :  { %v609_v45 = vadd.f32 %v546_v42, %v3513_v44  ;;  %v610_v48 = vadd.f32 %v566_v43, %v3514_v46 }
 0x18d   :  { %v1842_v51 = vmul.f32 -1.442695, %v609_v45  ;;  %v1843_v53 = vmul.f32 -1.442695, %v610_v48 }
 0x18f   :  { %1894 = vpow2.f32 %v1842_v51 }
 0x190   :  { %1896 = vpow2.f32 %v1843_v53 }
 0x191   :  { %v606_v54 = vpop.f32.mrf.mxu3  ;;  %v586_v9 = vpop.f32.mrf.mxu2 }
 0x192   :  { %v612_v57 = vadd.f32 %v606_v54, %v3515_v55  ;;  %v611_v49 = vadd.f32 %v586_v9, %v3516_v8  ;;  %v2751_v54 = vld [vmem:[#allocation4 + $0x1e8] sm:$0xff]  ;;  %v2754_v55 = vld [vmem:[#allocation4 + $0x1f0] sm:$0xff] }
 0x193   :  { %v2775_v9 = vld [vmem:[#allocation4 + $0x1a8] sm:$0xff] }
 0x194   :  { %v1844_v60 = vmul.f32 -1.442695, %v612_v57  ;;  %v2757_v57 = vld [vmem:[#allocation4 + $0x1f8] sm:$0xff]  ;;  %v2787_v8 = vld [vmem:[#allocation4 + $0x188] sm:$0xff] }
 0x195   :  { %v1895_v10 = vpop.eup %1894 }
 0x196   :  { %v1897_v52 = vpop.eup %1896  ;;  %v616_v59 = vadd.f32 1.0, %v1895_v10  ;;  %1898 = vpow2.f32 %v1844_v60  ;;  %v2760_v60 = vld [vmem:[#allocation4 + $0x1c0] sm:$0xff]  ;;  %v2763_v10 = vld [vmem:[#allocation4 + $0x1c8] sm:$0xff] }
 0x197   :  { %v635_v4 = vadd.f32 1.0, %v1897_v52  ;;  %v2766_v52 = vld [vmem:[#allocation4 + $0x1d0] sm:$0xff] }
 0x198   :  { %1900 = vrcp.f32 %v616_v59  ;;  %v628_v50 = vand.u32 2147483648, %v616_v59  ;;  %v626_v36 = vand.u32 2147483647, %v616_v59  ;;  %vm622_vm2 = vweird.f32 %v616_v59 }
 0x199   :  { %1902 = vrcp.f32 %v635_v4  ;;  %v647_v7 = vand.u32 2147483648, %v635_v4  ;;  %v645_v22 = vand.u32 2147483647, %v635_v4  ;;  %vm641_vm3 = vweird.f32 %v635_v4 }
 0x19a   :  { %v629_v61 = vor.u32 1.1754944e-38, %v628_v50  ;;  %vm627_vm6 = vcmp.eq.f32.partialorder %v626_v36, 8.507059e+37  ;;  %v2808_v50 = vld [vmem:[#allocation4 + $0x140] sm:$0xff]  ;;  %v2817_v36 = vld [vmem:[#allocation4 + $0x158] sm:$0xff] }
 0x19b   :  { %v648_v13 = vor.u32 1.1754944e-38, %v647_v7  ;;  %vm646_vm7 = vcmp.eq.f32.partialorder %v645_v22, 8.507059e+37  ;;  %v2811_v7 = vld [vmem:[#allocation4 + $0x148] sm:$0xff] }
 0x19c   :  { %v1899_v2 = vpop.eup %1898  ;;  %v2823_v22 = vld [vmem:[#allocation4 + $0x128] sm:$0xff] }
 0x19d   :  { %v655_v62 = vadd.f32 1.0, %v1899_v2  ;;  %v2778_v2 = vld [vmem:[#allocation4 + $0x1b0] sm:$0xff] }
 0x19e   :  { %v1901_v12 = vpop.eup %1900 }
 0x19f   :  { %v1903_v16 = vpop.eup %1902  ;;  %v618_v6 = vmul.f32 %v1901_v12, %v616_v59  ;;  %1904 = vrcp.f32 %v655_v62  ;;  %vm623_vm14 = vweird.f32 %v1901_v12  ;;  %v667_v43 = vand.u32 2147483648, %v655_v62  ;;  %v2769_v59 = vld [vmem:[#allocation4 + $0x1d8] sm:$0xff] }
 0x1a0   :  { %v637_v47 = vmul.f32 %v1903_v16, %v635_v4  ;;  %1906 = vtanh.f32 %v611_v49  ;;  %vm642_vm15 = vweird.f32 %v1903_v16  ;;  %vm624_vm4 = vmor %vm622_vm2, %vm623_vm14  ;;  %vm661_vm9 = vweird.f32 %v655_v62  ;;  %v2772_v4 = vld [vmem:[#allocation4 + $0x1a0] sm:$0xff]  ;;  %v2790_v49 = vld [vmem:[#allocation4 + $0x190] sm:$0xff] }
 0x1a1   :  { %v619_v3 = vsub.f32 1.0, %v618_v6  ;;  %vm643_vm5 = vmor %vm641_vm3, %vm642_vm15  ;;  %v665_v44 = vand.u32 2147483647, %v655_v62  ;;  %v668_v46 = vor.u32 1.1754944e-38, %v667_v43  ;;  %v2796_v6 = vld [vmem:[#allocation4 + $0x160] sm:$0xff]  ;;  %v2874_v43 = vld [vmem:[#allocation4 + $0xb0] sm:$0xff] }
 0x1a2   :  { %v638_v56 = vsub.f32 1.0, %v637_v47  ;;  %v2799_v47 = vld [vmem:[#allocation4 + $0x168] sm:$0xff]  ;;  %3521 = vst [vmem:[#allocation19_spill] sm:$0xff] %v2874_v43 }
 0x1a3   :  { %v620_v5 = vmul.f32 %v1901_v12, %v619_v3  ;;  %vm666_vm11 = vcmp.eq.f32.partialorder %v665_v44, 8.507059e+37  ;;  %v2802_v3 = vld [vmem:[#allocation4 + $0x170] sm:$0xff]  ;;  %v2877_v44 = vld [vmem:[#allocation4 + $0xb8] sm:$0xff] }
 0x1a4   :  { %v639_v0 = vmul.f32 %v1903_v16, %v638_v56  ;;  %v2805_v56 = vld [vmem:[#allocation4 + $0x178] sm:$0xff]  ;;  %3522 = vst [vmem:[#allocation17_spill] sm:$0xff] %v2877_v44 }
 0x1a5   :  { %v1905_v63 = vpop.eup %1904  ;;  %v621_v1 = vadd.f32 %v1901_v12, %v620_v5  ;;  %v2814_v5 = vld [vmem:[#allocation4 + $0x150] sm:$0xff] }
 0x1a6   :  { %v640_v23 = vadd.f32 %v1903_v16, %v639_v0  ;;  %v657_v11 = vmul.f32 %v1905_v63, %v655_v62  ;;  %v1907_v15 = vpop.eup %1906  ;;  %vm662_vm8 = vweird.f32 %v1905_v63  ;;  %v2781_v62 = vld [vmem:[#allocation4 + $0x1b8] sm:$0xff]  ;;  %v2820_v0 = vld [vmem:[#allocation4 + $0x120] sm:$0xff] }
 0x1a7   :  { %v625_v14 = vsel %vm624_vm4, %v1901_v12, %v621_v1  ;;  %vm663_vm10 = vmor %vm661_vm9, %vm662_vm8  ;;  %v2784_v12 = vld [vmem:[#allocation4 + $0x180] sm:$0xff]  ;;  %v2829_v1 = vld [vmem:[#allocation4 + $0x138] sm:$0xff] }
 0x1a8   :  { %v630_v17 = vsel %vm627_vm6, %v629_v61, %v625_v14  ;;  %v644_v18 = vsel %vm643_vm5, %v1903_v16, %v640_v23  ;;  %v658_v19 = vsub.f32 1.0, %v657_v11  ;;  %v2793_v16 = vld [vmem:[#allocation4 + $0x198] sm:$0xff]  ;;  %v2832_v61 = vld [vmem:[#allocation4 + $0x100] sm:$0xff]  ;;  %v2835_v23 = vld [vmem:[#allocation4 + $0x108] sm:$0xff] }
 0x1a9   :  { %v649_v24 = vsel %vm646_vm7, %v648_v13, %v644_v18  ;;  %v672_v25 = vmul.f32 %v1907_v15, %v630_v17  ;;  %v2838_v11 = vld [vmem:[#allocation4 + $0x110] sm:$0xff]  ;;  %v2841_v13 = vld [vmem:[#allocation4 + $0x118] sm:$0xff]  ;;  %v2844_v14 = vld [vmem:[#allocation4 + $0xe0] sm:$0xff] }
 0x1aa   :  { %v671_v29 = vmul.f32 %v649_v24, %v2673_v58  ;;  %v659_v33 = vmul.f32 %v1905_v63, %v658_v19  ;;  %v2748_v58 = vld [vmem:[#allocation4 + $0x1e0] sm:$0xff]  ;;  %v2847_v15 = vld [vmem:[#allocation4 + $0xe8] sm:$0xff]  ;;  %v2850_v17 = vld [vmem:[#allocation4 + $0xf0] sm:$0xff] }
 0x1ab   :  { %v2853_v18 = vld [vmem:[#allocation4 + $0xf8] sm:$0xff]  ;;  %v2856_v19 = vld [vmem:[#allocation4 + $0xc0] sm:$0xff]  ;;  %v2859_v24 = vld [vmem:[#allocation4 + $0xc8] sm:$0xff] }
 0x1ac   :  { %v2745_v38 = vadd.f32 %v672_v25, %v671_v29  ;;  %v660_v42 = vadd.f32 %v1905_v63, %v659_v33  ;;  %v2862_v25 = vld [vmem:[#allocation4 + $0xd0] sm:$0xff]  ;;  %v2865_v29 = vld [vmem:[#allocation4 + $0xd8] sm:$0xff]  ;;  %v2868_v33 = vld [vmem:[#allocation4 + $0xa0] sm:$0xff] }
 0x1ad   :  { %3517 = vst [vmem:[#allocation14_spill] sm:$0xff] %v2862_v25 }
 0x1ae   :  { %1908 = vtanh.f32 %v2745_v38  ;;  %v664_v45 = vsel %vm663_vm10, %v1905_v63, %v660_v42  ;;  %v2826_v63 = vld [vmem:[#allocation4 + $0x130] sm:$0xff]  ;;  %3518 = vst [vmem:[#allocation13_spill] sm:$0xff] %v2865_v29  ;;  %v2871_v42 = vld [vmem:[#allocation4 + $0xa8] sm:$0xff] }
 0x1af   :  { %v669_v51 = vsel %vm666_vm11, %v668_v46, %v664_v45  ;;  %3519 = vst [vmem:[#allocation9_spill] sm:$0xff] %v2868_v33  ;;  %v2880_v45 = vld [vmem:[#allocation4 + $0x80] sm:$0xff]  ;;  %v2885_v46 = vld [vmem:[#allocation4 + $0x98] sm:$0xff] }
 0x1b0   :  { %3520 = vst [vmem:[#allocation15_spill] sm:$0xff] %v2871_v42 }
 0x1b1   :  { %3523 = vst [vmem:[#allocation10_spill] sm:$0xff] %v2880_v45 }
 0x1b2   :  { %3524 = vst [vmem:[#allocation21_spill] sm:$0xff] %v2885_v46 }
 0x1b4   :  { %v1909_v48 = vpop.eup %1908 }
 0x1b5   :  { %v675_v53 = vmul.f32 %v1909_v48, %v669_v51  ;;  %v2888_v48 = vld [vmem:[#allocation4 + $0x60] sm:$0xff] }
 0x1b6   :  { %3525 = vst [vmem:[#allocation22_spill] sm:$0xff] %v2888_v48  ;;  %v2894_v51 = vld [vmem:[#allocation4 + $0x40] sm:$0xff] }
 0x1b7   :  { %697 = vmatmul.f32.vlgmr.msrb.gmra.mxu0 %v675_v53  ;;  %717 = vmatmul.f32.vlgmr.msra.gmra.mxu1 %v675_v53  ;;  %3526 = vst [vmem:[#allocation20_spill] sm:$0xff] %v2894_v51 }
 0x1b8   :  { %737 = vmatmul.f32.vlgmr.msrb.gmra.mxu2 %v675_v53  ;;  %757 = vmatmul.f32.vlgmr.msrb.gmra.mxu3 %v675_v53  ;;  %v3531_v53 = vld [vmem:[#allocation40_spill] sm:$0xff] }
 0x1b9   :  { %985 = vmatpush.msrb.mxu0 %v2748_v58  ;;  %1005 = vmatpush.msra.mxu1 %v2751_v54 }
 0x1ba   :  { %1025 = vmatpush.msrb.mxu2 %v2754_v55  ;;  %1045 = vmatpush.msrb.mxu3 %v2757_v57 }
 0x1bb   :  { %986 = vmatpush.msrb.mxu0 %v2760_v60  ;;  %1006 = vmatpush.msra.mxu1 %v2763_v10 }
 0x1bc   :  { %1026 = vmatpush.msrb.mxu2 %v2766_v52  ;;  %1046 = vmatpush.msrb.mxu3 %v2769_v59 }
 0x1bd   :  { %987 = vmatpush.msrb.mxu0 %v2772_v4  ;;  %1007 = vmatpush.msra.mxu1 %v2775_v9 }
 0x1be   :  { %1027 = vmatpush.msrb.mxu2 %v2778_v2  ;;  %1047 = vmatpush.msrb.mxu3 %v2781_v62 }
 0x1bf   :  { %988 = vmatpush.msrb.mxu0 %v2784_v12  ;;  %1008 = vmatpush.msra.mxu1 %v2787_v8 }
 0x1c0   :  { %1028 = vmatpush.msrb.mxu2 %v2790_v49  ;;  %1048 = vmatpush.msrb.mxu3 %v2793_v16 }
 0x1c1   :  { %989 = vmatpush.msrb.mxu0 %v2796_v6  ;;  %1009 = vmatpush.msra.mxu1 %v2799_v47 }
 0x1c2   :  { %1029 = vmatpush.msrb.mxu2 %v2802_v3  ;;  %1049 = vmatpush.msrb.mxu3 %v2805_v56 }
 0x1c3   :  { %990 = vmatpush.msrb.mxu0 %v2808_v50  ;;  %1010 = vmatpush.msra.mxu1 %v2811_v7 }
 0x1c4   :  { %1030 = vmatpush.msrb.mxu2 %v2814_v5  ;;  %1050 = vmatpush.msrb.mxu3 %v2817_v36 }
 0x1c5   :  { %991 = vmatpush.msrb.mxu0 %v2820_v0  ;;  %1011 = vmatpush.msra.mxu1 %v2823_v22 }
 0x1c6   :  { %1031 = vmatpush.msrb.mxu2 %v2826_v63  ;;  %1051 = vmatpush.msrb.mxu3 %v2829_v1 }
 0x1c7   :  { %992 = vmatpush.msrb.mxu0 %v2832_v61  ;;  %1012 = vmatpush.msra.mxu1 %v2835_v23 }
 0x1c8   :  { %1032 = vmatpush.msrb.mxu2 %v2838_v11  ;;  %1052 = vmatpush.msrb.mxu3 %v2841_v13 }
 0x1c9   :  { %993 = vmatpush.msrb.mxu0 %v2844_v14  ;;  %1013 = vmatpush.msra.mxu1 %v2847_v15 }
 0x1ca   :  { %1033 = vmatpush.msrb.mxu2 %v2850_v17  ;;  %1053 = vmatpush.msrb.mxu3 %v2853_v18 }
 0x1cb   :  { %994 = vmatpush.msrb.mxu0 %v2856_v19  ;;  %1014 = vmatpush.msra.mxu1 %v2859_v24 }
 0x1cc   :  { %1034 = vmatpush.msrb.mxu2 %v2862_v25  ;;  %1054 = vmatpush.msrb.mxu3 %v2865_v29 }
 0x1cd   :  { %995 = vmatpush.msrb.mxu0 %v2868_v33  ;;  %1015 = vmatpush.msra.mxu1 %v2871_v42 }
 0x1ce   :  { %1035 = vmatpush.msrb.mxu2 %v2874_v43  ;;  %1055 = vmatpush.msrb.mxu3 %v2877_v44 }
 0x1cf   :  { %996 = vmatpush.msrb.mxu0 %v2880_v45  ;;  %1016 = vmatpush.msra.mxu1 %v3494_v20  ;;  %v2900_v20 = vld [vmem:[#allocation4 + $0x20] sm:$0xff] }
 0x1d0   :  { %1036 = vmatpush.msrb.mxu2 %v3495_v21  ;;  %1056 = vmatpush.msrb.mxu3 %v2885_v46  ;;  %3527 = vst [vmem:[#allocation11_spill] sm:$0xff] %v2900_v20  ;;  %v2906_v21 = vld [vmem:[#allocation4] sm:$0xff] }
 0x1d1   :  { %997 = vmatpush.msrb.mxu0 %v2888_v48  ;;  %1017 = vmatpush.msra.mxu1 %v3498_v26  ;;  %3528 = vst [vmem:[#allocation24_spill] sm:$0xff] %v2906_v21 }
 0x1d2   :  { %1037 = vmatpush.msrb.mxu2 %v3499_v27  ;;  %1057 = vmatpush.msrb.mxu3 %v3500_v28  ;;  %v3529_v28 = vld [vmem:[#allocation38_spill] sm:$0xff] }
 0x1d3   :  { %998 = vmatpush.msrb.mxu0 %v2894_v51  ;;  %1018 = vmatpush.msra.mxu1 %v3502_v30 }
 0x1d4   :  { %1038 = vmatpush.msrb.mxu2 %v3503_v31  ;;  %1058 = vmatpush.msrb.mxu3 %v3504_v32  ;;  %v3530_v31 = vld [vmem:[#allocation46_spill] sm:$0xff] }
 0x1d5   :  { %999 = vmatpush.msrb.mxu0 %v2900_v20  ;;  %1019 = vmatpush.msra.mxu1 %v3506_v34 }
 0x1d6   :  { %1039 = vmatpush.msrb.mxu2 %v3507_v35  ;;  %1059 = vmatpush.msrb.mxu3 %v3508_v37 }
 0x1d7   :  { %1000 = vmatpush.msrb.mxu0 %v2906_v21  ;;  %1020 = vmatpush.msra.mxu1 %v3510_v39 }
 0x1d8   :  { %1040 = vmatpush.msrb.mxu2 %v3511_v40  ;;  %1060 = vmatpush.msrb.mxu3 %v3512_v41 }
 0x234   :  { %v698_v26 = vpop.f32.mrf.mxu0  ;;  %v718_v27 = vpop.f32.mrf.mxu1 }
 0x235   :  { %v761_v30 = vadd.f32 %v698_v26, %v3529_v28  ;;  %v762_v32 = vadd.f32 %v718_v27, %v3530_v31  ;;  %v3532_v27 = vld [vmem:[#allocation39_spill] sm:$0xff] }
 0x237   :  { %v1845_v34 = vmul.f32 -1.442695, %v761_v30  ;;  %v1846_v35 = vmul.f32 -1.442695, %v762_v32 }
 0x239   :  { %1910 = vpow2.f32 %v1845_v34 }
 0x23a   :  { %1912 = vpow2.f32 %v1846_v35 }
 0x23b   :  { %v758_v37 = vpop.f32.mrf.mxu3  ;;  %v738_v41 = vpop.f32.mrf.mxu2 }
 0x23c   :  { %v764_v20 = vadd.f32 %v758_v37, %v3531_v53  ;;  %v763_v30 = vadd.f32 %v738_v41, %v3532_v27 }
 0x23e   :  { %v1847_v21 = vmul.f32 -1.442695, %v764_v20 }
 0x23f   :  { %v1911_v51 = vpop.eup %1910 }
 0x240   :  { %v1913_v39 = vpop.eup %1912  ;;  %v768_v48 = vadd.f32 1.0, %v1911_v51  ;;  %1914 = vpow2.f32 %v1847_v21 }
 0x241   :  { %v787_v40 = vadd.f32 1.0, %v1913_v39 }
 0x242   :  { %1916 = vrcp.f32 %v768_v48  ;;  %v780_v20 = vand.u32 2147483648, %v768_v48  ;;  %v778_v21 = vand.u32 2147483647, %v768_v48  ;;  %vm774_vm14 = vweird.f32 %v768_v48 }
 0x243   :  { %1918 = vrcp.f32 %v787_v40  ;;  %v799_v53 = vand.u32 2147483648, %v787_v40  ;;  %v797_v45 = vand.u32 2147483647, %v787_v40  ;;  %vm793_vm15 = vweird.f32 %v787_v40 }
 0x244   :  { %v781_v41 = vor.u32 1.1754944e-38, %v780_v20  ;;  %vm779_vm4 = vcmp.eq.f32.partialorder %v778_v21, 8.507059e+37 }
 0x245   :  { %vm798_vm5 = vcmp.eq.f32.partialorder %v797_v45, 8.507059e+37 }
 0x246   :  { %v1915_v46 = vpop.eup %1914 }
 0x247   :  { %v807_v26 = vadd.f32 1.0, %v1915_v46 }
 0x248   :  { %v1917_v28 = vpop.eup %1916 }
 0x249   :  { %v1919_v31 = vpop.eup %1918  ;;  %v770_v32 = vmul.f32 %v1917_v28, %v768_v48  ;;  %1920 = vrcp.f32 %v807_v26  ;;  %vm775_vm12 = vweird.f32 %v1917_v28  ;;  %v819_v20 = vand.u32 2147483648, %v807_v26 }
 0x24a   :  { %v789_v34 = vmul.f32 %v1919_v31, %v787_v40  ;;  %1922 = vtanh.f32 %v763_v30  ;;  %vm794_vm13 = vweird.f32 %v1919_v31  ;;  %vm776_vm2 = vmor %vm774_vm14, %vm775_vm12  ;;  %vm813_vm7 = vweird.f32 %v807_v26 }
 0x24b   :  { %v771_v35 = vsub.f32 1.0, %v770_v32  ;;  %vm795_vm3 = vmor %vm793_vm15, %vm794_vm13  ;;  %v800_v32 = vor.u32 1.1754944e-38, %v799_v53  ;;  %v820_v21 = vor.u32 1.1754944e-38, %v819_v20  ;;  %v3551_v20 = vld [vmem:[#allocation11_spill] sm:$0xff] }
 0x24c   :  { %v790_v37 = vsub.f32 1.0, %v789_v34 }
 0x24d   :  { %v772_v51 = vmul.f32 %v1917_v28, %v771_v35 }
 0x24e   :  { %v791_v39 = vmul.f32 %v1919_v31, %v790_v37 }
 0x24f   :  { %v1921_v44 = vpop.eup %1920  ;;  %v773_v46 = vadd.f32 %v1917_v28, %v772_v51 }
 0x250   :  { %v792_v27 = vadd.f32 %v1919_v31, %v791_v39  ;;  %v809_v43 = vmul.f32 %v1921_v44, %v807_v26  ;;  %v1923_v30 = vpop.eup %1922  ;;  %vm814_vm6 = vweird.f32 %v1921_v44  ;;  %v2965_v39 = vld [vmem:[#allocation4 + $0x88] sm:$0xff] }
 0x251   :  { %v777_v34 = vsel %vm776_vm2, %v1917_v28, %v773_v46  ;;  %v817_v28 = vand.u32 2147483647, %v807_v26  ;;  %vm815_vm8 = vmor %vm813_vm7, %vm814_vm6  ;;  %v3539_v26 = vld [vmem:[#allocation10_spill] sm:$0xff]  ;;  %3540 = vst [vmem:[#allocation25_spill] sm:$0xff] %v2965_v39  ;;  %v2968_v46 = vld [vmem:[#allocation4 + $0x90] sm:$0xff] }
 0x252   :  { %v782_v42 = vsel %vm779_vm4, %v781_v41, %v777_v34  ;;  %v796_v35 = vsel %vm795_vm3, %v1919_v31, %v792_v27  ;;  %v810_v33 = vsub.f32 1.0, %v809_v43  ;;  %3541 = vst [vmem:[#allocation23_spill] sm:$0xff] %v2968_v46  ;;  %v3542_v41 = vld [vmem:[#allocation21_spill] sm:$0xff]  ;;  %v3543_v27 = vld [vmem:[#allocation22_spill] sm:$0xff] }
 0x253   :  { %v801_v37 = vsel %vm798_vm5, %v800_v32, %v796_v35  ;;  %v824_v29 = vmul.f32 %v1923_v30, %v782_v42  ;;  %vm818_vm9 = vcmp.eq.f32.partialorder %v817_v28, 8.507059e+37  ;;  %v3537_v42 = vld [vmem:[#allocation19_spill] sm:$0xff]  ;;  %v2973_v32 = vld [vmem:[#allocation4 + $0x68] sm:$0xff]  ;;  %v2976_v34 = vld [vmem:[#allocation4 + $0x70] sm:$0xff] }
 0x254   :  { %v823_v25 = vmul.f32 %v801_v37, %v2745_v38  ;;  %v811_v51 = vmul.f32 %v1921_v44, %v810_v33  ;;  %v3533_v38 = vld [vmem:[#allocation14_spill] sm:$0xff]  ;;  %v3536_v33 = vld [vmem:[#allocation15_spill] sm:$0xff]  ;;  %3544 = vst [vmem:[#allocation12_spill] sm:$0xff] %v2973_v32  ;;  %v3547_v35 = vld [vmem:[#allocation20_spill] sm:$0xff] }
 0x255   :  { %3545 = vst [vmem:[#allocation27_spill] sm:$0xff] %v2976_v34  ;;  %v2979_v30 = vld [vmem:[#allocation4 + $0x78] sm:$0xff]  ;;  %v2983_v37 = vld [vmem:[#allocation4 + $0x48] sm:$0xff] }
 0x256   :  { %v2917_v48 = vadd.f32 %v824_v29, %v823_v25  ;;  %v812_v40 = vadd.f32 %v1921_v44, %v811_v51  ;;  %v3534_v25 = vld [vmem:[#allocation13_spill] sm:$0xff]  ;;  %3546 = vst [vmem:[#allocation29_spill] sm:$0xff] %v2979_v30  ;;  %v2993_v28 = vld [vmem:[#allocation4 + $0x28] sm:$0xff] }
 0x257   :  { %v3535_v29 = vld [vmem:[#allocation9_spill] sm:$0xff]  ;;  %3548 = vst [vmem:[#allocation26_spill] sm:$0xff] %v2983_v37 }
 0x258   :  { %1924 = vtanh.f32 %v2917_v48  ;;  %v816_v53 = vsel %vm815_vm8, %v1921_v44, %v812_v40  ;;  %v3538_v44 = vld [vmem:[#allocation17_spill] sm:$0xff]  ;;  %v2989_v40 = vld [vmem:[#allocation4 + $0x58] sm:$0xff]  ;;  %3552 = vst [vmem:[#allocation32_spill] sm:$0xff] %v2993_v28 }
 0x259   :  { %v821_v43 = vsel %vm818_vm9, %v820_v21, %v816_v53  ;;  %v2986_v51 = vld [vmem:[#allocation4 + $0x50] sm:$0xff]  ;;  %3550 = vst [vmem:[#allocation31_spill] sm:$0xff] %v2989_v40  ;;  %v2999_v21 = vld [vmem:[#allocation4 + $0x38] sm:$0xff] }
 0x25a   :  { %3549 = vst [vmem:[#allocation16_spill] sm:$0xff] %v2986_v51  ;;  %v2996_v53 = vld [vmem:[#allocation4 + $0x30] sm:$0xff] }
 0x25b   :  { %3553 = vst [vmem:[#allocation28_spill] sm:$0xff] %v2996_v53 }
 0x25c   :  { %3554 = vst [vmem:[#allocation18_spill] sm:$0xff] %v2999_v21 }
 0x25e   :  { %v1925_v45 = vpop.eup %1924 }
 0x25f   :  { %v827_v31 = vmul.f32 %v1925_v45, %v821_v43  ;;  %v3555_v45 = vld [vmem:[#allocation24_spill] sm:$0xff] }
 0x260   :  { %v3003_v43 = vld [vmem:[#allocation4 + $0x8] sm:$0xff] }
 0x261   :  { %849 = vmatmul.f32.vlgmr.msra.gmra.mxu0 %v827_v31  ;;  %869 = vmatmul.f32.vlgmr.msrb.gmra.mxu1 %v827_v31  ;;  %3556 = vst [vmem:[#allocation33_spill] sm:$0xff] %v3003_v43 }
 0x262   :  { %889 = vmatmul.f32.vlgmr.msra.gmra.mxu2 %v827_v31  ;;  %909 = vmatmul.f32.vlgmr.msra.gmra.mxu3 %v827_v31  ;;  %v3006_v31 = vld [vmem:[#allocation4 + $0x10] sm:$0xff] }
 0x263   :  { %1137 = vmatpush.msra.mxu0 %v2748_v58  ;;  %1157 = vmatpush.msrb.mxu1 %v2751_v54  ;;  %3557 = vst [vmem:[#allocation34_spill] sm:$0xff] %v3006_v31 }
 0x264   :  { %1177 = vmatpush.msra.mxu2 %v2754_v55  ;;  %1197 = vmatpush.msra.mxu3 %v2757_v57 }
 0x265   :  { %1138 = vmatpush.msra.mxu0 %v2760_v60  ;;  %1158 = vmatpush.msrb.mxu1 %v2763_v10 }
 0x266   :  { %1178 = vmatpush.msra.mxu2 %v2766_v52  ;;  %1198 = vmatpush.msra.mxu3 %v2769_v59 }
 0x267   :  { %1139 = vmatpush.msra.mxu0 %v2772_v4  ;;  %1159 = vmatpush.msrb.mxu1 %v2775_v9 }
 0x268   :  { %1179 = vmatpush.msra.mxu2 %v2778_v2  ;;  %1199 = vmatpush.msra.mxu3 %v2781_v62 }
 0x269   :  { %1140 = vmatpush.msra.mxu0 %v2784_v12  ;;  %1160 = vmatpush.msrb.mxu1 %v2787_v8 }
 0x26a   :  { %1180 = vmatpush.msra.mxu2 %v2790_v49  ;;  %1200 = vmatpush.msra.mxu3 %v2793_v16 }
 0x26b   :  { %1141 = vmatpush.msra.mxu0 %v2796_v6  ;;  %1161 = vmatpush.msrb.mxu1 %v2799_v47 }
 0x26c   :  { %1181 = vmatpush.msra.mxu2 %v2802_v3  ;;  %1201 = vmatpush.msra.mxu3 %v2805_v56 }
 0x26d   :  { %1142 = vmatpush.msra.mxu0 %v2808_v50  ;;  %1162 = vmatpush.msrb.mxu1 %v2811_v7 }
 0x26e   :  { %1182 = vmatpush.msra.mxu2 %v2814_v5  ;;  %1202 = vmatpush.msra.mxu3 %v2817_v36 }
 0x26f   :  { %1143 = vmatpush.msra.mxu0 %v2820_v0  ;;  %1163 = vmatpush.msrb.mxu1 %v2823_v22 }
 0x270   :  { %1183 = vmatpush.msra.mxu2 %v2826_v63  ;;  %1203 = vmatpush.msra.mxu3 %v2829_v1 }
 0x271   :  { %1144 = vmatpush.msra.mxu0 %v2832_v61  ;;  %1164 = vmatpush.msrb.mxu1 %v2835_v23 }
 0x272   :  { %1184 = vmatpush.msra.mxu2 %v2838_v11  ;;  %1204 = vmatpush.msra.mxu3 %v2841_v13 }
 0x273   :  { %1145 = vmatpush.msra.mxu0 %v2844_v14  ;;  %1165 = vmatpush.msrb.mxu1 %v2847_v15 }
 0x274   :  { %1185 = vmatpush.msra.mxu2 %v2850_v17  ;;  %1205 = vmatpush.msra.mxu3 %v2853_v18 }
 0x275   :  { %1146 = vmatpush.msra.mxu0 %v2856_v19  ;;  %1166 = vmatpush.msrb.mxu1 %v2859_v24 }
 0x276   :  { %1186 = vmatpush.msra.mxu2 %v3533_v38  ;;  %1206 = vmatpush.msra.mxu3 %v3534_v25 }
 0x277   :  { %1147 = vmatpush.msra.mxu0 %v3535_v29  ;;  %1167 = vmatpush.msrb.mxu1 %v3536_v33 }
 0x278   :  { %1187 = vmatpush.msra.mxu2 %v3537_v42  ;;  %1207 = vmatpush.msra.mxu3 %v3538_v44 }
 0x279   :  { %1148 = vmatpush.msra.mxu0 %v3539_v26  ;;  %1168 = vmatpush.msrb.mxu1 %v2965_v39 }
 0x27a   :  { %1188 = vmatpush.msra.mxu2 %v2968_v46  ;;  %1208 = vmatpush.msra.mxu3 %v3542_v41 }
 0x27b   :  { %1149 = vmatpush.msra.mxu0 %v3543_v27  ;;  %1169 = vmatpush.msrb.mxu1 %v2973_v32 }
 0x27c   :  { %1189 = vmatpush.msra.mxu2 %v2976_v34  ;;  %1209 = vmatpush.msra.mxu3 %v2979_v30 }
 0x27d   :  { %1150 = vmatpush.msra.mxu0 %v3547_v35  ;;  %1170 = vmatpush.msrb.mxu1 %v2983_v37  ;;  %v3560_v37 = vld [vmem:[#allocation50_spill] sm:$0xff] }
 0x27e   :  { %1190 = vmatpush.msra.mxu2 %v2986_v51  ;;  %1210 = vmatpush.msra.mxu3 %v2989_v40  ;;  %v3559_v40 = vld [vmem:[#allocation41_spill] sm:$0xff] }
 0x27f   :  { %1151 = vmatpush.msra.mxu0 %v3551_v20  ;;  %1171 = vmatpush.msrb.mxu1 %v2993_v28  ;;  %v3009_v20 = vld [vmem:[#allocation4 + $0x18] sm:$0xff] }
 0x280   :  { %1191 = vmatpush.msra.mxu2 %v2996_v53  ;;  %1211 = vmatpush.msra.mxu3 %v2999_v21  ;;  %3558 = vst [vmem:[#allocation30_spill] sm:$0xff] %v3009_v20 }
 0x281   :  { %1152 = vmatpush.msra.mxu0 %v3555_v45  ;;  %1172 = vmatpush.msrb.mxu1 %v3003_v43  ;;  %v3561_v43 = vld [vmem:[#allocation44_spill] sm:$0xff] }
 0x282   :  { %1192 = vmatpush.msra.mxu2 %v3006_v31  ;;  %1212 = vmatpush.msra.mxu3 %v3009_v20 }
 0x2de   :  { %v850_v28 = vpop.f32.mrf.mxu0  ;;  %v870_v53 = vpop.f32.mrf.mxu1 }
 0x2df   :  { %v913_v51 = vadd.f32 %v850_v28, %v3559_v40  ;;  %v914_v21 = vadd.f32 %v870_v53, %v3560_v37  ;;  %v3562_v37 = vld [vmem:[#allocation43_spill] sm:$0xff] }
 0x2e1   :  { %v1848_v35 = vmul.f32 -1.442695, %v913_v51  ;;  %v1849_v45 = vmul.f32 -1.442695, %v914_v21 }
 0x2e3   :  { %1926 = vpow2.f32 %v1848_v35 }
 0x2e4   :  { %1928 = vpow2.f32 %v1849_v45 }
 0x2e5   :  { %v910_v30 = vpop.f32.mrf.mxu3  ;;  %v890_v20 = vpop.f32.mrf.mxu2 }
 0x2e6   :  { %v916_v34 = vadd.f32 %v910_v30, %v3561_v43  ;;  %v915_v51 = vadd.f32 %v890_v20, %v3562_v37 }
 0x2e8   :  { %v1850_v32 = vmul.f32 -1.442695, %v916_v34 }
 0x2e9   :  { %v1927_v27 = vpop.eup %1926 }
 0x2ea   :  { %v1929_v31 = vpop.eup %1928  ;;  %v920_v41 = vadd.f32 1.0, %v1927_v27  ;;  %1930 = vpow2.f32 %v1850_v32 }
 0x2eb   :  { %v939_v46 = vadd.f32 1.0, %v1929_v31 }
 0x2ec   :  { %1932 = vrcp.f32 %v920_v41  ;;  %v932_v34 = vand.u32 2147483648, %v920_v41  ;;  %v930_v32 = vand.u32 2147483647, %v920_v41  ;;  %vm926_vm12 = vweird.f32 %v920_v41 }
 0x2ed   :  { %1934 = vrcp.f32 %v939_v46  ;;  %v951_v43 = vand.u32 2147483648, %v939_v46  ;;  %v949_v26 = vand.u32 2147483647, %v939_v46  ;;  %vm945_vm13 = vweird.f32 %v939_v46 }
 0x2ee   :  { %v933_v20 = vor.u32 1.1754944e-38, %v932_v34  ;;  %vm931_vm2 = vcmp.eq.f32.partialorder %v930_v32, 8.507059e+37 }
 0x2ef   :  { %vm950_vm3 = vcmp.eq.f32.partialorder %v949_v26, 8.507059e+37 }
 0x2f0   :  { %v1931_v39 = vpop.eup %1930 }
 0x2f1   :  { %v959_v40 = vadd.f32 1.0, %v1931_v39 }
 0x2f2   :  { %v1933_v28 = vpop.eup %1932 }
 0x2f3   :  { %v1935_v53 = vpop.eup %1934  ;;  %v922_v35 = vmul.f32 %v1933_v28, %v920_v41  ;;  %1936 = vrcp.f32 %v959_v40  ;;  %vm927_vm10 = vweird.f32 %v1933_v28  ;;  %v971_v34 = vand.u32 2147483648, %v959_v40 }
 0x2f4   :  { %v941_v21 = vmul.f32 %v1935_v53, %v939_v46  ;;  %1938 = vtanh.f32 %v915_v51  ;;  %vm946_vm11 = vweird.f32 %v1935_v53  ;;  %vm928_vm14 = vmor %vm926_vm12, %vm927_vm10  ;;  %vm965_vm5 = vweird.f32 %v959_v40 }
 0x2f5   :  { %v923_v45 = vsub.f32 1.0, %v922_v35  ;;  %vm947_vm15 = vmor %vm945_vm13, %vm946_vm11  ;;  %v952_v35 = vor.u32 1.1754944e-38, %v951_v43  ;;  %v972_v32 = vor.u32 1.1754944e-38, %v971_v34  ;;  %v3581_v34 = vld [vmem:[#allocation11_spill] sm:$0xff] }
 0x2f6   :  { %v942_v30 = vsub.f32 1.0, %v941_v21 }
 0x2f7   :  { %v924_v27 = vmul.f32 %v1933_v28, %v923_v45 }
 0x2f8   :  { %v943_v31 = vmul.f32 %v1935_v53, %v942_v30 }
 0x2f9   :  { %v1937_v44 = vpop.eup %1936  ;;  %v925_v39 = vadd.f32 %v1933_v28, %v924_v27 }
 0x2fa   :  { %v944_v37 = vadd.f32 %v1935_v53, %v943_v31  ;;  %v961_v42 = vmul.f32 %v1937_v44, %v959_v40  ;;  %v1939_v51 = vpop.eup %1938  ;;  %vm966_vm4 = vweird.f32 %v1937_v44  ;;  %v3570_v31 = vld [vmem:[#allocation25_spill] sm:$0xff] }
 0x2fb   :  { %v929_v21 = vsel %vm928_vm14, %v1933_v28, %v925_v39  ;;  %v969_v28 = vand.u32 2147483647, %v959_v40  ;;  %vm967_vm6 = vmor %vm965_vm5, %vm966_vm4  ;;  %v3569_v40 = vld [vmem:[#allocation10_spill] sm:$0xff]  ;;  %v3571_v39 = vld [vmem:[#allocation23_spill] sm:$0xff] }
 0x2fc   :  { %v934_v33 = vsel %vm931_vm2, %v933_v20, %v929_v21  ;;  %v948_v45 = vsel %vm947_vm15, %v1935_v53, %v944_v37  ;;  %v962_v29 = vsub.f32 1.0, %v961_v42  ;;  %v3572_v20 = vld [vmem:[#allocation21_spill] sm:$0xff]  ;;  %v3573_v37 = vld [vmem:[#allocation22_spill] sm:$0xff]  ;;  %v3575_v21 = vld [vmem:[#allocation27_spill] sm:$0xff] }
 0x2fd   :  { %v953_v30 = vsel %vm950_vm3, %v952_v35, %v948_v45  ;;  %v976_v25 = vmul.f32 %v1939_v51, %v934_v33  ;;  %vm970_vm7 = vcmp.eq.f32.partialorder %v969_v28, 8.507059e+37  ;;  %v3567_v33 = vld [vmem:[#allocation19_spill] sm:$0xff]  ;;  %v3574_v35 = vld [vmem:[#allocation12_spill] sm:$0xff]  ;;  %v3576_v51 = vld [vmem:[#allocation29_spill] sm:$0xff] }
 0x2fe   :  { %v975_v38 = vmul.f32 %v953_v30, %v2917_v48  ;;  %v963_v27 = vmul.f32 %v1937_v44, %v962_v29  ;;  %v3563_v48 = vld [vmem:[#allocation14_spill] sm:$0xff]  ;;  %v3566_v29 = vld [vmem:[#allocation15_spill] sm:$0xff]  ;;  %v3577_v45 = vld [vmem:[#allocation20_spill] sm:$0xff] }
 0x2ff   :  { %v3578_v30 = vld [vmem:[#allocation26_spill] sm:$0xff]  ;;  %v3582_v28 = vld [vmem:[#allocation32_spill] sm:$0xff] }
 0x300   :  { %v3017_v41 = vadd.f32 %v976_v25, %v975_v38  ;;  %v964_v46 = vadd.f32 %v1937_v44, %v963_v27  ;;  %v3564_v38 = vld [vmem:[#allocation13_spill] sm:$0xff]  ;;  %v3579_v27 = vld [vmem:[#allocation16_spill] sm:$0xff] }
 0x301   :  { %v3565_v25 = vld [vmem:[#allocation9_spill] sm:$0xff] }
 0x302   :  { %1940 = vtanh.f32 %v3017_v41  ;;  %v968_v43 = vsel %vm967_vm6, %v1937_v44, %v964_v46  ;;  %v3568_v44 = vld [vmem:[#allocation17_spill] sm:$0xff]  ;;  %v3580_v46 = vld [vmem:[#allocation31_spill] sm:$0xff] }
 0x303   :  { %v973_v42 = vsel %vm970_vm7, %v972_v32, %v968_v43  ;;  %v3583_v43 = vld [vmem:[#allocation28_spill] sm:$0xff]  ;;  %v3584_v32 = vld [vmem:[#allocation18_spill] sm:$0xff] }
 0x308   :  { %v1941_v26 = vpop.eup %1940 }
 0x309   :  { %v979_v53 = vmul.f32 %v1941_v26, %v973_v42  ;;  %v3585_v26 = vld [vmem:[#allocation24_spill] sm:$0xff]  ;;  %v3586_v42 = vld [vmem:[#allocation33_spill] sm:$0xff] }
 0x30b   :  { %1001 = vmatmul.f32.vlgmr.msrb.gmra.mxu0 %v979_v53  ;;  %1021 = vmatmul.f32.vlgmr.msra.gmra.mxu1 %v979_v53 }
 0x30c   :  { %1041 = vmatmul.f32.vlgmr.msrb.gmra.mxu2 %v979_v53  ;;  %1061 = vmatmul.f32.vlgmr.msrb.gmra.mxu3 %v979_v53  ;;  %v3587_v53 = vld [vmem:[#allocation34_spill] sm:$0xff] }
 0x30d   :  { %1289 = vmatpush.msrb.mxu0 %v2748_v58  ;;  %1309 = vmatpush.msra.mxu1 %v2751_v54 }
 0x30e   :  { %1329 = vmatpush.msrb.mxu2 %v2754_v55  ;;  %1349 = vmatpush.msrb.mxu3 %v2757_v57 }
 0x30f   :  { %1290 = vmatpush.msrb.mxu0 %v2760_v60  ;;  %1310 = vmatpush.msra.mxu1 %v2763_v10 }
 0x310   :  { %1330 = vmatpush.msrb.mxu2 %v2766_v52  ;;  %1350 = vmatpush.msrb.mxu3 %v2769_v59 }
 0x311   :  { %1291 = vmatpush.msrb.mxu0 %v2772_v4  ;;  %1311 = vmatpush.msra.mxu1 %v2775_v9 }
 0x312   :  { %1331 = vmatpush.msrb.mxu2 %v2778_v2  ;;  %1351 = vmatpush.msrb.mxu3 %v2781_v62 }
 0x313   :  { %1292 = vmatpush.msrb.mxu0 %v2784_v12  ;;  %1312 = vmatpush.msra.mxu1 %v2787_v8 }
 0x314   :  { %1332 = vmatpush.msrb.mxu2 %v2790_v49  ;;  %1352 = vmatpush.msrb.mxu3 %v2793_v16 }
 0x315   :  { %1293 = vmatpush.msrb.mxu0 %v2796_v6  ;;  %1313 = vmatpush.msra.mxu1 %v2799_v47 }
 0x316   :  { %1333 = vmatpush.msrb.mxu2 %v2802_v3  ;;  %1353 = vmatpush.msrb.mxu3 %v2805_v56 }
 0x317   :  { %1294 = vmatpush.msrb.mxu0 %v2808_v50  ;;  %1314 = vmatpush.msra.mxu1 %v2811_v7 }
 0x318   :  { %1334 = vmatpush.msrb.mxu2 %v2814_v5  ;;  %1354 = vmatpush.msrb.mxu3 %v2817_v36 }
 0x319   :  { %1295 = vmatpush.msrb.mxu0 %v2820_v0  ;;  %1315 = vmatpush.msra.mxu1 %v2823_v22 }
 0x31a   :  { %1335 = vmatpush.msrb.mxu2 %v2826_v63  ;;  %1355 = vmatpush.msrb.mxu3 %v2829_v1 }
 0x31b   :  { %1296 = vmatpush.msrb.mxu0 %v2832_v61  ;;  %1316 = vmatpush.msra.mxu1 %v2835_v23 }
 0x31c   :  { %1336 = vmatpush.msrb.mxu2 %v2838_v11  ;;  %1356 = vmatpush.msrb.mxu3 %v2841_v13 }
 0x31d   :  { %1297 = vmatpush.msrb.mxu0 %v2844_v14  ;;  %1317 = vmatpush.msra.mxu1 %v2847_v15 }
 0x31e   :  { %1337 = vmatpush.msrb.mxu2 %v2850_v17  ;;  %1357 = vmatpush.msrb.mxu3 %v2853_v18 }
 0x31f   :  { %1298 = vmatpush.msrb.mxu0 %v2856_v19  ;;  %1318 = vmatpush.msra.mxu1 %v2859_v24 }
 0x320   :  { %1338 = vmatpush.msrb.mxu2 %v3563_v48  ;;  %1358 = vmatpush.msrb.mxu3 %v3564_v38 }
 0x321   :  { %1299 = vmatpush.msrb.mxu0 %v3565_v25  ;;  %1319 = vmatpush.msra.mxu1 %v3566_v29 }
 0x322   :  { %1339 = vmatpush.msrb.mxu2 %v3567_v33  ;;  %1359 = vmatpush.msrb.mxu3 %v3568_v44 }
 0x323   :  { %1300 = vmatpush.msrb.mxu0 %v3569_v40  ;;  %1320 = vmatpush.msra.mxu1 %v3570_v31 }
 0x324   :  { %1340 = vmatpush.msrb.mxu2 %v3571_v39  ;;  %1360 = vmatpush.msrb.mxu3 %v3572_v20 }
 0x325   :  { %1301 = vmatpush.msrb.mxu0 %v3573_v37  ;;  %1321 = vmatpush.msra.mxu1 %v3574_v35 }
 0x326   :  { %1341 = vmatpush.msrb.mxu2 %v3575_v21  ;;  %1361 = vmatpush.msrb.mxu3 %v3576_v51  ;;  %v3589_v51 = vld [vmem:[#allocation45_spill] sm:$0xff] }
 0x327   :  { %1302 = vmatpush.msrb.mxu0 %v3577_v45  ;;  %1322 = vmatpush.msra.mxu1 %v3578_v30  ;;  %v3588_v45 = vld [vmem:[#allocation30_spill] sm:$0xff]  ;;  %v3590_v21 = vld [vmem:[#allocation53_spill] sm:$0xff] }
 0x328   :  { %1342 = vmatpush.msrb.mxu2 %v3579_v27  ;;  %1362 = vmatpush.msrb.mxu3 %v3580_v46 }
 0x329   :  { %1303 = vmatpush.msrb.mxu0 %v3581_v34  ;;  %1323 = vmatpush.msra.mxu1 %v3582_v28 }
 0x32a   :  { %1343 = vmatpush.msrb.mxu2 %v3583_v43  ;;  %1363 = vmatpush.msrb.mxu3 %v3584_v32  ;;  %v3591_v32 = vld [vmem:[#allocation48_spill] sm:$0xff] }
 0x32b   :  { %1304 = vmatpush.msrb.mxu0 %v3585_v26  ;;  %1324 = vmatpush.msra.mxu1 %v3586_v42 }
 0x32c   :  { %1344 = vmatpush.msrb.mxu2 %v3587_v53  ;;  %1364 = vmatpush.msrb.mxu3 %v3588_v45 }
 0x388   :  { %v1002_v30 = vpop.f32.mrf.mxu0  ;;  %v1022_v27 = vpop.f32.mrf.mxu1 }
 0x389   :  { %v1065_v46 = vadd.f32 %v1002_v30, %v3589_v51  ;;  %v1066_v34 = vadd.f32 %v1022_v27, %v3590_v21  ;;  %v3592_v21 = vld [vmem:[#allocation47_spill] sm:$0xff] }
 0x38b   :  { %v1851_v35 = vmul.f32 -1.442695, %v1065_v46  ;;  %v1852_v28 = vmul.f32 -1.442695, %v1066_v34 }
 0x38d   :  { %1942 = vpow2.f32 %v1851_v35 }
 0x38e   :  { %1944 = vpow2.f32 %v1852_v28 }
 0x38f   :  { %v1062_v43 = vpop.f32.mrf.mxu3  ;;  %v1042_v45 = vpop.f32.mrf.mxu2 }
 0x390   :  { %v1068_v37 = vadd.f32 %v1062_v43, %v3591_v32  ;;  %v1067_v27 = vadd.f32 %v1042_v45, %v3592_v21 }
 0x392   :  { %v1853_v26 = vmul.f32 -1.442695, %v1068_v37 }
 0x393   :  { %v1943_v20 = vpop.eup %1942 }
 0x394   :  { %v1945_v42 = vpop.eup %1944  ;;  %v1072_v39 = vadd.f32 1.0, %v1943_v20  ;;  %1946 = vpow2.f32 %v1853_v26 }
 0x395   :  { %v1091_v53 = vadd.f32 1.0, %v1945_v42 }
 0x396   :  { %1948 = vrcp.f32 %v1072_v39  ;;  %v1084_v37 = vand.u32 2147483648, %v1072_v39  ;;  %v1082_v26 = vand.u32 2147483647, %v1072_v39  ;;  %vm1078_vm10 = vweird.f32 %v1072_v39 }
 0x397   :  { %1950 = vrcp.f32 %v1091_v53  ;;  %v1103_v32 = vand.u32 2147483648, %v1091_v53  ;;  %v1101_v40 = vand.u32 2147483647, %v1091_v53  ;;  %vm1097_vm11 = vweird.f32 %v1091_v53 }
 0x398   :  { %v1085_v45 = vor.u32 1.1754944e-38, %v1084_v37  ;;  %vm1083_vm14 = vcmp.eq.f32.partialorder %v1082_v26, 8.507059e+37 }
 0x399   :  { %vm1102_vm15 = vcmp.eq.f32.partialorder %v1101_v40, 8.507059e+37 }
 0x39a   :  { %v1947_v31 = vpop.eup %1946 }
 0x39b   :  { %v1111_v51 = vadd.f32 1.0, %v1947_v31 }
 0x39c   :  { %v1949_v30 = vpop.eup %1948 }
 0x39d   :  { %v1951_v46 = vpop.eup %1950  ;;  %v1074_v35 = vmul.f32 %v1949_v30, %v1072_v39  ;;  %1952 = vrcp.f32 %v1111_v51  ;;  %vm1079_vm8 = vweird.f32 %v1949_v30  ;;  %v1123_v37 = vand.u32 2147483648, %v1111_v51 }
 0x39e   :  { %v1093_v34 = vmul.f32 %v1951_v46, %v1091_v53  ;;  %1954 = vtanh.f32 %v1067_v27  ;;  %vm1098_vm9 = vweird.f32 %v1951_v46  ;;  %vm1080_vm12 = vmor %vm1078_vm10, %vm1079_vm8  ;;  %vm1117_vm3 = vweird.f32 %v1111_v51 }
 0x39f   :  { %v1075_v28 = vsub.f32 1.0, %v1074_v35  ;;  %vm1099_vm13 = vmor %vm1097_vm11, %vm1098_vm9  ;;  %v1104_v35 = vor.u32 1.1754944e-38, %v1103_v32  ;;  %v1124_v26 = vor.u32 1.1754944e-38, %v1123_v37 }
 0x3a0   :  { %v1094_v43 = vsub.f32 1.0, %v1093_v34 }
 0x3a1   :  { %v1076_v20 = vmul.f32 %v1949_v30, %v1075_v28 }
 0x3a2   :  { %v1095_v42 = vmul.f32 %v1951_v46, %v1094_v43 }
 0x3a3   :  { %v1953_v44 = vpop.eup %1952  ;;  %v1077_v31 = vadd.f32 %v1949_v30, %v1076_v20 }
 0x3a4   :  { %v1096_v21 = vadd.f32 %v1951_v46, %v1095_v42  ;;  %v1113_v33 = vmul.f32 %v1953_v44, %v1111_v51  ;;  %v1955_v27 = vpop.eup %1954  ;;  %vm1118_vm2 = vweird.f32 %v1953_v44 }
 0x3a5   :  { %v1081_v34 = vsel %vm1080_vm12, %v1949_v30, %v1077_v31  ;;  %v1121_v30 = vand.u32 2147483647, %v1111_v51  ;;  %vm1119_vm4 = vmor %vm1117_vm3, %vm1118_vm2  ;;  %v3622_v31 = vld [vmem:[#allocation51_spill] sm:$0xff] }
 0x3a6   :  { %v1086_v29 = vsel %vm1083_vm14, %v1085_v45, %v1081_v34  ;;  %v1100_v28 = vsel %vm1099_vm13, %v1951_v46, %v1096_v21  ;;  %v1114_v25 = vsub.f32 1.0, %v1113_v33 }
 0x3a7   :  { %v1105_v43 = vsel %vm1102_vm15, %v1104_v35, %v1100_v28  ;;  %v1128_v38 = vmul.f32 %v1955_v27, %v1086_v29  ;;  %vm1122_vm5 = vcmp.eq.f32.partialorder %v1121_v30, 8.507059e+37 }
 0x3a8   :  { %v1127_v48 = vmul.f32 %v1105_v43, %v3017_v41  ;;  %v1115_v20 = vmul.f32 %v1953_v44, %v1114_v25 }
 0x3aa   :  { %v3089_v39 = vadd.f32 %v1128_v38, %v1127_v48  ;;  %v1116_v53 = vadd.f32 %v1953_v44, %v1115_v20 }
 0x3ac   :  { %1956 = vtanh.f32 %v3089_v39  ;;  %v1120_v32 = vsel %vm1119_vm4, %v1953_v44, %v1116_v53 }
 0x3ad   :  { %v1125_v33 = vsel %vm1122_vm5, %v1124_v26, %v1120_v32 }
 0x3b2   :  { %v1957_v40 = vpop.eup %1956 }
 0x3b3   :  { %v1131_v46 = vmul.f32 %v1957_v40, %v1125_v33 }
 0x3b5   :  { %1153 = vmatmul.f32.vlgmr.msra.gmra.mxu0 %v1131_v46  ;;  %1173 = vmatmul.f32.vlgmr.msrb.gmra.mxu1 %v1131_v46 }
 0x3b6   :  { %1193 = vmatmul.f32.vlgmr.msra.gmra.mxu2 %v1131_v46  ;;  %1213 = vmatmul.f32.vlgmr.msra.gmra.mxu3 %v1131_v46 }
 0x3b7   :  { %1441 = vmatpush.msra.mxu0 %v2748_v58  ;;  %1461 = vmatpush.msrb.mxu1 %v2751_v54  ;;  %v3593_v58 = vld [vmem:[#allocation14_spill] sm:$0xff]  ;;  %v3594_v54 = vld [vmem:[#allocation13_spill] sm:$0xff] }
 0x3b8   :  { %1481 = vmatpush.msra.mxu2 %v2754_v55  ;;  %1501 = vmatpush.msra.mxu3 %v2757_v57  ;;  %v3595_v55 = vld [vmem:[#allocation9_spill] sm:$0xff]  ;;  %v3596_v57 = vld [vmem:[#allocation15_spill] sm:$0xff] }
 0x3b9   :  { %1442 = vmatpush.msra.mxu0 %v2760_v60  ;;  %1462 = vmatpush.msrb.mxu1 %v2763_v10  ;;  %v3597_v60 = vld [vmem:[#allocation19_spill] sm:$0xff]  ;;  %v3598_v10 = vld [vmem:[#allocation17_spill] sm:$0xff] }
 0x3ba   :  { %1482 = vmatpush.msra.mxu2 %v2766_v52  ;;  %1502 = vmatpush.msra.mxu3 %v2769_v59  ;;  %v3599_v52 = vld [vmem:[#allocation10_spill] sm:$0xff]  ;;  %v3600_v59 = vld [vmem:[#allocation25_spill] sm:$0xff] }
 0x3bb   :  { %1443 = vmatpush.msra.mxu0 %v2772_v4  ;;  %1463 = vmatpush.msrb.mxu1 %v2775_v9  ;;  %v3601_v4 = vld [vmem:[#allocation23_spill] sm:$0xff]  ;;  %v3602_v9 = vld [vmem:[#allocation21_spill] sm:$0xff] }
 0x3bc   :  { %1483 = vmatpush.msra.mxu2 %v2778_v2  ;;  %1503 = vmatpush.msra.mxu3 %v2781_v62  ;;  %v3603_v2 = vld [vmem:[#allocation22_spill] sm:$0xff]  ;;  %v3604_v62 = vld [vmem:[#allocation12_spill] sm:$0xff] }
 0x3bd   :  { %1444 = vmatpush.msra.mxu0 %v2784_v12  ;;  %1464 = vmatpush.msrb.mxu1 %v2787_v8  ;;  %v3605_v12 = vld [vmem:[#allocation27_spill] sm:$0xff]  ;;  %v3606_v8 = vld [vmem:[#allocation29_spill] sm:$0xff] }
 0x3be   :  { %1484 = vmatpush.msra.mxu2 %v2790_v49  ;;  %1504 = vmatpush.msra.mxu3 %v2793_v16  ;;  %v3607_v49 = vld [vmem:[#allocation20_spill] sm:$0xff]  ;;  %v3608_v16 = vld [vmem:[#allocation26_spill] sm:$0xff] }
 0x3bf   :  { %1445 = vmatpush.msra.mxu0 %v2796_v6  ;;  %1465 = vmatpush.msrb.mxu1 %v2799_v47  ;;  %v3609_v6 = vld [vmem:[#allocation16_spill] sm:$0xff]  ;;  %v3610_v47 = vld [vmem:[#allocation31_spill] sm:$0xff] }
 0x3c0   :  { %1485 = vmatpush.msra.mxu2 %v2802_v3  ;;  %1505 = vmatpush.msra.mxu3 %v2805_v56  ;;  %v3611_v3 = vld [vmem:[#allocation11_spill] sm:$0xff]  ;;  %v3612_v56 = vld [vmem:[#allocation32_spill] sm:$0xff] }
 0x3c1   :  { %1446 = vmatpush.msra.mxu0 %v2808_v50  ;;  %1466 = vmatpush.msrb.mxu1 %v2811_v7  ;;  %v3613_v50 = vld [vmem:[#allocation28_spill] sm:$0xff]  ;;  %v3614_v7 = vld [vmem:[#allocation18_spill] sm:$0xff] }
 0x3c2   :  { %1486 = vmatpush.msra.mxu2 %v2814_v5  ;;  %1506 = vmatpush.msra.mxu3 %v2817_v36  ;;  %v3615_v5 = vld [vmem:[#allocation24_spill] sm:$0xff]  ;;  %v3616_v36 = vld [vmem:[#allocation33_spill] sm:$0xff] }
 0x3c3   :  { %1447 = vmatpush.msra.mxu0 %v2820_v0  ;;  %1467 = vmatpush.msrb.mxu1 %v2823_v22  ;;  %v3617_v0 = vld [vmem:[#allocation34_spill] sm:$0xff] }
 0x3c4   :  { %1487 = vmatpush.msra.mxu2 %v2826_v63  ;;  %1507 = vmatpush.msra.mxu3 %v2829_v1  ;;  %v3618_v22 = vld [vmem:[#allocation30_spill] sm:$0xff] }
 0x3c5   :  { %1448 = vmatpush.msra.mxu0 %v2832_v61  ;;  %1468 = vmatpush.msrb.mxu1 %v2835_v23  ;;  %v3619_v61 = vld [vmem:[#allocation49_spill] sm:$0xff] }
 0x3c6   :  { %1488 = vmatpush.msra.mxu2 %v2838_v11  ;;  %1508 = vmatpush.msra.mxu3 %v2841_v13  ;;  %v3620_v11 = vld [vmem:[#allocation56_spill] sm:$0xff] }
 0x3c7   :  { %1449 = vmatpush.msra.mxu0 %v2844_v14  ;;  %1469 = vmatpush.msrb.mxu1 %v2847_v15 }
 0x3c8   :  { %1489 = vmatpush.msra.mxu2 %v2850_v17  ;;  %1509 = vmatpush.msra.mxu3 %v2853_v18  ;;  %v3621_v18 = vld [vmem:[#allocation52_spill] sm:$0xff] }
 0x3c9   :  { %1450 = vmatpush.msra.mxu0 %v2856_v19  ;;  %1470 = vmatpush.msrb.mxu1 %v2859_v24 }
 0x3ca   :  { %1490 = vmatpush.msra.mxu2 %v3593_v58  ;;  %1510 = vmatpush.msra.mxu3 %v3594_v54 }
 0x3cb   :  { %1451 = vmatpush.msra.mxu0 %v3595_v55  ;;  %1471 = vmatpush.msrb.mxu1 %v3596_v57 }
 0x3cc   :  { %1491 = vmatpush.msra.mxu2 %v3597_v60  ;;  %1511 = vmatpush.msra.mxu3 %v3598_v10 }
 0x3cd   :  { %1452 = vmatpush.msra.mxu0 %v3599_v52  ;;  %1472 = vmatpush.msrb.mxu1 %v3600_v59 }
 0x3ce   :  { %1492 = vmatpush.msra.mxu2 %v3601_v4  ;;  %1512 = vmatpush.msra.mxu3 %v3602_v9 }
 0x3cf   :  { %1453 = vmatpush.msra.mxu0 %v3603_v2  ;;  %1473 = vmatpush.msrb.mxu1 %v3604_v62 }
 0x3d0   :  { %1493 = vmatpush.msra.mxu2 %v3605_v12  ;;  %1513 = vmatpush.msra.mxu3 %v3606_v8 }
 0x3d1   :  { %1454 = vmatpush.msra.mxu0 %v3607_v49  ;;  %1474 = vmatpush.msrb.mxu1 %v3608_v16 }
 0x3d2   :  { %1494 = vmatpush.msra.mxu2 %v3609_v6  ;;  %1514 = vmatpush.msra.mxu3 %v3610_v47 }
 0x3d3   :  { %1455 = vmatpush.msra.mxu0 %v3611_v3  ;;  %1475 = vmatpush.msrb.mxu1 %v3612_v56 }
 0x3d4   :  { %1495 = vmatpush.msra.mxu2 %v3613_v50  ;;  %1515 = vmatpush.msra.mxu3 %v3614_v7  ;;  %v3623_v7 = vld [vmem:[#allocation7_spill] sm:$0xff] }
 0x3d5   :  { %1456 = vmatpush.msra.mxu0 %v3615_v5  ;;  %1476 = vmatpush.msrb.mxu1 %v3616_v36  ;;  %v3624_v36 = vld [vmem:[#allocation59_spill] sm:$0xff] }
 0x3d6   :  { %1496 = vmatpush.msra.mxu2 %v3617_v0  ;;  %1516 = vmatpush.msra.mxu3 %v3618_v22 }
 0x432   :  { %v1154_v63 = vpop.f32.mrf.mxu0  ;;  %v1174_v1 = vpop.f32.mrf.mxu1 }
 0x433   :  { %v1217_v23 = vadd.f32 %v1154_v63, %v3619_v61  ;;  %v1218_v13 = vadd.f32 %v1174_v1, %v3620_v11  ;;  %v3625_v61 = vld [vmem:[#allocation55_spill] sm:$0xff] }
 0x435   :  { %v1854_v14 = vmul.f32 -1.442695, %v1217_v23  ;;  %v1855_v15 = vmul.f32 -1.442695, %v1218_v13 }
 0x437   :  { %1958 = vpow2.f32 %v1854_v14 }
 0x438   :  { %1960 = vpow2.f32 %v1855_v15 }
 0x439   :  { %v1214_v17 = vpop.f32.mrf.mxu3  ;;  %v1194_v29 = vpop.f32.mrf.mxu2 }
 0x43a   :  { %v1220_v19 = vadd.f32 %v1214_v17, %v3621_v18  ;;  %v1219_v45 = vadd.f32 %v1194_v29, %v3622_v31  ;;  %v1605_v18 = vld.sshfl [vmem:[#allocation1] sm:$0xff pattern:$0x75316420]  ;;  %v1606_v31 = vld.sshfl [vmem:[#allocation1 + $0x10] sm:$0xff pattern:$0x75316420] }
 0x43c   :  { %v1856_v24 = vmul.f32 -1.442695, %v1220_v19  ;;  %v1607_v19 = vld.sshfl [vmem:[#allocation1 + $0x18] sm:$0xff pattern:$0x75316420] }
 0x43d   :  { %v1959_v41 = vpop.eup %1958 }
 0x43e   :  { %v1961_v48 = vpop.eup %1960  ;;  %v1224_v38 = vadd.f32 1.0, %v1959_v41  ;;  %1962 = vpow2.f32 %v1856_v24 }
 0x43f   :  { %v1243_v25 = vadd.f32 1.0, %v1961_v48 }
 0x440   :  { %1964 = vrcp.f32 %v1224_v38  ;;  %v1236_v43 = vand.u32 2147483648, %v1224_v38  ;;  %v1234_v37 = vand.u32 2147483647, %v1224_v38  ;;  %vm1230_vm8 = vweird.f32 %v1224_v38 }
 0x441   :  { %1966 = vrcp.f32 %v1243_v25  ;;  %v1255_v20 = vand.u32 2147483648, %v1243_v25  ;;  %v1253_v32 = vand.u32 2147483647, %v1243_v25  ;;  %vm1249_vm9 = vweird.f32 %v1243_v25 }
 0x442   :  { %v1237_v33 = vor.u32 1.1754944e-38, %v1236_v43  ;;  %vm1235_vm12 = vcmp.eq.f32.partialorder %v1234_v37, 8.507059e+37 }
 0x443   :  { %v1256_v54 = vor.u32 1.1754944e-38, %v1255_v20  ;;  %vm1254_vm13 = vcmp.eq.f32.partialorder %v1253_v32, 8.507059e+37 }
 0x444   :  { %v1963_v44 = vpop.eup %1962 }
 0x445   :  { %v1263_v51 = vadd.f32 1.0, %v1963_v44 }
 0x446   :  { %v1965_v42 = vpop.eup %1964 }
 0x447   :  { %v1967_v21 = vpop.eup %1966  ;;  %v1226_v35 = vmul.f32 %v1965_v42, %v1224_v38  ;;  %1968 = vrcp.f32 %v1263_v51  ;;  %vm1231_vm6 = vweird.f32 %v1965_v42  ;;  %v1275_v8 = vand.u32 2147483648, %v1263_v51 }
 0x448   :  { %v1245_v34 = vmul.f32 %v1967_v21, %v1243_v25  ;;  %1970 = vtanh.f32 %v1219_v45  ;;  %vm1250_vm7 = vweird.f32 %v1967_v21  ;;  %vm1232_vm10 = vmor %vm1230_vm8, %vm1231_vm6  ;;  %vm1269_vm15 = vweird.f32 %v1263_v51  ;;  %v3626_v25 = vld [vmem:[#allocation54_spill] sm:$0xff] }
 0x449   :  { %v1227_v27 = vsub.f32 1.0, %v1226_v35  ;;  %vm1251_vm11 = vmor %vm1249_vm9, %vm1250_vm7  ;;  %v1273_v49 = vand.u32 2147483647, %v1263_v51  ;;  %v1276_v6 = vor.u32 1.1754944e-38, %v1275_v8 }
 0x44a   :  { %v1246_v28 = vsub.f32 1.0, %v1245_v34 }
 0x44b   :  { %v1228_v53 = vmul.f32 %v1965_v42, %v1227_v27  ;;  %vm1274_vm3 = vcmp.eq.f32.partialorder %v1273_v49, 8.507059e+37 }
 0x44c   :  { %v1247_v30 = vmul.f32 %v1967_v21, %v1246_v28 }
 0x44d   :  { %v1969_v26 = vpop.eup %1968  ;;  %v1229_v40 = vadd.f32 %v1965_v42, %v1228_v53 }
 0x44e   :  { %v1248_v46 = vadd.f32 %v1967_v21, %v1247_v30  ;;  %v1265_v58 = vmul.f32 %v1969_v26, %v1263_v51  ;;  %v1971_v57 = vpop.eup %1970  ;;  %vm1270_vm14 = vweird.f32 %v1969_v26 }
 0x44f   :  { %v1233_v55 = vsel %vm1232_vm10, %v1965_v42, %v1229_v40  ;;  %vm1271_vm2 = vmor %vm1269_vm15, %vm1270_vm14 }
 0x450   :  { %v1238_v60 = vsel %vm1235_vm12, %v1237_v33, %v1233_v55  ;;  %v1252_v10 = vsel %vm1251_vm11, %v1967_v21, %v1248_v46  ;;  %v1266_v52 = vsub.f32 1.0, %v1265_v58 }
 0x451   :  { %v1257_v59 = vsel %vm1254_vm13, %v1256_v54, %v1252_v10  ;;  %v1280_v4 = vmul.f32 %v1971_v57, %v1238_v60 }
 0x452   :  { %v1279_v9 = vmul.f32 %v1257_v59, %v3089_v39  ;;  %v1267_v2 = vmul.f32 %v1969_v26, %v1266_v52 }
 0x454   :  { %v3161_v62 = vadd.f32 %v1280_v4, %v1279_v9  ;;  %v1268_v12 = vadd.f32 %v1969_v26, %v1267_v2 }
 0x456   :  { %1972 = vtanh.f32 %v3161_v62  ;;  %v1272_v16 = vsel %vm1271_vm2, %v1969_v26, %v1268_v12 }
 0x457   :  { %v1277_v3 = vsel %vm1274_vm3, %v1276_v6, %v1272_v16 }
 0x45c   :  { %v1973_v47 = vpop.eup %1972 }
 0x45d   :  { %v1283_v56 = vmul.f32 %v1973_v47, %v1277_v3  ;;  %v1734_v47 = vld [vmem:[%s3320_s6 + $0x78] sm:$0xff]  ;;  %v1733_v3 = vld [vmem:[%s3320_s6 + $0x70] sm:$0xff] }
 0x45f   :  { %1305 = vmatmul.f32.vlgmr.msrb.gmra.mxu0 %v1283_v56  ;;  %1325 = vmatmul.f32.vlgmr.msra.gmra.mxu1 %v1283_v56 }
 0x460   :  { %1345 = vmatmul.f32.vlgmr.msrb.gmra.mxu2 %v1283_v56  ;;  %1365 = vmatmul.f32.vlgmr.msrb.gmra.mxu3 %v1283_v56  ;;  %v1732_v56 = vld [vmem:[%s3320_s6 + $0x68] sm:$0xff] }
 0x461   :  { %1864 = vmatpush.msk.msrb.mxu0 %vm104_vm0, %v1605_v18  ;;  %1868 = vmatpush.msk.msrb.mxu2 %vm104_vm0, %v1607_v19  ;;  %v3627_v18 = vld [vmem:[#allocation35_spill] sm:$0xff] }
 0x462   :  { %1866 = vmatpush.msk.msra.mxu1 %vm104_vm0, %v1606_v31 }
 0x4dc   :  { %v1306_v39 = vpop.f32.mrf.mxu0  ;;  %v1326_v50 = vpop.f32.mrf.mxu1 }
 0x4dd   :  { %v1369_v5 = vadd.f32 %v1306_v39, %v3623_v7  ;;  %v1370_v0 = vadd.f32 %v1326_v50, %v3624_v36  ;;  %v1750_v39 = vld [vmem:[%s3321_s7 + $0x78] sm:$0xff]  ;;  %v1731_v50 = vld [vmem:[%s3320_s6 + $0x60] sm:$0xff]  ;;  %v1749_v7 = vld [vmem:[%s3321_s7 + $0x70] sm:$0xff] }
 0x4de   :  { %1751 = vmatpush.msrb.mxu3 %v1750_v39  ;;  %v1748_v36 = vld [vmem:[%s3321_s7 + $0x68] sm:$0xff] }
 0x4df   :  { %v1857_v22 = vmul.f32 -1.442695, %v1369_v5  ;;  %v1858_v63 = vmul.f32 -1.442695, %v1370_v0  ;;  %v1730_v5 = vld [vmem:[%s3320_s6 + $0x58] sm:$0xff]  ;;  %v1729_v0 = vld [vmem:[%s3320_s6 + $0x50] sm:$0xff] }
 0x4e0   :  { %1752 = vmatpush.msrb.mxu3 %v1749_v7 }
 0x4e1   :  { %1974 = vpow2.f32 %v1857_v22  ;;  %v1747_v22 = vld [vmem:[%s3321_s7 + $0x60] sm:$0xff] }
 0x4e2   :  { %1976 = vpow2.f32 %v1858_v63  ;;  %1753 = vmatpush.msrb.mxu3 %v1748_v36  ;;  %v1728_v63 = vld [vmem:[%s3320_s6 + $0x48] sm:$0xff] }
 0x4e3   :  { %v1366_v1 = vpop.f32.mrf.mxu3  ;;  %v1346_v24 = vpop.f32.mrf.mxu2 }
 0x4e4   :  { %v1372_v23 = vadd.f32 %v1366_v1, %v3625_v61  ;;  %v1371_v29 = vadd.f32 %v1346_v24, %v3626_v25  ;;  %1754 = vmatpush.msrb.mxu3 %v1747_v22  ;;  %v1746_v1 = vld [vmem:[%s3321_s7 + $0x58] sm:$0xff]  ;;  %v1727_v61 = vld [vmem:[%s3320_s6 + $0x40] sm:$0xff] }
 0x4e5   :  { %v3628_v24 = vld [vmem:[#allocation60_spill] sm:$0xff]  ;;  %v3243_v25 = vld [vmem:[%s3319_s5] sm:$0xf] }
 0x4e6   :  { %v1859_v11 = vmul.f32 -1.442695, %v1372_v23  ;;  %1755 = vmatpush.msrb.mxu3 %v1746_v1  ;;  %v1745_v23 = vld [vmem:[%s3321_s7 + $0x50] sm:$0xff]  ;;  %v1594_v31 = vperm.slane %v3243_v25, 0 }
 0x4e7   :  { %v1975_v13 = vpop.eup %1974 }
 0x4e8   :  { %v1977_v14 = vpop.eup %1976  ;;  %v1376_v15 = vadd.f32 1.0, %v1975_v13  ;;  %1978 = vpow2.f32 %v1859_v11  ;;  %v1726_v11 = vld [vmem:[%s3320_s6 + $0x38] sm:$0xff]  ;;  %1756 = vmatpush.msrb.mxu3 %v1745_v23  ;;  %v1744_v13 = vld [vmem:[%s3321_s7 + $0x48] sm:$0xff] }
 0x4e9   :  { %v1395_v17 = vadd.f32 1.0, %v1977_v14  ;;  %v1725_v14 = vld [vmem:[%s3320_s6 + $0x30] sm:$0xff] }
 0x4ea   :  { %1980 = vrcp.f32 %v1376_v15  ;;  %v1388_v35 = vand.u32 2147483648, %v1376_v15  ;;  %v1386_v28 = vand.u32 2147483647, %v1376_v15  ;;  %vm1382_vm6 = vweird.f32 %v1376_v15  ;;  %1757 = vmatpush.msrb.mxu3 %v1744_v13 }
 0x4eb   :  { %1982 = vrcp.f32 %v1395_v17  ;;  %v1407_v34 = vand.u32 2147483648, %v1395_v17  ;;  %v1405_v20 = vand.u32 2147483647, %v1395_v17  ;;  %vm1401_vm7 = vweird.f32 %v1395_v17 }
 0x4ec   :  { %v1389_v30 = vor.u32 1.1754944e-38, %v1388_v35  ;;  %vm1387_vm0 = vcmp.eq.f32.partialorder %v1386_v28, 8.507059e+37  ;;  %v1721_v28 = vld [vmem:[%s3320_s6 + $0x10] sm:$0xff] }
 0x4ed   :  { %v1408_v40 = vor.u32 1.1754944e-38, %v1407_v34  ;;  %vm1406_vm10 = vcmp.eq.f32.partialorder %v1405_v20, 8.507059e+37 }
 0x4ee   :  { %v1979_v41 = vpop.eup %1978 }
 0x4ef   :  { %v1415_v48 = vadd.f32 1.0, %v1979_v41 }
 0x4f0   :  { %v1981_v38 = vpop.eup %1980 }
 0x4f1   :  { %v1983_v44 = vpop.eup %1982  ;;  %v1378_v51 = vmul.f32 %v1981_v38, %v1376_v15  ;;  %1984 = vrcp.f32 %v1415_v48  ;;  %vm1383_vm4 = vweird.f32 %v1981_v38  ;;  %v1427_v9 = vand.u32 2147483648, %v1415_v48 }
 0x4f2   :  { %v1397_v42 = vmul.f32 %v1983_v44, %v1395_v17  ;;  %1986 = vtanh.f32 %v1371_v29  ;;  %vm1402_vm5 = vweird.f32 %v1983_v44  ;;  %vm1384_vm8 = vmor %vm1382_vm6, %vm1383_vm4  ;;  %vm1421_vm12 = vweird.f32 %v1415_v48 }
 0x4f3   :  { %v1379_v45 = vsub.f32 1.0, %v1378_v51  ;;  %vm1403_vm9 = vmor %vm1401_vm7, %vm1402_vm5  ;;  %v1425_v2 = vand.u32 2147483647, %v1415_v48  ;;  %v1428_v8 = vor.u32 1.1754944e-38, %v1427_v9  ;;  %v1742_v51 = vld [vmem:[%s3321_s7 + $0x38] sm:$0xff]  ;;  %v1735_v9 = vld [vmem:[%s3321_s7] sm:$0xff] }
 0x4f4   :  { %v1398_v21 = vsub.f32 1.0, %v1397_v42  ;;  %v1723_v42 = vld [vmem:[%s3320_s6 + $0x20] sm:$0xff] }
 0x4f5   :  { %v1380_v27 = vmul.f32 %v1981_v38, %v1379_v45  ;;  %vm1426_vm14 = vcmp.eq.f32.partialorder %v1425_v2, 8.507059e+37  ;;  %v1741_v45 = vld [vmem:[%s3321_s7 + $0x30] sm:$0xff] }
 0x4f6   :  { %v1399_v43 = vmul.f32 %v1983_v44, %v1398_v21  ;;  %v1722_v21 = vld [vmem:[%s3320_s6 + $0x18] sm:$0xff] }
 0x4f7   :  { %v1985_v53 = vpop.eup %1984  ;;  %v1381_v37 = vadd.f32 %v1981_v38, %v1380_v27  ;;  %v1740_v27 = vld [vmem:[%s3321_s7 + $0x28] sm:$0xff] }
 0x4f8   :  { %v1400_v32 = vadd.f32 %v1983_v44, %v1399_v43  ;;  %v1417_v26 = vmul.f32 %v1985_v53, %v1415_v48  ;;  %v1987_v46 = vpop.eup %1986  ;;  %vm1422_vm11 = vweird.f32 %v1985_v53  ;;  %v1743_v48 = vld [vmem:[%s3321_s7 + $0x40] sm:$0xff] }
 0x4f9   :  { %v1385_v33 = vsel %vm1384_vm8, %v1981_v38, %v1381_v37  ;;  %vm1423_vm13 = vmor %vm1421_vm12, %vm1422_vm11  ;;  %v1724_v38 = vld [vmem:[%s3320_s6 + $0x28] sm:$0xff]  ;;  %1758 = vmatpush.msrb.mxu3 %v1743_v48 }
 0x4fa   :  { %v1390_v58 = vsel %vm1387_vm0, %v1389_v30, %v1385_v33  ;;  %v1404_v54 = vsel %vm1403_vm9, %v1983_v44, %v1400_v32  ;;  %v1418_v55 = vsub.f32 1.0, %v1417_v26  ;;  %v3629_v43 = vld [vmem:[#allocation58_spill] sm:$0xff]  ;;  %v1738_v26 = vld [vmem:[%s3321_s7 + $0x18] sm:$0xff] }
 0x4fb   :  { %v1409_v57 = vsel %vm1406_vm10, %v1408_v40, %v1404_v54  ;;  %v1432_v60 = vmul.f32 %v1987_v46, %v1390_v58  ;;  %1759 = vmatpush.msrb.mxu3 %v1742_v51  ;;  %v1739_v30 = vld [vmem:[%s3321_s7 + $0x20] sm:$0xff]  ;;  %v1720_v32 = vld [vmem:[%s3320_s6 + $0x8] sm:$0xff] }
 0x4fc   :  { %v1431_v10 = vmul.f32 %v1409_v57, %v3161_v62  ;;  %v1419_v52 = vmul.f32 %v1985_v53, %v1418_v55  ;;  %v1863_v62 = vld [vmem:[%s3314_s0 + $0x38] sm:$0xff]  ;;  %v1719_v33 = vld [vmem:[%s3320_s6] sm:$0xff]  ;;  %v1596_v57 = vperm.slane %v3243_v25, 3 }
 0x4fd   :  { %1760 = vmatpush.msrb.mxu3 %v1741_v45 }
 0x4fe   :  { %v3172_v59 = vadd.f32 %v1432_v60, %v1431_v10  ;;  %v1420_v4 = vadd.f32 %v1985_v53, %v1419_v52  ;;  %v1737_v10 = vld [vmem:[%s3321_s7 + $0x10] sm:$0xff]  ;;  %v1736_v52 = vld [vmem:[%s3321_s7 + $0x8] sm:$0xff] }
 0x4ff   :  { %1761 = vmatpush.msrb.mxu3 %v1740_v27 }
 0x500   :  { %1988 = vtanh.f32 %v3172_v59  ;;  %v1424_v12 = vsel %vm1423_vm13, %v1985_v53, %v1420_v4 }
 0x501   :  { %v1429_v16 = vsel %vm1426_vm14, %v1428_v8, %v1424_v12  ;;  %1762 = vmatpush.msrb.mxu3 %v1739_v30 }
 0x503   :  { %1763 = vmatpush.msrb.mxu3 %v1738_v26 }
 0x505   :  { %1764 = vmatpush.msrb.mxu3 %v1737_v10 }
 0x506   :  { %v1989_v49 = vpop.eup %1988 }
 0x507   :  { %v1435_v6 = vmul.f32 %v1989_v49, %v1429_v16  ;;  %1765 = vmatpush.msrb.mxu3 %v1736_v52  ;;  %v1595_v49 = vperm.slane %v3243_v25, 2 }
 0x509   :  { %1457 = vmatmul.f32.vlgmr.msra.gmra.mxu0 %v1435_v6  ;;  %1477 = vmatmul.f32.vlgmr.msrb.gmra.mxu1 %v1435_v6 }
 0x50a   :  { %1497 = vmatmul.f32.vlgmr.msra.gmra.mxu2 %v1435_v6  ;;  %1517 = vmatmul.f32.vlgmr.msra.gmra.mxu3 %v1435_v6 }
 0x50b   :  { %1771 = vmatpush.msra.mxu0 %v1734_v47  ;;  %1766 = vmatpush.msrb.mxu3 %v1735_v9 }
 0x50d   :  { %1772 = vmatpush.msra.mxu0 %v1733_v3  ;;  %v3630_v3 = vld [vmem:[#allocation57_spill] sm:$0xff] }
 0x50f   :  { %1773 = vmatpush.msra.mxu0 %v1732_v56 }
 0x511   :  { %1865 = vmatmul.msk.f32.vlgmr.msrb.gmra.mxu0 %vm79_vm1, %v1863_v62  ;;  %1867 = vmatmul.msk.f32.vlgmr.msra.gmra.mxu1 %vm79_vm1, %v1863_v62 }
 0x512   :  { %1869 = vmatmul.msk.f32.vlgmr.msrb.gmra.mxu2 %vm79_vm1, %v1863_v62  ;;  %1774 = vmatpush.msra.mxu0 %v1731_v50 }
 0x514   :  { %1775 = vmatpush.msra.mxu0 %v1730_v5 }
 0x516   :  { %1776 = vmatpush.msra.mxu0 %v1729_v0 }
 0x518   :  { %1777 = vmatpush.msra.mxu0 %v1728_v63 }
 0x51a   :  { %1778 = vmatpush.msra.mxu0 %v1727_v61 }
 0x51c   :  { %1779 = vmatpush.msra.mxu0 %v1726_v11 }
 0x51e   :  { %1780 = vmatpush.msra.mxu0 %v1725_v14 }
 0x520   :  { %1781 = vmatpush.msra.mxu0 %v1724_v38 }
 0x522   :  { %1782 = vmatpush.msra.mxu0 %v1723_v42 }
 0x524   :  { %1783 = vmatpush.msra.mxu0 %v1722_v21 }
 0x526   :  { %1784 = vmatpush.msra.mxu0 %v1721_v28 }
 0x528   :  { %1785 = vmatpush.msra.mxu0 %v1720_v32 }
 0x52a   :  { %1786 = vmatpush.msra.mxu0 %v1719_v33 }
 0x586   :  { %v1458_v15 = vpop.f32.mrf.mxu0  ;;  %v1478_v17 = vpop.f32.mrf.mxu1 }
 0x587   :  { %v1521_v19 = vadd.f32 %v1458_v15, %v3627_v18  ;;  %v1522_v41 = vadd.f32 %v1478_v17, %v3628_v24 }
 0x589   :  { %v1860_v29 = vmul.f32 -1.442695, %v1521_v19  ;;  %v1861_v44 = vmul.f32 -1.442695, %v1522_v41 }
 0x58b   :  { %1990 = vpow2.f32 %v1860_v29 }
 0x58c   :  { %1992 = vpow2.f32 %v1861_v44 }
 0x58d   :  { %v1498_v35 = vpop.f32.mrf.mxu2  ;;  %v1518_v34 = vpop.f32.mrf.mxu3 }
 0x58e   :  { %v1524_v20 = vadd.f32 %v1518_v34, %v3629_v43  ;;  %v1634_v53 = vpop.f32.mrf.mxu0  ;;  %v1654_v62 = vpop.f32.mrf.mxu1  ;;  %v1523_v56 = vadd.f32 %v1498_v35, %v3630_v3 }
 0x58f   :  { %v1635_v37 = vadd.f32 %v1634_v53, %v1594_v31  ;;  %v1655_v36 = vadd.f32 %v1654_v62, %v1595_v49 }
 0x590   :  { %v1862_v40 = vmul.f32 -1.442695, %v1524_v20 }
 0x591   :  { %v1991_v46 = vpop.eup %1990  ;;  %v1870_v58 = vmul.f32 -1.442695, %v1635_v37 }
 0x592   :  { %v1993_v54 = vpop.eup %1992  ;;  %v1528_v55 = vadd.f32 1.0, %v1991_v46  ;;  %1994 = vpow2.f32 %v1862_v40 }
 0x593   :  { %v1547_v60 = vadd.f32 1.0, %v1993_v54  ;;  %1996 = vpow2.f32 %v1870_v58 }
 0x594   :  { %1998 = vrcp.f32 %v1528_v55  ;;  %v1538_v63 = vand.u32 2147483647, %v1528_v55  ;;  %v1540_v1 = vand.u32 2147483648, %v1528_v55  ;;  %vm1534_vm3 = vweird.f32 %v1528_v55 }
 0x595   :  { %2000 = vrcp.f32 %v1547_v60  ;;  %v1674_v4 = vpop.f32.mrf.mxu2  ;;  %v1559_v61 = vand.u32 2147483648, %v1547_v60  ;;  %v1557_v14 = vand.u32 2147483647, %v1547_v60  ;;  %vm1553_vm2 = vweird.f32 %v1547_v60 }
 0x596   :  { %v1675_v2 = vadd.f32 %v1674_v4, %v1596_v57  ;;  %vm1539_vm5 = vcmp.eq.f32.partialorder %v1538_v63, 8.507059e+37  ;;  %v1541_v24 = vor.u32 1.1754944e-38, %v1540_v1 }
 0x597   :  { %v1560_v38 = vor.u32 1.1754944e-38, %v1559_v61  ;;  %vm1558_vm7 = vcmp.eq.f32.partialorder %v1557_v14, 8.507059e+37 }
 0x598   :  { %v1995_v12 = vpop.eup %1994  ;;  %v1871_v8 = vmul.f32 -1.442695, %v1675_v2 }
 0x599   :  { %v1997_v16 = vpop.eup %1996  ;;  %v3288_v6 = vadd.f32 1.0, %v1995_v12 }
 0x59a   :  { %v1999_v47 = vpop.eup %1998  ;;  %v3291_v39 = vadd.f32 1.0, %v1997_v16  ;;  %2002 = vpow2.f32 %v1871_v8 }
 0x59b   :  { %v2001_v50 = vpop.eup %2000  ;;  %v1530_v7 = vmul.f32 %v1999_v47, %v1528_v55  ;;  %2004 = vrcp.f32 %v3288_v6  ;;  %vm1535_vm1 = vweird.f32 %v1999_v47  ;;  %vm1573_vm12 = vweird.f32 %v3288_v6 }
 0x59c   :  { %v1549_v5 = vmul.f32 %v2001_v50, %v1547_v60  ;;  %2006 = vrcp.f32 %v3291_v39  ;;  %vm1554_vm15 = vweird.f32 %v2001_v50  ;;  %vm1536_vm4 = vmor %vm1534_vm3, %vm1535_vm1  ;;  %v1692_v28 = vand.u32 2147483648, %v3291_v39 }
 0x59d   :  { %v1531_v0 = vsub.f32 1.0, %v1530_v7  ;;  %2008 = vtanh.f32 %v1523_v56  ;;  %vm1555_vm6 = vmor %vm1553_vm2, %vm1554_vm15  ;;  %v1690_v53 = vand.u32 2147483647, %v3291_v39  ;;  %vm1686_vm9 = vweird.f32 %v3291_v39  ;;  %v1877_v56 = vld [vmem:[#allocation3] ss:$0 sm:$0xff] }
 0x59e   :  { %v1550_v22 = vsub.f32 1.0, %v1549_v5  ;;  %2010 = vtanh.f32 %v1655_v36  ;;  %v1693_v33 = vor.u32 1.1754944e-38, %v1692_v28  ;;  %v1577_v58 = vand.u32 2147483647, %v3288_v6 }
 0x59f   :  { %v1532_v23 = vmul.f32 %v1999_v47, %v1531_v0  ;;  %vm1691_vm11 = vcmp.eq.f32.partialorder %v1690_v53, 8.507059e+37 }
 0x5a0   :  { %v2003_v11 = vpop.eup %2002  ;;  %v1551_v13 = vmul.f32 %v2001_v50, %v1550_v22  ;;  %vm1578_vm1 = vcmp.eq.f32.partialorder %v1577_v58, 8.507059e+37 }
 0x5a1   :  { %v2005_v15 = vpop.eup %2004  ;;  %v1533_v17 = vadd.f32 %v1999_v47, %v1532_v23  ;;  %v3295_v18 = vadd.f32 1.0, %v2003_v11 }
 0x5a2   :  { %v2007_v19 = vpop.eup %2006  ;;  %v1552_v41 = vadd.f32 %v2001_v50, %v1551_v13  ;;  %v1569_v48 = vmul.f32 %v2005_v15, %v3288_v6  ;;  %vm1574_vm0 = vweird.f32 %v2005_v15 }
 0x5a3   :  { %v1537_v25 = vsel %vm1536_vm4, %v1999_v47, %v1533_v17  ;;  %v1682_v29 = vmul.f32 %v2007_v19, %v3291_v39  ;;  %2012 = vrcp.f32 %v3295_v18  ;;  %v2009_v44 = vpop.eup %2008  ;;  %vm1687_vm8 = vweird.f32 %v2007_v19  ;;  %vm1575_vm13 = vmor %vm1573_vm12, %vm1574_vm0 }
 0x5a4   :  { %v1542_v51 = vsel %vm1539_vm5, %v1541_v24, %v1537_v25  ;;  %v1556_v42 = vsel %vm1555_vm6, %v2001_v50, %v1552_v41  ;;  %v1570_v31 = vsub.f32 1.0, %v1569_v48  ;;  %v2011_v34 = vpop.eup %2010  ;;  %vm1688_vm10 = vmor %vm1686_vm9, %vm1687_vm8  ;;  %v1712_v4 = vand.u32 2147483648, %v3295_v18 }
 0x5a5   :  { %v1561_v45 = vsel %vm1558_vm7, %v1560_v38, %v1556_v42  ;;  %v1584_v21 = vmul.f32 %v2009_v44, %v1542_v51  ;;  %v1683_v35 = vsub.f32 1.0, %v1682_v29  ;;  %vm1706_vm15 = vweird.f32 %v3295_v18 }
 0x5a6   :  { %v1583_v27 = vmul.f32 %v1561_v45, %v3172_v59  ;;  %v1571_v43 = vmul.f32 %v2005_v15, %v1570_v31  ;;  %v1579_v59 = vand.u32 2147483648, %v3288_v6  ;;  %v1710_v8 = vand.u32 2147483647, %v3295_v18 }
 0x5a7   :  { %v1684_v20 = vmul.f32 %v2007_v19, %v1683_v35  ;;  %v1713_v6 = vor.u32 1.1754944e-38, %v1712_v4  ;;  %vm1796_vm4 = vcmask 7168  }
 0x5a8   :  { %v1585_v37 = vadd.f32 %v1584_v21, %v1583_v27  ;;  %v1572_v26 = vadd.f32 %v2005_v15, %v1571_v43  ;;  %v1580_v10 = vor.u32 1.1754944e-38, %v1579_v59  ;;  %vm1711_vm3 = vcmp.eq.f32.partialorder %v1710_v8, 8.507059e+37 }
 0x5a9   :  { %v2013_v30 = vpop.eup %2012  ;;  %v1685_v32 = vadd.f32 %v2007_v19, %v1684_v20 }
 0x5aa   :  { %2014 = vtanh.f32 %v1585_v37  ;;  %v1702_v40 = vmul.f32 %v2013_v30, %v3295_v18  ;;  %v1576_v60 = vsel %vm1575_vm13, %v2005_v15, %v1572_v26  ;;  %vm1707_vm14 = vweird.f32 %v2013_v30 }
 0x5ab   :  { %v1689_v46 = vsel %vm1688_vm10, %v2007_v19, %v1685_v32  ;;  %v1581_v2 = vsel %vm1578_vm1, %v1580_v10, %v1576_v60  ;;  %vm1708_vm2 = vmor %vm1706_vm15, %vm1707_vm14 }
 0x5ac   :  { %v1703_v54 = vsub.f32 1.0, %v1702_v40  ;;  %v1694_v55 = vsel %vm1691_vm11, %v1693_v33, %v1689_v46 }
 0x5ad   :  { %v1716_v57 = vmul.f32 %v2011_v34, %v1694_v55 }
 0x5ae   :  { %v1704_v52 = vmul.f32 %v2013_v30, %v1703_v54 }
 0x5af   :  { %2016 = vtanh.f32 %v1716_v57 }
 0x5b0   :  { %v2015_v9 = vpop.eup %2014  ;;  %v1705_v12 = vadd.f32 %v2013_v30, %v1704_v52 }
 0x5b1   :  { %v1587_v49 = vmul.f32 %v2015_v9, %v1581_v2 }
 0x5b2   :  { %v1709_v16 = vsel %vm1708_vm2, %v2013_v30, %v1705_v12 }
 0x5b3   :  { %1787 = vmatmul.f32.vlgmr.msra.gmra.mxu0 %v1587_v49  ;;  %v1714_v47 = vsel %vm1711_vm3, %v1713_v6, %v1709_v16 }
 0x5b5   :  { %v2017_v62 = vpop.eup %2016 }
 0x5b6   :  { %v1718_v3 = vmul.f32 %v2017_v62, %v1714_v47 }
 0x5b8   :  { %1767 = vmatmul.f32.vlgmr.msrb.gmra.mxu3 %v1718_v3 }
 0x630   :  { %v1788_v39 = vpop.f32.mrf.mxu0 }
 0x63b   :  { %v1768_v50 = vpop.f32.mrf.mxu3 }
 0x63c   :  { %v1789_v7 = vadd.f32 %v1788_v39, %v1768_v50 }
 0x63e   :  { %v1795_v5 = vadd.f32 %v1877_v56, %v1789_v7 }
 0x640   :  { %1797 = vst.msk [vmem:[%s3323_s9] sm:$0xff] %vm1796_vm4, %v1795_v5 }
 0x641   :  { %1802 = vsyncpa [#allocation5], 1 }

</bundles_post_ra>
